<compile_context>
chip_gen: v7x
topology: tpu7x:2x2x1
jax: 0.10.0
libtpu: 0.0.40
codegen_flags: <defaults>
</compile_context>

<pallas_src>
import jax
import jax.numpy as jnp
from jax.experimental import pallas as pl
from jax.experimental.pallas import tpu as pltpu

_NEG = -1e30  # "minus infinity" for padded softmax lanes (avoids inf-inf NaNs)


def _round_up(x, m):
    return (x + m - 1) // m * m


def _attn_decoder_kernel(
    emb_attn_ref,   # (T, Lp)      emb @ attn_we + attn_b   (padded lanes = -1e30)
    emb_comb_ref,   # (T, H)       emb @ comb_we + comb_b
    hid0_ref,       # (1, H)       initial hidden
    enc_ref,        # (Lp, H)      encoder outputs, zero-padded rows
    hid_w_ref,      # (H, Lp+3H)   fused hidden weights [attn_wh | gru_whh^T]
    hid_b_ref,      # (1, Lp+3H)   [zeros(Lp) | gru_bhh]
    comb_wc_ref,    # (H, H)       attn_combine, context half
    w_i_ref,        # (H, 3H)      fused GRU input weights [r|z|n]
    b_i_ref,        # (1, 3H)
    out_w_ref,      # (H, Vp)      output projection (zero-padded cols)
    out_b_ref,      # (1, Vp)      padded lanes = -1e30
    logp_ref,       # out (T, Vp)
    h_trace_ref,    # out (T, H)
    aw_ref,         # out (T, Lp)
):
    T, Lp = emb_attn_ref.shape
    H = emb_comb_ref.shape[1]

    h = hid0_ref[...]                                  # (1, H) carried value

    # --- serial recurrence (T is small & static -> fully unrolled at trace) ---
    # TODO(synk): for large T switch to lax.fori_loop(..., unroll=k).
    for t in range(T):
        # single fused hidden-consuming dot: [attn-from-hidden | GRU hh gates]
        ga = (jnp.dot(h, hid_w_ref[...], preferred_element_type=jnp.float32)
              + hid_b_ref[...])                        # (1, Lp + 3H)

        # attention softmax (exact reciprocal: feeds the recurrent state)
        attn_logits = emb_attn_ref[pl.ds(t, 1), :] + ga[:, :Lp]      # (1, Lp)
        m = jnp.max(attn_logits, axis=1, keepdims=True)
        e = jnp.exp(attn_logits - m)                   # padded lanes -> exactly 0
        aw = e / jnp.sum(e, axis=1, keepdims=True)
        aw_ref[pl.ds(t, 1), :] = aw

        # context = attn_weights @ encoder_outputs (padded rows are zero)
        context = jnp.dot(aw, enc_ref[...],
                          preferred_element_type=jnp.float32)        # (1, H)

        # attn_combine(cat(embedded, context)) then ReLU
        # (embedded half precomputed outside the loop as emb_comb)
        x = jnp.maximum(
            emb_comb_ref[pl.ds(t, 1), :]
            + jnp.dot(context, comb_wc_ref[...],
                      preferred_element_type=jnp.float32),
            0.0)                                       # (1, H)

        # single-step GRU (gates fused into one (H,3H) input dot; hh gates
        # already computed in `ga`, bias b_hh already folded into hid_b)
        gi = (jnp.dot(x, w_i_ref[...], preferred_element_type=jnp.float32)
              + b_i_ref[...])                          # (1, 3H)
        gh = ga[:, Lp:]                                # (1, 3H)
        r = jax.nn.sigmoid(gi[:, :H] + gh[:, :H])
        z = jax.nn.sigmoid(gi[:, H:2 * H] + gh[:, H:2 * H])
        n = jnp.tanh(gi[:, 2 * H:] + r * gh[:, 2 * H:])
        h = (1.0 - z) * n + z * h                      # (1, H)
        h_trace_ref[pl.ds(t, 1), :] = h

    # --- epilogue: batched vocab projection + log_softmax over all T steps ---
    logits = (jnp.dot(h_trace_ref[...], out_w_ref[...],
                      preferred_element_type=jnp.float32)
              + out_b_ref[...])                        # (T, Vp)
    m2 = jnp.max(logits, axis=1, keepdims=True)
    shifted = logits - m2
    lse = jnp.log(jnp.sum(jnp.exp(shifted), axis=1, keepdims=True))
    logp_ref[...] = shifted - lse


def prepare_params(params, max_length):
    """One-time preprocessing: transposes, gate/weight fusion, lane-dense padding."""
    H = params["comb_b"].shape[0]
    V = params["out_w"].shape[0]
    Lp = _round_up(max_length, 128)
    Vp = _round_up(V, 128)

    # nn.Linear stores (out, in); transpose to (in, out), split concat halves.
    attn_wT = jnp.pad(params["attn_w"].T, ((0, 0), (0, Lp - max_length)))   # (2H, Lp)
    attn_b = jnp.pad(params["attn_b"], (0, Lp - max_length),
                     constant_values=_NEG)[None, :]                         # (1, Lp)
    attn_we, attn_wh = attn_wT[:H], attn_wT[H:]

    comb_wT = params["comb_w"].T                                            # (2H, H)
    comb_we, comb_wc = comb_wT[:H], comb_wT[H:]

    w_i = params["gru_wih"].T                                               # (H, 3H)
    w_h = params["gru_whh"].T                                               # (H, 3H)

    # fuse the two hidden-consuming weights into one (H, Lp+3H) slab
    hid_w = jnp.concatenate([attn_wh, w_h], axis=1)                         # (H, Lp+3H)
    hid_b = jnp.concatenate(
        [jnp.zeros((Lp,), jnp.float32), params["gru_bhh"]])[None, :]        # (1, Lp+3H)

    out_w = jnp.pad(params["out_w"].T, ((0, 0), (0, Vp - V)))               # (H, Vp)
    out_b = jnp.pad(params["out_b"], (0, Vp - V), constant_values=_NEG)[None, :]

    return dict(
        emb=params["emb"],                       # (V, H) — gathered in the wrapper
        attn_we=attn_we, attn_b=attn_b,          # token-side attn projection
        comb_we=comb_we, comb_b=params["comb_b"][None, :],
        comb_wc=comb_wc,
        hid_w=hid_w, hid_b=hid_b,
        w_i=w_i, b_i=params["gru_bih"][None, :],
        out_w=out_w, out_b=out_b,
    )


@jax.jit
def attn_decoder_decode(tokens, hidden0, encoder_outputs, prep):
    """Run T decoder steps in ONE pallas_call (everything VMEM-resident).

    tokens: (T,) int32; hidden0: (1,1,H) f32; encoder_outputs: (L,H) f32.
    Returns: logp (T, V), per-step hidden (T, H), attn weights (T, L).
    """
    T = tokens.shape[0]
    V, H = prep["emb"].shape
    Lp = prep["attn_b"].shape[1]
    Vp = prep["out_b"].shape[1]
    L = encoder_outputs.shape[0]

    # note: clip silently remaps out-of-range ids to V-1 (bounds the gather)
    toks = jnp.clip(tokens.astype(jnp.int32), 0, V - 1)
    emb_rows = jnp.take(prep["emb"], toks, axis=0)            # (T, H); dropout = identity

    # token-only projections hoisted out of the serial loop (batched matmuls)
    emb_attn = emb_rows @ prep["attn_we"] + prep["attn_b"]    # (T, Lp)
    emb_comb = emb_rows @ prep["comb_we"] + prep["comb_b"]    # (T, H)

    enc = jnp.pad(encoder_outputs, ((0, Lp - L), (0, 0)))     # (Lp, H)
    hid2d = jnp.reshape(hidden0, (1, H))

    vmem = pl.BlockSpec(memory_space=pltpu.MemorySpace.VMEM)  # whole array, resident

    logp, h_trace, aw = pl.pallas_call(
        _attn_decoder_kernel,
        out_shape=(
            jax.ShapeDtypeStruct((T, Vp), jnp.float32),
            jax.ShapeDtypeStruct((T, H), jnp.float32),
            jax.ShapeDtypeStruct((T, Lp), jnp.float32),
        ),
        in_specs=[vmem] * 11,
        out_specs=(vmem, vmem, vmem),
    )(
        emb_attn, emb_comb, hid2d, enc,
        prep["hid_w"], prep["hid_b"], prep["comb_wc"],
        prep["w_i"], prep["b_i"], prep["out_w"], prep["out_b"],
    )

    # strip lane padding
    return logp[:, :V], h_trace, aw[:, :L]


def attn_decoder_forward(token, hidden, encoder_outputs, prep):
    """Single decoder step mirroring the PyTorch module's forward signature."""
    H = hidden.shape[-1]
    logp, h, aw = attn_decoder_decode(
        jnp.reshape(token, (1,)).astype(jnp.int32), hidden, encoder_outputs, prep)
    return logp, jnp.reshape(h, (1, 1, H)), aw


# ---------------------------------------------------------------------------
# Pure-JAX reference (mirrors the PyTorch module in eval mode) and test driver
# ---------------------------------------------------------------------------
def _reference_step(token, hidden, encoder_outputs, params):
    H = hidden.shape[-1]
    embedded = params["emb"][token][None, :]                  # (1, H)
    h0 = hidden[0]                                            # (1, H)
    cat1 = jnp.concatenate([embedded, h0], axis=1)
    aw = jax.nn.softmax(cat1 @ params["attn_w"].T + params["attn_b"], axis=1)
    context = aw @ encoder_outputs
    cat2 = jnp.concatenate([embedded, context], axis=1)
    x = jnp.maximum(cat2 @ params["comb_w"].T + params["comb_b"], 0.0)
    gi = x @ params["gru_wih"].T + params["gru_bih"]
    gh = h0 @ params["gru_whh"].T + params["gru_bhh"]
    r = jax.nn.sigmoid(gi[:, :H] + gh[:, :H])
    z = jax.nn.sigmoid(gi[:, H:2 * H] + gh[:, H:2 * H])
    n = jnp.tanh(gi[:, 2 * H:] + r * gh[:, 2 * H:])
    h_new = (1.0 - z) * n + z * h0
    logits = h_new @ params["out_w"].T + params["out_b"]
    logp = jax.nn.log_softmax(logits, axis=1)
    return logp, h_new[None], aw


def init_params(key, hidden_size, output_size, max_length):
    ks = jax.random.split(key, 11)
    s = 0.1
    return {
        "emb":     jax.random.normal(ks[0], (output_size, hidden_size), jnp.float32) * s,
        "attn_w":  jax.random.normal(ks[1], (max_length, 2 * hidden_size), jnp.float32) * s,
        "attn_b":  jax.random.normal(ks[2], (max_length,), jnp.float32) * s,
        "comb_w":  jax.random.normal(ks[3], (hidden_size, 2 * hidden_size), jnp.float32) * s,
        "comb_b":  jax.random.normal(ks[4], (hidden_size,), jnp.float32) * s,
        "gru_wih": jax.random.normal(ks[5], (3 * hidden_size, hidden_size), jnp.float32) * s,
        "gru_whh": jax.random.normal(ks[6], (3 * hidden_size, hidden_size), jnp.float32) * s,
        "gru_bih": jax.random.normal(ks[7], (3 * hidden_size,), jnp.float32) * s,
        "gru_bhh": jax.random.normal(ks[8], (3 * hidden_size,), jnp.float32) * s,
        "out_w":   jax.random.normal(ks[9], (hidden_size if False else output_size, hidden_size), jnp.float32) * s,
        "out_b":   jax.random.normal(ks[10], (output_size,), jnp.float32) * s,
    }


if __name__ == "__main__":
    hidden_size = 128     # matches the module spec; lane-dense
    output_size = 200     # vocab (padded to 256 inside)
    max_length = 10       # padded to 128 inside
    T = 6                 # decode steps in one kernel call

    key = jax.random.PRNGKey(0)
    kp, kh, ke, kt = jax.random.split(key, 4)
    params = init_params(kp, hidden_size, output_size, max_length)
    prep = prepare_params(params, max_length)          # one-time preprocessing

    tokens = jax.random.randint(kt, (T,), 0, output_size, dtype=jnp.int32)
    hidden0 = jax.random.normal(kh, (1, 1, hidden_size), jnp.float32)
    encoder_outputs = jax.random.normal(ke, (max_length, hidden_size), jnp.float32)

    logp, hs, aw = attn_decoder_decode(tokens, hidden0, encoder_outputs, prep)
    jax.block_until_ready((logp, hs, aw))

    # reference: T sequential applications of the module's forward (eval mode)
    ref_logps, ref_hs, ref_aws = [], [], []
    h = hidden0
    for i in range(T):
        lp, h, a = _reference_step(int(tokens[i]), h, encoder_outputs, params)
        ref_logps.append(lp[0]); ref_hs.append(h[0, 0]); ref_aws.append(a[0])
    ref_logp = jnp.stack(ref_logps)
    ref_h = jnp.stack(ref_hs)
    ref_aw = jnp.stack(ref_aws)

    assert jnp.allclose(logp, ref_logp, rtol=1e-3, atol=1e-4), "logp mismatch"
    assert jnp.allclose(hs, ref_h, rtol=1e-3, atol=1e-4), "hidden mismatch"
    assert jnp.allclose(aw, ref_aw, rtol=1e-3, atol=1e-4), "attn weights mismatch"

    # single-step path mirroring the module's forward(input, hidden, enc_outputs)
    logp1, h1, aw1 = attn_decoder_forward(tokens[0], hidden0, encoder_outputs, prep)
    jax.block_until_ready((logp1, h1, aw1))
    assert jnp.allclose(logp1[0], ref_logp[0], rtol=1e-3, atol=1e-4), "step0 logp mismatch"
    assert jnp.allclose(h1[0, 0], ref_h[0], rtol=1e-3, atol=1e-4), "step0 hidden mismatch"
    assert jnp.allclose(aw1[0], ref_aw[0], rtol=1e-3, atol=1e-4), "step0 attn mismatch"

    print("KERNEL_OK")
</pallas_src>

<mosaic_0001>
module attributes {stable_mosaic.version = 11 : i64} {
  func.func @_attn_decoder_kernel(%arg0: memref<6x128xf32, #tpu.memory_space<vmem>>, %arg1: memref<6x128xf32, #tpu.memory_space<vmem>>, %arg2: memref<1x128xf32, #tpu.memory_space<vmem>>, %arg3: memref<128x128xf32, #tpu.memory_space<vmem>>, %arg4: memref<128x512xf32, #tpu.memory_space<vmem>>, %arg5: memref<1x512xf32, #tpu.memory_space<vmem>>, %arg6: memref<128x128xf32, #tpu.memory_space<vmem>>, %arg7: memref<128x384xf32, #tpu.memory_space<vmem>>, %arg8: memref<1x384xf32, #tpu.memory_space<vmem>>, %arg9: memref<128x256xf32, #tpu.memory_space<vmem>>, %arg10: memref<1x256xf32, #tpu.memory_space<vmem>>, %arg11: memref<6x256xf32, #tpu.memory_space<vmem>>, %arg12: memref<6x128xf32, #tpu.memory_space<vmem>>, %arg13: memref<6x128xf32, #tpu.memory_space<vmem>>) attributes {dimension_semantics = [], scalar_prefetch = 0 : i64, scratch_operands = 0 : i64, tpu.core_type = #tpu.core_type<tc>} {
    %c0 = arith.constant 0 : index
    %c0_0 = arith.constant 0 : index
    %0 = vector.load %arg2[%c0, %c0_0] : memref<1x128xf32, #tpu.memory_space<vmem>>, vector<1x128xf32>
    %c0_1 = arith.constant 0 : index
    %c0_2 = arith.constant 0 : index
    %1 = vector.load %arg4[%c0_1, %c0_2] : memref<128x512xf32, #tpu.memory_space<vmem>>, vector<128x512xf32>
    %cst = arith.constant dense<0.000000e+00> : vector<1x512xf32>
    %2 = tpu.matmul %0, %1, %cst {dimension_numbers = #tpu.dot_dimension_numbers<[1], [0], [0], [1], [0, 0, 1, 1], [], []>} : vector<1x128xf32>, vector<128x512xf32>, vector<1x512xf32> -> vector<1x512xf32>
    %c0_3 = arith.constant 0 : index
    %c0_4 = arith.constant 0 : index
    %3 = vector.load %arg5[%c0_3, %c0_4] : memref<1x512xf32, #tpu.memory_space<vmem>>, vector<1x512xf32>
    %4 = arith.addf %2, %3 : vector<1x512xf32>
    %c0_5 = arith.constant 0 : index
    %c0_6 = arith.constant 0 : index
    %5 = vector.load %arg0[%c0_5, %c0_6] : memref<6x128xf32, #tpu.memory_space<vmem>>, vector<1x128xf32>
    %6 = vector.extract_strided_slice %4 {offsets = [0, 0], sizes = [1, 128], strides = [1, 1]} : vector<1x512xf32> to vector<1x128xf32>
    %7 = arith.addf %5, %6 : vector<1x128xf32>
    %cst_7 = arith.constant dense<0xFF800000> : vector<1xf32>
    %8 = vector.multi_reduction <maximumf>, %7, %cst_7 [1] : vector<1x128xf32> to vector<1xf32>
    %9 = vector.shape_cast %8 : vector<1xf32> to vector<1x1xf32>
    %10 = vector.broadcast %9 : vector<1x1xf32> to vector<1x128xf32>
    %11 = arith.subf %7, %10 : vector<1x128xf32>
    %12 = math.exp %11 : vector<1x128xf32>
    %cst_8 = arith.constant dense<0.000000e+00> : vector<1xf32>
    %13 = vector.multi_reduction <add>, %12, %cst_8 [1] : vector<1x128xf32> to vector<1xf32>
    %14 = vector.shape_cast %13 : vector<1xf32> to vector<1x1xf32>
    %15 = vector.broadcast %14 : vector<1x1xf32> to vector<1x128xf32>
    %16 = arith.divf %12, %15 : vector<1x128xf32>
    %c0_9 = arith.constant 0 : index
    %c0_10 = arith.constant 0 : index
    %17 = vector.load %arg13[%c0_9, %c0_10] : memref<6x128xf32, #tpu.memory_space<vmem>>, vector<1x128xf32>
    tpu.vector_store %arg13[%c0_9, %c0_10], %16 {strides = array<i32>} : memref<6x128xf32, #tpu.memory_space<vmem>>, vector<1x128xf32>,
    %c0_11 = arith.constant 0 : index
    %c0_12 = arith.constant 0 : index
    %18 = vector.load %arg3[%c0_11, %c0_12] : memref<128x128xf32, #tpu.memory_space<vmem>>, vector<128x128xf32>
    %cst_13 = arith.constant dense<0.000000e+00> : vector<1x128xf32>
    %19 = tpu.matmul %16, %18, %cst_13 {dimension_numbers = #tpu.dot_dimension_numbers<[1], [0], [0], [1], [0, 0, 1, 1], [], []>} : vector<1x128xf32>, vector<128x128xf32>, vector<1x128xf32> -> vector<1x128xf32>
    %c0_14 = arith.constant 0 : index
    %c0_15 = arith.constant 0 : index
    %20 = vector.load %arg1[%c0_14, %c0_15] : memref<6x128xf32, #tpu.memory_space<vmem>>, vector<1x128xf32>
    %c0_16 = arith.constant 0 : index
    %c0_17 = arith.constant 0 : index
    %21 = vector.load %arg6[%c0_16, %c0_17] : memref<128x128xf32, #tpu.memory_space<vmem>>, vector<128x128xf32>
    %cst_18 = arith.constant dense<0.000000e+00> : vector<1x128xf32>
    %22 = tpu.matmul %19, %21, %cst_18 {dimension_numbers = #tpu.dot_dimension_numbers<[1], [0], [0], [1], [0, 0, 1, 1], [], []>} : vector<1x128xf32>, vector<128x128xf32>, vector<1x128xf32> -> vector<1x128xf32>
    %23 = arith.addf %20, %22 : vector<1x128xf32>
    %cst_19 = arith.constant 0.000000e+00 : f32
    %24 = vector.broadcast %cst_19 : f32 to vector<1x128xf32>
    %25 = arith.maximumf %23, %24 : vector<1x128xf32>
    %c0_20 = arith.constant 0 : index
    %c0_21 = arith.constant 0 : index
    %26 = vector.load %arg7[%c0_20, %c0_21] : memref<128x384xf32, #tpu.memory_space<vmem>>, vector<128x384xf32>
    %cst_22 = arith.constant dense<0.000000e+00> : vector<1x384xf32>
    %27 = tpu.matmul %25, %26, %cst_22 {dimension_numbers = #tpu.dot_dimension_numbers<[1], [0], [0], [1], [0, 0, 1, 1], [], []>} : vector<1x128xf32>, vector<128x384xf32>, vector<1x384xf32> -> vector<1x384xf32>
    %c0_23 = arith.constant 0 : index
    %c0_24 = arith.constant 0 : index
    %28 = vector.load %arg8[%c0_23, %c0_24] : memref<1x384xf32, #tpu.memory_space<vmem>>, vector<1x384xf32>
    %29 = arith.addf %27, %28 : vector<1x384xf32>
    %30 = vector.extract_strided_slice %4 {offsets = [0, 128], sizes = [1, 384], strides = [1, 1]} : vector<1x512xf32> to vector<1x384xf32>
    %31 = vector.extract_strided_slice %29 {offsets = [0, 0], sizes = [1, 128], strides = [1, 1]} : vector<1x384xf32> to vector<1x128xf32>
    %32 = vector.extract_strided_slice %30 {offsets = [0, 0], sizes = [1, 128], strides = [1, 1]} : vector<1x384xf32> to vector<1x128xf32>
    %33 = arith.addf %31, %32 : vector<1x128xf32>
    %34 = arith.negf %33 : vector<1x128xf32>
    %35 = math.exp %34 : vector<1x128xf32>
    %cst_25 = arith.constant 1.000000e+00 : f32
    %36 = vector.broadcast %cst_25 : f32 to vector<1x128xf32>
    %37 = arith.addf %36, %35 : vector<1x128xf32>
    %38 = arith.divf %36, %37 : vector<1x128xf32>
    %39 = vector.extract_strided_slice %29 {offsets = [0, 128], sizes = [1, 128], strides = [1, 1]} : vector<1x384xf32> to vector<1x128xf32>
    %40 = vector.extract_strided_slice %30 {offsets = [0, 128], sizes = [1, 128], strides = [1, 1]} : vector<1x384xf32> to vector<1x128xf32>
    %41 = arith.addf %39, %40 : vector<1x128xf32>
    %42 = arith.negf %41 : vector<1x128xf32>
    %43 = math.exp %42 : vector<1x128xf32>
    %cst_26 = arith.constant 1.000000e+00 : f32
    %44 = vector.broadcast %cst_26 : f32 to vector<1x128xf32>
    %45 = arith.addf %44, %43 : vector<1x128xf32>
    %46 = arith.divf %44, %45 : vector<1x128xf32>
    %47 = vector.extract_strided_slice %29 {offsets = [0, 256], sizes = [1, 128], strides = [1, 1]} : vector<1x384xf32> to vector<1x128xf32>
    %48 = vector.extract_strided_slice %30 {offsets = [0, 256], sizes = [1, 128], strides = [1, 1]} : vector<1x384xf32> to vector<1x128xf32>
    %49 = arith.mulf %38, %48 : vector<1x128xf32>
    %50 = arith.addf %47, %49 : vector<1x128xf32>
    %51 = math.tanh %50 : vector<1x128xf32>
    %cst_27 = arith.constant 1.000000e+00 : f32
    %52 = vector.broadcast %cst_27 : f32 to vector<1x128xf32>
    %53 = arith.subf %52, %46 : vector<1x128xf32>
    %54 = arith.mulf %53, %51 : vector<1x128xf32>
    %55 = arith.mulf %46, %0 : vector<1x128xf32>
    %56 = arith.addf %54, %55 : vector<1x128xf32>
    %c0_28 = arith.constant 0 : index
    %c0_29 = arith.constant 0 : index
    %57 = vector.load %arg12[%c0_28, %c0_29] : memref<6x128xf32, #tpu.memory_space<vmem>>, vector<1x128xf32>
    tpu.vector_store %arg12[%c0_28, %c0_29], %56 {strides = array<i32>} : memref<6x128xf32, #tpu.memory_space<vmem>>, vector<1x128xf32>,
    %c0_30 = arith.constant 0 : index
    %c0_31 = arith.constant 0 : index
    %58 = vector.load %arg4[%c0_30, %c0_31] : memref<128x512xf32, #tpu.memory_space<vmem>>, vector<128x512xf32>
    %cst_32 = arith.constant dense<0.000000e+00> : vector<1x512xf32>
    %59 = tpu.matmul %56, %58, %cst_32 {dimension_numbers = #tpu.dot_dimension_numbers<[1], [0], [0], [1], [0, 0, 1, 1], [], []>} : vector<1x128xf32>, vector<128x512xf32>, vector<1x512xf32> -> vector<1x512xf32>
    %c0_33 = arith.constant 0 : index
    %c0_34 = arith.constant 0 : index
    %60 = vector.load %arg5[%c0_33, %c0_34] : memref<1x512xf32, #tpu.memory_space<vmem>>, vector<1x512xf32>
    %61 = arith.addf %59, %60 : vector<1x512xf32>
    %c1 = arith.constant 1 : index
    %c0_35 = arith.constant 0 : index
    %62 = vector.load %arg0[%c1, %c0_35] : memref<6x128xf32, #tpu.memory_space<vmem>>, vector<1x128xf32>
    %63 = vector.extract_strided_slice %61 {offsets = [0, 0], sizes = [1, 128], strides = [1, 1]} : vector<1x512xf32> to vector<1x128xf32>
    %64 = arith.addf %62, %63 : vector<1x128xf32>
    %cst_36 = arith.constant dense<0xFF800000> : vector<1xf32>
    %65 = vector.multi_reduction <maximumf>, %64, %cst_36 [1] : vector<1x128xf32> to vector<1xf32>
    %66 = vector.shape_cast %65 : vector<1xf32> to vector<1x1xf32>
    %67 = vector.broadcast %66 : vector<1x1xf32> to vector<1x128xf32>
    %68 = arith.subf %64, %67 : vector<1x128xf32>
    %69 = math.exp %68 : vector<1x128xf32>
    %cst_37 = arith.constant dense<0.000000e+00> : vector<1xf32>
    %70 = vector.multi_reduction <add>, %69, %cst_37 [1] : vector<1x128xf32> to vector<1xf32>
    %71 = vector.shape_cast %70 : vector<1xf32> to vector<1x1xf32>
    %72 = vector.broadcast %71 : vector<1x1xf32> to vector<1x128xf32>
    %73 = arith.divf %69, %72 : vector<1x128xf32>
    %c1_38 = arith.constant 1 : index
    %c0_39 = arith.constant 0 : index
    %74 = vector.load %arg13[%c1_38, %c0_39] : memref<6x128xf32, #tpu.memory_space<vmem>>, vector<1x128xf32>
    tpu.vector_store %arg13[%c1_38, %c0_39], %73 {strides = array<i32>} : memref<6x128xf32, #tpu.memory_space<vmem>>, vector<1x128xf32>,
    %c0_40 = arith.constant 0 : index
    %c0_41 = arith.constant 0 : index
    %75 = vector.load %arg3[%c0_40, %c0_41] : memref<128x128xf32, #tpu.memory_space<vmem>>, vector<128x128xf32>
    %cst_42 = arith.constant dense<0.000000e+00> : vector<1x128xf32>
    %76 = tpu.matmul %73, %75, %cst_42 {dimension_numbers = #tpu.dot_dimension_numbers<[1], [0], [0], [1], [0, 0, 1, 1], [], []>} : vector<1x128xf32>, vector<128x128xf32>, vector<1x128xf32> -> vector<1x128xf32>
    %c1_43 = arith.constant 1 : index
    %c0_44 = arith.constant 0 : index
    %77 = vector.load %arg1[%c1_43, %c0_44] : memref<6x128xf32, #tpu.memory_space<vmem>>, vector<1x128xf32>
    %c0_45 = arith.constant 0 : index
    %c0_46 = arith.constant 0 : index
    %78 = vector.load %arg6[%c0_45, %c0_46] : memref<128x128xf32, #tpu.memory_space<vmem>>, vector<128x128xf32>
    %cst_47 = arith.constant dense<0.000000e+00> : vector<1x128xf32>
    %79 = tpu.matmul %76, %78, %cst_47 {dimension_numbers = #tpu.dot_dimension_numbers<[1], [0], [0], [1], [0, 0, 1, 1], [], []>} : vector<1x128xf32>, vector<128x128xf32>, vector<1x128xf32> -> vector<1x128xf32>
    %80 = arith.addf %77, %79 : vector<1x128xf32>
    %cst_48 = arith.constant 0.000000e+00 : f32
    %81 = vector.broadcast %cst_48 : f32 to vector<1x128xf32>
    %82 = arith.maximumf %80, %81 : vector<1x128xf32>
    %c0_49 = arith.constant 0 : index
    %c0_50 = arith.constant 0 : index
    %83 = vector.load %arg7[%c0_49, %c0_50] : memref<128x384xf32, #tpu.memory_space<vmem>>, vector<128x384xf32>
    %cst_51 = arith.constant dense<0.000000e+00> : vector<1x384xf32>
    %84 = tpu.matmul %82, %83, %cst_51 {dimension_numbers = #tpu.dot_dimension_numbers<[1], [0], [0], [1], [0, 0, 1, 1], [], []>} : vector<1x128xf32>, vector<128x384xf32>, vector<1x384xf32> -> vector<1x384xf32>
    %c0_52 = arith.constant 0 : index
    %c0_53 = arith.constant 0 : index
    %85 = vector.load %arg8[%c0_52, %c0_53] : memref<1x384xf32, #tpu.memory_space<vmem>>, vector<1x384xf32>
    %86 = arith.addf %84, %85 : vector<1x384xf32>
    %87 = vector.extract_strided_slice %61 {offsets = [0, 128], sizes = [1, 384], strides = [1, 1]} : vector<1x512xf32> to vector<1x384xf32>
    %88 = vector.extract_strided_slice %86 {offsets = [0, 0], sizes = [1, 128], strides = [1, 1]} : vector<1x384xf32> to vector<1x128xf32>
    %89 = vector.extract_strided_slice %87 {offsets = [0, 0], sizes = [1, 128], strides = [1, 1]} : vector<1x384xf32> to vector<1x128xf32>
    %90 = arith.addf %88, %89 : vector<1x128xf32>
    %91 = arith.negf %90 : vector<1x128xf32>
    %92 = math.exp %91 : vector<1x128xf32>
    %cst_54 = arith.constant 1.000000e+00 : f32
    %93 = vector.broadcast %cst_54 : f32 to vector<1x128xf32>
    %94 = arith.addf %93, %92 : vector<1x128xf32>
    %95 = arith.divf %93, %94 : vector<1x128xf32>
    %96 = vector.extract_strided_slice %86 {offsets = [0, 128], sizes = [1, 128], strides = [1, 1]} : vector<1x384xf32> to vector<1x128xf32>
    %97 = vector.extract_strided_slice %87 {offsets = [0, 128], sizes = [1, 128], strides = [1, 1]} : vector<1x384xf32> to vector<1x128xf32>
    %98 = arith.addf %96, %97 : vector<1x128xf32>
    %99 = arith.negf %98 : vector<1x128xf32>
    %100 = math.exp %99 : vector<1x128xf32>
    %cst_55 = arith.constant 1.000000e+00 : f32
    %101 = vector.broadcast %cst_55 : f32 to vector<1x128xf32>
    %102 = arith.addf %101, %100 : vector<1x128xf32>
    %103 = arith.divf %101, %102 : vector<1x128xf32>
    %104 = vector.extract_strided_slice %86 {offsets = [0, 256], sizes = [1, 128], strides = [1, 1]} : vector<1x384xf32> to vector<1x128xf32>
    %105 = vector.extract_strided_slice %87 {offsets = [0, 256], sizes = [1, 128], strides = [1, 1]} : vector<1x384xf32> to vector<1x128xf32>
    %106 = arith.mulf %95, %105 : vector<1x128xf32>
    %107 = arith.addf %104, %106 : vector<1x128xf32>
    %108 = math.tanh %107 : vector<1x128xf32>
    %cst_56 = arith.constant 1.000000e+00 : f32
    %109 = vector.broadcast %cst_56 : f32 to vector<1x128xf32>
    %110 = arith.subf %109, %103 : vector<1x128xf32>
    %111 = arith.mulf %110, %108 : vector<1x128xf32>
    %112 = arith.mulf %103, %56 : vector<1x128xf32>
    %113 = arith.addf %111, %112 : vector<1x128xf32>
    %c1_57 = arith.constant 1 : index
    %c0_58 = arith.constant 0 : index
    %114 = vector.load %arg12[%c1_57, %c0_58] : memref<6x128xf32, #tpu.memory_space<vmem>>, vector<1x128xf32>
    tpu.vector_store %arg12[%c1_57, %c0_58], %113 {strides = array<i32>} : memref<6x128xf32, #tpu.memory_space<vmem>>, vector<1x128xf32>,
    %c0_59 = arith.constant 0 : index
    %c0_60 = arith.constant 0 : index
    %115 = vector.load %arg4[%c0_59, %c0_60] : memref<128x512xf32, #tpu.memory_space<vmem>>, vector<128x512xf32>
    %cst_61 = arith.constant dense<0.000000e+00> : vector<1x512xf32>
    %116 = tpu.matmul %113, %115, %cst_61 {dimension_numbers = #tpu.dot_dimension_numbers<[1], [0], [0], [1], [0, 0, 1, 1], [], []>} : vector<1x128xf32>, vector<128x512xf32>, vector<1x512xf32> -> vector<1x512xf32>
    %c0_62 = arith.constant 0 : index
    %c0_63 = arith.constant 0 : index
    %117 = vector.load %arg5[%c0_62, %c0_63] : memref<1x512xf32, #tpu.memory_space<vmem>>, vector<1x512xf32>
    %118 = arith.addf %116, %117 : vector<1x512xf32>
    %c2 = arith.constant 2 : index
    %c0_64 = arith.constant 0 : index
    %119 = vector.load %arg0[%c2, %c0_64] : memref<6x128xf32, #tpu.memory_space<vmem>>, vector<1x128xf32>
    %120 = vector.extract_strided_slice %118 {offsets = [0, 0], sizes = [1, 128], strides = [1, 1]} : vector<1x512xf32> to vector<1x128xf32>
    %121 = arith.addf %119, %120 : vector<1x128xf32>
    %cst_65 = arith.constant dense<0xFF800000> : vector<1xf32>
    %122 = vector.multi_reduction <maximumf>, %121, %cst_65 [1] : vector<1x128xf32> to vector<1xf32>
    %123 = vector.shape_cast %122 : vector<1xf32> to vector<1x1xf32>
    %124 = vector.broadcast %123 : vector<1x1xf32> to vector<1x128xf32>
    %125 = arith.subf %121, %124 : vector<1x128xf32>
    %126 = math.exp %125 : vector<1x128xf32>
    %cst_66 = arith.constant dense<0.000000e+00> : vector<1xf32>
    %127 = vector.multi_reduction <add>, %126, %cst_66 [1] : vector<1x128xf32> to vector<1xf32>
    %128 = vector.shape_cast %127 : vector<1xf32> to vector<1x1xf32>
    %129 = vector.broadcast %128 : vector<1x1xf32> to vector<1x128xf32>
    %130 = arith.divf %126, %129 : vector<1x128xf32>
    %c2_67 = arith.constant 2 : index
    %c0_68 = arith.constant 0 : index
    %131 = vector.load %arg13[%c2_67, %c0_68] : memref<6x128xf32, #tpu.memory_space<vmem>>, vector<1x128xf32>
    tpu.vector_store %arg13[%c2_67, %c0_68], %130 {strides = array<i32>} : memref<6x128xf32, #tpu.memory_space<vmem>>, vector<1x128xf32>,
    %c0_69 = arith.constant 0 : index
    %c0_70 = arith.constant 0 : index
    %132 = vector.load %arg3[%c0_69, %c0_70] : memref<128x128xf32, #tpu.memory_space<vmem>>, vector<128x128xf32>
    %cst_71 = arith.constant dense<0.000000e+00> : vector<1x128xf32>
    %133 = tpu.matmul %130, %132, %cst_71 {dimension_numbers = #tpu.dot_dimension_numbers<[1], [0], [0], [1], [0, 0, 1, 1], [], []>} : vector<1x128xf32>, vector<128x128xf32>, vector<1x128xf32> -> vector<1x128xf32>
    %c2_72 = arith.constant 2 : index
    %c0_73 = arith.constant 0 : index
    %134 = vector.load %arg1[%c2_72, %c0_73] : memref<6x128xf32, #tpu.memory_space<vmem>>, vector<1x128xf32>
    %c0_74 = arith.constant 0 : index
    %c0_75 = arith.constant 0 : index
    %135 = vector.load %arg6[%c0_74, %c0_75] : memref<128x128xf32, #tpu.memory_space<vmem>>, vector<128x128xf32>
    %cst_76 = arith.constant dense<0.000000e+00> : vector<1x128xf32>
    %136 = tpu.matmul %133, %135, %cst_76 {dimension_numbers = #tpu.dot_dimension_numbers<[1], [0], [0], [1], [0, 0, 1, 1], [], []>} : vector<1x128xf32>, vector<128x128xf32>, vector<1x128xf32> -> vector<1x128xf32>
    %137 = arith.addf %134, %136 : vector<1x128xf32>
    %cst_77 = arith.constant 0.000000e+00 : f32
    %138 = vector.broadcast %cst_77 : f32 to vector<1x128xf32>
    %139 = arith.maximumf %137, %138 : vector<1x128xf32>
    %c0_78 = arith.constant 0 : index
    %c0_79 = arith.constant 0 : index
    %140 = vector.load %arg7[%c0_78, %c0_79] : memref<128x384xf32, #tpu.memory_space<vmem>>, vector<128x384xf32>
    %cst_80 = arith.constant dense<0.000000e+00> : vector<1x384xf32>
    %141 = tpu.matmul %139, %140, %cst_80 {dimension_numbers = #tpu.dot_dimension_numbers<[1], [0], [0], [1], [0, 0, 1, 1], [], []>} : vector<1x128xf32>, vector<128x384xf32>, vector<1x384xf32> -> vector<1x384xf32>
    %c0_81 = arith.constant 0 : index
    %c0_82 = arith.constant 0 : index
    %142 = vector.load %arg8[%c0_81, %c0_82] : memref<1x384xf32, #tpu.memory_space<vmem>>, vector<1x384xf32>
    %143 = arith.addf %141, %142 : vector<1x384xf32>
    %144 = vector.extract_strided_slice %118 {offsets = [0, 128], sizes = [1, 384], strides = [1, 1]} : vector<1x512xf32> to vector<1x384xf32>
    %145 = vector.extract_strided_slice %143 {offsets = [0, 0], sizes = [1, 128], strides = [1, 1]} : vector<1x384xf32> to vector<1x128xf32>
    %146 = vector.extract_strided_slice %144 {offsets = [0, 0], sizes = [1, 128], strides = [1, 1]} : vector<1x384xf32> to vector<1x128xf32>
    %147 = arith.addf %145, %146 : vector<1x128xf32>
    %148 = arith.negf %147 : vector<1x128xf32>
    %149 = math.exp %148 : vector<1x128xf32>
    %cst_83 = arith.constant 1.000000e+00 : f32
    %150 = vector.broadcast %cst_83 : f32 to vector<1x128xf32>
    %151 = arith.addf %150, %149 : vector<1x128xf32>
    %152 = arith.divf %150, %151 : vector<1x128xf32>
    %153 = vector.extract_strided_slice %143 {offsets = [0, 128], sizes = [1, 128], strides = [1, 1]} : vector<1x384xf32> to vector<1x128xf32>
    %154 = vector.extract_strided_slice %144 {offsets = [0, 128], sizes = [1, 128], strides = [1, 1]} : vector<1x384xf32> to vector<1x128xf32>
    %155 = arith.addf %153, %154 : vector<1x128xf32>
    %156 = arith.negf %155 : vector<1x128xf32>
    %157 = math.exp %156 : vector<1x128xf32>
    %cst_84 = arith.constant 1.000000e+00 : f32
    %158 = vector.broadcast %cst_84 : f32 to vector<1x128xf32>
    %159 = arith.addf %158, %157 : vector<1x128xf32>
    %160 = arith.divf %158, %159 : vector<1x128xf32>
    %161 = vector.extract_strided_slice %143 {offsets = [0, 256], sizes = [1, 128], strides = [1, 1]} : vector<1x384xf32> to vector<1x128xf32>
    %162 = vector.extract_strided_slice %144 {offsets = [0, 256], sizes = [1, 128], strides = [1, 1]} : vector<1x384xf32> to vector<1x128xf32>
    %163 = arith.mulf %152, %162 : vector<1x128xf32>
    %164 = arith.addf %161, %163 : vector<1x128xf32>
    %165 = math.tanh %164 : vector<1x128xf32>
    %cst_85 = arith.constant 1.000000e+00 : f32
    %166 = vector.broadcast %cst_85 : f32 to vector<1x128xf32>
    %167 = arith.subf %166, %160 : vector<1x128xf32>
    %168 = arith.mulf %167, %165 : vector<1x128xf32>
    %169 = arith.mulf %160, %113 : vector<1x128xf32>
    %170 = arith.addf %168, %169 : vector<1x128xf32>
    %c2_86 = arith.constant 2 : index
    %c0_87 = arith.constant 0 : index
    %171 = vector.load %arg12[%c2_86, %c0_87] : memref<6x128xf32, #tpu.memory_space<vmem>>, vector<1x128xf32>
    tpu.vector_store %arg12[%c2_86, %c0_87], %170 {strides = array<i32>} : memref<6x128xf32, #tpu.memory_space<vmem>>, vector<1x128xf32>,
    %c0_88 = arith.constant 0 : index
    %c0_89 = arith.constant 0 : index
    %172 = vector.load %arg4[%c0_88, %c0_89] : memref<128x512xf32, #tpu.memory_space<vmem>>, vector<128x512xf32>
    %cst_90 = arith.constant dense<0.000000e+00> : vector<1x512xf32>
    %173 = tpu.matmul %170, %172, %cst_90 {dimension_numbers = #tpu.dot_dimension_numbers<[1], [0], [0], [1], [0, 0, 1, 1], [], []>} : vector<1x128xf32>, vector<128x512xf32>, vector<1x512xf32> -> vector<1x512xf32>
    %c0_91 = arith.constant 0 : index
    %c0_92 = arith.constant 0 : index
    %174 = vector.load %arg5[%c0_91, %c0_92] : memref<1x512xf32, #tpu.memory_space<vmem>>, vector<1x512xf32>
    %175 = arith.addf %173, %174 : vector<1x512xf32>
    %c3 = arith.constant 3 : index
    %c0_93 = arith.constant 0 : index
    %176 = vector.load %arg0[%c3, %c0_93] : memref<6x128xf32, #tpu.memory_space<vmem>>, vector<1x128xf32>
    %177 = vector.extract_strided_slice %175 {offsets = [0, 0], sizes = [1, 128], strides = [1, 1]} : vector<1x512xf32> to vector<1x128xf32>
    %178 = arith.addf %176, %177 : vector<1x128xf32>
    %cst_94 = arith.constant dense<0xFF800000> : vector<1xf32>
    %179 = vector.multi_reduction <maximumf>, %178, %cst_94 [1] : vector<1x128xf32> to vector<1xf32>
    %180 = vector.shape_cast %179 : vector<1xf32> to vector<1x1xf32>
    %181 = vector.broadcast %180 : vector<1x1xf32> to vector<1x128xf32>
    %182 = arith.subf %178, %181 : vector<1x128xf32>
    %183 = math.exp %182 : vector<1x128xf32>
    %cst_95 = arith.constant dense<0.000000e+00> : vector<1xf32>
    %184 = vector.multi_reduction <add>, %183, %cst_95 [1] : vector<1x128xf32> to vector<1xf32>
    %185 = vector.shape_cast %184 : vector<1xf32> to vector<1x1xf32>
    %186 = vector.broadcast %185 : vector<1x1xf32> to vector<1x128xf32>
    %187 = arith.divf %183, %186 : vector<1x128xf32>
    %c3_96 = arith.constant 3 : index
    %c0_97 = arith.constant 0 : index
    %188 = vector.load %arg13[%c3_96, %c0_97] : memref<6x128xf32, #tpu.memory_space<vmem>>, vector<1x128xf32>
    tpu.vector_store %arg13[%c3_96, %c0_97], %187 {strides = array<i32>} : memref<6x128xf32, #tpu.memory_space<vmem>>, vector<1x128xf32>,
    %c0_98 = arith.constant 0 : index
    %c0_99 = arith.constant 0 : index
    %189 = vector.load %arg3[%c0_98, %c0_99] : memref<128x128xf32, #tpu.memory_space<vmem>>, vector<128x128xf32>
    %cst_100 = arith.constant dense<0.000000e+00> : vector<1x128xf32>
    %190 = tpu.matmul %187, %189, %cst_100 {dimension_numbers = #tpu.dot_dimension_numbers<[1], [0], [0], [1], [0, 0, 1, 1], [], []>} : vector<1x128xf32>, vector<128x128xf32>, vector<1x128xf32> -> vector<1x128xf32>
    %c3_101 = arith.constant 3 : index
    %c0_102 = arith.constant 0 : index
    %191 = vector.load %arg1[%c3_101, %c0_102] : memref<6x128xf32, #tpu.memory_space<vmem>>, vector<1x128xf32>
    %c0_103 = arith.constant 0 : index
    %c0_104 = arith.constant 0 : index
    %192 = vector.load %arg6[%c0_103, %c0_104] : memref<128x128xf32, #tpu.memory_space<vmem>>, vector<128x128xf32>
    %cst_105 = arith.constant dense<0.000000e+00> : vector<1x128xf32>
    %193 = tpu.matmul %190, %192, %cst_105 {dimension_numbers = #tpu.dot_dimension_numbers<[1], [0], [0], [1], [0, 0, 1, 1], [], []>} : vector<1x128xf32>, vector<128x128xf32>, vector<1x128xf32> -> vector<1x128xf32>
    %194 = arith.addf %191, %193 : vector<1x128xf32>
    %cst_106 = arith.constant 0.000000e+00 : f32
    %195 = vector.broadcast %cst_106 : f32 to vector<1x128xf32>
    %196 = arith.maximumf %194, %195 : vector<1x128xf32>
    %c0_107 = arith.constant 0 : index
    %c0_108 = arith.constant 0 : index
    %197 = vector.load %arg7[%c0_107, %c0_108] : memref<128x384xf32, #tpu.memory_space<vmem>>, vector<128x384xf32>
    %cst_109 = arith.constant dense<0.000000e+00> : vector<1x384xf32>
    %198 = tpu.matmul %196, %197, %cst_109 {dimension_numbers = #tpu.dot_dimension_numbers<[1], [0], [0], [1], [0, 0, 1, 1], [], []>} : vector<1x128xf32>, vector<128x384xf32>, vector<1x384xf32> -> vector<1x384xf32>
    %c0_110 = arith.constant 0 : index
    %c0_111 = arith.constant 0 : index
    %199 = vector.load %arg8[%c0_110, %c0_111] : memref<1x384xf32, #tpu.memory_space<vmem>>, vector<1x384xf32>
    %200 = arith.addf %198, %199 : vector<1x384xf32>
    %201 = vector.extract_strided_slice %175 {offsets = [0, 128], sizes = [1, 384], strides = [1, 1]} : vector<1x512xf32> to vector<1x384xf32>
    %202 = vector.extract_strided_slice %200 {offsets = [0, 0], sizes = [1, 128], strides = [1, 1]} : vector<1x384xf32> to vector<1x128xf32>
    %203 = vector.extract_strided_slice %201 {offsets = [0, 0], sizes = [1, 128], strides = [1, 1]} : vector<1x384xf32> to vector<1x128xf32>
    %204 = arith.addf %202, %203 : vector<1x128xf32>
    %205 = arith.negf %204 : vector<1x128xf32>
    %206 = math.exp %205 : vector<1x128xf32>
    %cst_112 = arith.constant 1.000000e+00 : f32
    %207 = vector.broadcast %cst_112 : f32 to vector<1x128xf32>
    %208 = arith.addf %207, %206 : vector<1x128xf32>
    %209 = arith.divf %207, %208 : vector<1x128xf32>
    %210 = vector.extract_strided_slice %200 {offsets = [0, 128], sizes = [1, 128], strides = [1, 1]} : vector<1x384xf32> to vector<1x128xf32>
    %211 = vector.extract_strided_slice %201 {offsets = [0, 128], sizes = [1, 128], strides = [1, 1]} : vector<1x384xf32> to vector<1x128xf32>
    %212 = arith.addf %210, %211 : vector<1x128xf32>
    %213 = arith.negf %212 : vector<1x128xf32>
    %214 = math.exp %213 : vector<1x128xf32>
    %cst_113 = arith.constant 1.000000e+00 : f32
    %215 = vector.broadcast %cst_113 : f32 to vector<1x128xf32>
    %216 = arith.addf %215, %214 : vector<1x128xf32>
    %217 = arith.divf %215, %216 : vector<1x128xf32>
    %218 = vector.extract_strided_slice %200 {offsets = [0, 256], sizes = [1, 128], strides = [1, 1]} : vector<1x384xf32> to vector<1x128xf32>
    %219 = vector.extract_strided_slice %201 {offsets = [0, 256], sizes = [1, 128], strides = [1, 1]} : vector<1x384xf32> to vector<1x128xf32>
    %220 = arith.mulf %209, %219 : vector<1x128xf32>
    %221 = arith.addf %218, %220 : vector<1x128xf32>
    %222 = math.tanh %221 : vector<1x128xf32>
    %cst_114 = arith.constant 1.000000e+00 : f32
    %223 = vector.broadcast %cst_114 : f32 to vector<1x128xf32>
    %224 = arith.subf %223, %217 : vector<1x128xf32>
    %225 = arith.mulf %224, %222 : vector<1x128xf32>
    %226 = arith.mulf %217, %170 : vector<1x128xf32>
    %227 = arith.addf %225, %226 : vector<1x128xf32>
    %c3_115 = arith.constant 3 : index
    %c0_116 = arith.constant 0 : index
    %228 = vector.load %arg12[%c3_115, %c0_116] : memref<6x128xf32, #tpu.memory_space<vmem>>, vector<1x128xf32>
    tpu.vector_store %arg12[%c3_115, %c0_116], %227 {strides = array<i32>} : memref<6x128xf32, #tpu.memory_space<vmem>>, vector<1x128xf32>,
    %c0_117 = arith.constant 0 : index
    %c0_118 = arith.constant 0 : index
    %229 = vector.load %arg4[%c0_117, %c0_118] : memref<128x512xf32, #tpu.memory_space<vmem>>, vector<128x512xf32>
    %cst_119 = arith.constant dense<0.000000e+00> : vector<1x512xf32>
    %230 = tpu.matmul %227, %229, %cst_119 {dimension_numbers = #tpu.dot_dimension_numbers<[1], [0], [0], [1], [0, 0, 1, 1], [], []>} : vector<1x128xf32>, vector<128x512xf32>, vector<1x512xf32> -> vector<1x512xf32>
    %c0_120 = arith.constant 0 : index
    %c0_121 = arith.constant 0 : index
    %231 = vector.load %arg5[%c0_120, %c0_121] : memref<1x512xf32, #tpu.memory_space<vmem>>, vector<1x512xf32>
    %232 = arith.addf %230, %231 : vector<1x512xf32>
    %c4 = arith.constant 4 : index
    %c0_122 = arith.constant 0 : index
    %233 = vector.load %arg0[%c4, %c0_122] : memref<6x128xf32, #tpu.memory_space<vmem>>, vector<1x128xf32>
    %234 = vector.extract_strided_slice %232 {offsets = [0, 0], sizes = [1, 128], strides = [1, 1]} : vector<1x512xf32> to vector<1x128xf32>
    %235 = arith.addf %233, %234 : vector<1x128xf32>
    %cst_123 = arith.constant dense<0xFF800000> : vector<1xf32>
    %236 = vector.multi_reduction <maximumf>, %235, %cst_123 [1] : vector<1x128xf32> to vector<1xf32>
    %237 = vector.shape_cast %236 : vector<1xf32> to vector<1x1xf32>
    %238 = vector.broadcast %237 : vector<1x1xf32> to vector<1x128xf32>
    %239 = arith.subf %235, %238 : vector<1x128xf32>
    %240 = math.exp %239 : vector<1x128xf32>
    %cst_124 = arith.constant dense<0.000000e+00> : vector<1xf32>
    %241 = vector.multi_reduction <add>, %240, %cst_124 [1] : vector<1x128xf32> to vector<1xf32>
    %242 = vector.shape_cast %241 : vector<1xf32> to vector<1x1xf32>
    %243 = vector.broadcast %242 : vector<1x1xf32> to vector<1x128xf32>
    %244 = arith.divf %240, %243 : vector<1x128xf32>
    %c4_125 = arith.constant 4 : index
    %c0_126 = arith.constant 0 : index
    %245 = vector.load %arg13[%c4_125, %c0_126] : memref<6x128xf32, #tpu.memory_space<vmem>>, vector<1x128xf32>
    tpu.vector_store %arg13[%c4_125, %c0_126], %244 {strides = array<i32>} : memref<6x128xf32, #tpu.memory_space<vmem>>, vector<1x128xf32>,
    %c0_127 = arith.constant 0 : index
    %c0_128 = arith.constant 0 : index
    %246 = vector.load %arg3[%c0_127, %c0_128] : memref<128x128xf32, #tpu.memory_space<vmem>>, vector<128x128xf32>
    %cst_129 = arith.constant dense<0.000000e+00> : vector<1x128xf32>
    %247 = tpu.matmul %244, %246, %cst_129 {dimension_numbers = #tpu.dot_dimension_numbers<[1], [0], [0], [1], [0, 0, 1, 1], [], []>} : vector<1x128xf32>, vector<128x128xf32>, vector<1x128xf32> -> vector<1x128xf32>
    %c4_130 = arith.constant 4 : index
    %c0_131 = arith.constant 0 : index
    %248 = vector.load %arg1[%c4_130, %c0_131] : memref<6x128xf32, #tpu.memory_space<vmem>>, vector<1x128xf32>
    %c0_132 = arith.constant 0 : index
    %c0_133 = arith.constant 0 : index
    %249 = vector.load %arg6[%c0_132, %c0_133] : memref<128x128xf32, #tpu.memory_space<vmem>>, vector<128x128xf32>
    %cst_134 = arith.constant dense<0.000000e+00> : vector<1x128xf32>
    %250 = tpu.matmul %247, %249, %cst_134 {dimension_numbers = #tpu.dot_dimension_numbers<[1], [0], [0], [1], [0, 0, 1, 1], [], []>} : vector<1x128xf32>, vector<128x128xf32>, vector<1x128xf32> -> vector<1x128xf32>
    %251 = arith.addf %248, %250 : vector<1x128xf32>
    %cst_135 = arith.constant 0.000000e+00 : f32
    %252 = vector.broadcast %cst_135 : f32 to vector<1x128xf32>
    %253 = arith.maximumf %251, %252 : vector<1x128xf32>
    %c0_136 = arith.constant 0 : index
    %c0_137 = arith.constant 0 : index
    %254 = vector.load %arg7[%c0_136, %c0_137] : memref<128x384xf32, #tpu.memory_space<vmem>>, vector<128x384xf32>
    %cst_138 = arith.constant dense<0.000000e+00> : vector<1x384xf32>
    %255 = tpu.matmul %253, %254, %cst_138 {dimension_numbers = #tpu.dot_dimension_numbers<[1], [0], [0], [1], [0, 0, 1, 1], [], []>} : vector<1x128xf32>, vector<128x384xf32>, vector<1x384xf32> -> vector<1x384xf32>
    %c0_139 = arith.constant 0 : index
    %c0_140 = arith.constant 0 : index
    %256 = vector.load %arg8[%c0_139, %c0_140] : memref<1x384xf32, #tpu.memory_space<vmem>>, vector<1x384xf32>
    %257 = arith.addf %255, %256 : vector<1x384xf32>
    %258 = vector.extract_strided_slice %232 {offsets = [0, 128], sizes = [1, 384], strides = [1, 1]} : vector<1x512xf32> to vector<1x384xf32>
    %259 = vector.extract_strided_slice %257 {offsets = [0, 0], sizes = [1, 128], strides = [1, 1]} : vector<1x384xf32> to vector<1x128xf32>
    %260 = vector.extract_strided_slice %258 {offsets = [0, 0], sizes = [1, 128], strides = [1, 1]} : vector<1x384xf32> to vector<1x128xf32>
    %261 = arith.addf %259, %260 : vector<1x128xf32>
    %262 = arith.negf %261 : vector<1x128xf32>
    %263 = math.exp %262 : vector<1x128xf32>
    %cst_141 = arith.constant 1.000000e+00 : f32
    %264 = vector.broadcast %cst_141 : f32 to vector<1x128xf32>
    %265 = arith.addf %264, %263 : vector<1x128xf32>
    %266 = arith.divf %264, %265 : vector<1x128xf32>
    %267 = vector.extract_strided_slice %257 {offsets = [0, 128], sizes = [1, 128], strides = [1, 1]} : vector<1x384xf32> to vector<1x128xf32>
    %268 = vector.extract_strided_slice %258 {offsets = [0, 128], sizes = [1, 128], strides = [1, 1]} : vector<1x384xf32> to vector<1x128xf32>
    %269 = arith.addf %267, %268 : vector<1x128xf32>
    %270 = arith.negf %269 : vector<1x128xf32>
    %271 = math.exp %270 : vector<1x128xf32>
    %cst_142 = arith.constant 1.000000e+00 : f32
    %272 = vector.broadcast %cst_142 : f32 to vector<1x128xf32>
    %273 = arith.addf %272, %271 : vector<1x128xf32>
    %274 = arith.divf %272, %273 : vector<1x128xf32>
    %275 = vector.extract_strided_slice %257 {offsets = [0, 256], sizes = [1, 128], strides = [1, 1]} : vector<1x384xf32> to vector<1x128xf32>
    %276 = vector.extract_strided_slice %258 {offsets = [0, 256], sizes = [1, 128], strides = [1, 1]} : vector<1x384xf32> to vector<1x128xf32>
    %277 = arith.mulf %266, %276 : vector<1x128xf32>
    %278 = arith.addf %275, %277 : vector<1x128xf32>
    %279 = math.tanh %278 : vector<1x128xf32>
    %cst_143 = arith.constant 1.000000e+00 : f32
    %280 = vector.broadcast %cst_143 : f32 to vector<1x128xf32>
    %281 = arith.subf %280, %274 : vector<1x128xf32>
    %282 = arith.mulf %281, %279 : vector<1x128xf32>
    %283 = arith.mulf %274, %227 : vector<1x128xf32>
    %284 = arith.addf %282, %283 : vector<1x128xf32>
    %c4_144 = arith.constant 4 : index
    %c0_145 = arith.constant 0 : index
    %285 = vector.load %arg12[%c4_144, %c0_145] : memref<6x128xf32, #tpu.memory_space<vmem>>, vector<1x128xf32>
    tpu.vector_store %arg12[%c4_144, %c0_145], %284 {strides = array<i32>} : memref<6x128xf32, #tpu.memory_space<vmem>>, vector<1x128xf32>,
    %c0_146 = arith.constant 0 : index
    %c0_147 = arith.constant 0 : index
    %286 = vector.load %arg4[%c0_146, %c0_147] : memref<128x512xf32, #tpu.memory_space<vmem>>, vector<128x512xf32>
    %cst_148 = arith.constant dense<0.000000e+00> : vector<1x512xf32>
    %287 = tpu.matmul %284, %286, %cst_148 {dimension_numbers = #tpu.dot_dimension_numbers<[1], [0], [0], [1], [0, 0, 1, 1], [], []>} : vector<1x128xf32>, vector<128x512xf32>, vector<1x512xf32> -> vector<1x512xf32>
    %c0_149 = arith.constant 0 : index
    %c0_150 = arith.constant 0 : index
    %288 = vector.load %arg5[%c0_149, %c0_150] : memref<1x512xf32, #tpu.memory_space<vmem>>, vector<1x512xf32>
    %289 = arith.addf %287, %288 : vector<1x512xf32>
    %c5 = arith.constant 5 : index
    %c0_151 = arith.constant 0 : index
    %290 = vector.load %arg0[%c5, %c0_151] : memref<6x128xf32, #tpu.memory_space<vmem>>, vector<1x128xf32>
    %291 = vector.extract_strided_slice %289 {offsets = [0, 0], sizes = [1, 128], strides = [1, 1]} : vector<1x512xf32> to vector<1x128xf32>
    %292 = arith.addf %290, %291 : vector<1x128xf32>
    %cst_152 = arith.constant dense<0xFF800000> : vector<1xf32>
    %293 = vector.multi_reduction <maximumf>, %292, %cst_152 [1] : vector<1x128xf32> to vector<1xf32>
    %294 = vector.shape_cast %293 : vector<1xf32> to vector<1x1xf32>
    %295 = vector.broadcast %294 : vector<1x1xf32> to vector<1x128xf32>
    %296 = arith.subf %292, %295 : vector<1x128xf32>
    %297 = math.exp %296 : vector<1x128xf32>
    %cst_153 = arith.constant dense<0.000000e+00> : vector<1xf32>
    %298 = vector.multi_reduction <add>, %297, %cst_153 [1] : vector<1x128xf32> to vector<1xf32>
    %299 = vector.shape_cast %298 : vector<1xf32> to vector<1x1xf32>
    %300 = vector.broadcast %299 : vector<1x1xf32> to vector<1x128xf32>
    %301 = arith.divf %297, %300 : vector<1x128xf32>
    %c5_154 = arith.constant 5 : index
    %c0_155 = arith.constant 0 : index
    %302 = vector.load %arg13[%c5_154, %c0_155] : memref<6x128xf32, #tpu.memory_space<vmem>>, vector<1x128xf32>
    tpu.vector_store %arg13[%c5_154, %c0_155], %301 {strides = array<i32>} : memref<6x128xf32, #tpu.memory_space<vmem>>, vector<1x128xf32>,
    %c0_156 = arith.constant 0 : index
    %c0_157 = arith.constant 0 : index
    %303 = vector.load %arg3[%c0_156, %c0_157] : memref<128x128xf32, #tpu.memory_space<vmem>>, vector<128x128xf32>
    %cst_158 = arith.constant dense<0.000000e+00> : vector<1x128xf32>
    %304 = tpu.matmul %301, %303, %cst_158 {dimension_numbers = #tpu.dot_dimension_numbers<[1], [0], [0], [1], [0, 0, 1, 1], [], []>} : vector<1x128xf32>, vector<128x128xf32>, vector<1x128xf32> -> vector<1x128xf32>
    %c5_159 = arith.constant 5 : index
    %c0_160 = arith.constant 0 : index
    %305 = vector.load %arg1[%c5_159, %c0_160] : memref<6x128xf32, #tpu.memory_space<vmem>>, vector<1x128xf32>
    %c0_161 = arith.constant 0 : index
    %c0_162 = arith.constant 0 : index
    %306 = vector.load %arg6[%c0_161, %c0_162] : memref<128x128xf32, #tpu.memory_space<vmem>>, vector<128x128xf32>
    %cst_163 = arith.constant dense<0.000000e+00> : vector<1x128xf32>
    %307 = tpu.matmul %304, %306, %cst_163 {dimension_numbers = #tpu.dot_dimension_numbers<[1], [0], [0], [1], [0, 0, 1, 1], [], []>} : vector<1x128xf32>, vector<128x128xf32>, vector<1x128xf32> -> vector<1x128xf32>
    %308 = arith.addf %305, %307 : vector<1x128xf32>
    %cst_164 = arith.constant 0.000000e+00 : f32
    %309 = vector.broadcast %cst_164 : f32 to vector<1x128xf32>
    %310 = arith.maximumf %308, %309 : vector<1x128xf32>
    %c0_165 = arith.constant 0 : index
    %c0_166 = arith.constant 0 : index
    %311 = vector.load %arg7[%c0_165, %c0_166] : memref<128x384xf32, #tpu.memory_space<vmem>>, vector<128x384xf32>
    %cst_167 = arith.constant dense<0.000000e+00> : vector<1x384xf32>
    %312 = tpu.matmul %310, %311, %cst_167 {dimension_numbers = #tpu.dot_dimension_numbers<[1], [0], [0], [1], [0, 0, 1, 1], [], []>} : vector<1x128xf32>, vector<128x384xf32>, vector<1x384xf32> -> vector<1x384xf32>
    %c0_168 = arith.constant 0 : index
    %c0_169 = arith.constant 0 : index
    %313 = vector.load %arg8[%c0_168, %c0_169] : memref<1x384xf32, #tpu.memory_space<vmem>>, vector<1x384xf32>
    %314 = arith.addf %312, %313 : vector<1x384xf32>
    %315 = vector.extract_strided_slice %289 {offsets = [0, 128], sizes = [1, 384], strides = [1, 1]} : vector<1x512xf32> to vector<1x384xf32>
    %316 = vector.extract_strided_slice %314 {offsets = [0, 0], sizes = [1, 128], strides = [1, 1]} : vector<1x384xf32> to vector<1x128xf32>
    %317 = vector.extract_strided_slice %315 {offsets = [0, 0], sizes = [1, 128], strides = [1, 1]} : vector<1x384xf32> to vector<1x128xf32>
    %318 = arith.addf %316, %317 : vector<1x128xf32>
    %319 = arith.negf %318 : vector<1x128xf32>
    %320 = math.exp %319 : vector<1x128xf32>
    %cst_170 = arith.constant 1.000000e+00 : f32
    %321 = vector.broadcast %cst_170 : f32 to vector<1x128xf32>
    %322 = arith.addf %321, %320 : vector<1x128xf32>
    %323 = arith.divf %321, %322 : vector<1x128xf32>
    %324 = vector.extract_strided_slice %314 {offsets = [0, 128], sizes = [1, 128], strides = [1, 1]} : vector<1x384xf32> to vector<1x128xf32>
    %325 = vector.extract_strided_slice %315 {offsets = [0, 128], sizes = [1, 128], strides = [1, 1]} : vector<1x384xf32> to vector<1x128xf32>
    %326 = arith.addf %324, %325 : vector<1x128xf32>
    %327 = arith.negf %326 : vector<1x128xf32>
    %328 = math.exp %327 : vector<1x128xf32>
    %cst_171 = arith.constant 1.000000e+00 : f32
    %329 = vector.broadcast %cst_171 : f32 to vector<1x128xf32>
    %330 = arith.addf %329, %328 : vector<1x128xf32>
    %331 = arith.divf %329, %330 : vector<1x128xf32>
    %332 = vector.extract_strided_slice %314 {offsets = [0, 256], sizes = [1, 128], strides = [1, 1]} : vector<1x384xf32> to vector<1x128xf32>
    %333 = vector.extract_strided_slice %315 {offsets = [0, 256], sizes = [1, 128], strides = [1, 1]} : vector<1x384xf32> to vector<1x128xf32>
    %334 = arith.mulf %323, %333 : vector<1x128xf32>
    %335 = arith.addf %332, %334 : vector<1x128xf32>
    %336 = math.tanh %335 : vector<1x128xf32>
    %cst_172 = arith.constant 1.000000e+00 : f32
    %337 = vector.broadcast %cst_172 : f32 to vector<1x128xf32>
    %338 = arith.subf %337, %331 : vector<1x128xf32>
    %339 = arith.mulf %338, %336 : vector<1x128xf32>
    %340 = arith.mulf %331, %284 : vector<1x128xf32>
    %341 = arith.addf %339, %340 : vector<1x128xf32>
    %c5_173 = arith.constant 5 : index
    %c0_174 = arith.constant 0 : index
    %342 = vector.load %arg12[%c5_173, %c0_174] : memref<6x128xf32, #tpu.memory_space<vmem>>, vector<1x128xf32>
    tpu.vector_store %arg12[%c5_173, %c0_174], %341 {strides = array<i32>} : memref<6x128xf32, #tpu.memory_space<vmem>>, vector<1x128xf32>,
    %c0_175 = arith.constant 0 : index
    %c0_176 = arith.constant 0 : index
    %343 = vector.load %arg12[%c0_175, %c0_176] : memref<6x128xf32, #tpu.memory_space<vmem>>, vector<6x128xf32>
    %c0_177 = arith.constant 0 : index
    %c0_178 = arith.constant 0 : index
    %344 = vector.load %arg9[%c0_177, %c0_178] : memref<128x256xf32, #tpu.memory_space<vmem>>, vector<128x256xf32>
    %cst_179 = arith.constant dense<0.000000e+00> : vector<6x256xf32>
    %345 = tpu.matmul %343, %344, %cst_179 {dimension_numbers = #tpu.dot_dimension_numbers<[1], [0], [0], [1], [0, 0, 1, 1], [], []>} : vector<6x128xf32>, vector<128x256xf32>, vector<6x256xf32> -> vector<6x256xf32>
    %c0_180 = arith.constant 0 : index
    %c0_181 = arith.constant 0 : index
    %346 = vector.load %arg10[%c0_180, %c0_181] : memref<1x256xf32, #tpu.memory_space<vmem>>, vector<1x256xf32>
    %347 = vector.broadcast %346 : vector<1x256xf32> to vector<6x256xf32>
    %348 = arith.addf %345, %347 : vector<6x256xf32>
    %cst_182 = arith.constant dense<0xFF800000> : vector<6xf32>
    %349 = vector.multi_reduction <maximumf>, %348, %cst_182 [1] : vector<6x256xf32> to vector<6xf32>
    %350 = vector.shape_cast %349 : vector<6xf32> to vector<6x1xf32>
    %351 = vector.broadcast %350 : vector<6x1xf32> to vector<6x256xf32>
    %352 = arith.subf %348, %351 : vector<6x256xf32>
    %353 = math.exp %352 : vector<6x256xf32>
    %cst_183 = arith.constant dense<0.000000e+00> : vector<6xf32>
    %354 = vector.multi_reduction <add>, %353, %cst_183 [1] : vector<6x256xf32> to vector<6xf32>
    %355 = vector.shape_cast %354 : vector<6xf32> to vector<6x1xf32>
    %356 = math.log %355 : vector<6x1xf32>
    %357 = vector.broadcast %356 : vector<6x1xf32> to vector<6x256xf32>
    %358 = arith.subf %352, %357 : vector<6x256xf32>
    %c0_184 = arith.constant 0 : index
    %c0_185 = arith.constant 0 : index
    %359 = vector.load %arg11[%c0_184, %c0_185] : memref<6x256xf32, #tpu.memory_space<vmem>>, vector<6x256xf32>
    tpu.vector_store %arg11[%c0_184, %c0_185], %358 {strides = array<i32>} : memref<6x256xf32, #tpu.memory_space<vmem>>, vector<6x256xf32>,
    return
  }
}

</mosaic_0001>

<bundles_post_ra>
// kernel: attn_decoder_decode.1
= control target key start
LH: loop header
LB: loop body
LE: loop exit
PB: predicated region body
PF: predicated region fallthrough
CT: control target
= control target key end

     0   :  { %19 = vsyncpa [#allocation3], 0  ;;  %s8592_s0 = inlined_call_operand.vmem [shape: f32[6,128], index: 0, kind: input, shape index: {}]   ;;  %s8593_s1 = inlined_call_operand.vmem [shape: f32[6,128], index: 1, kind: input, shape index: {}]   ;;  %s8594_s2 = inlined_call_operand.vmem [shape: f32[1,128], index: 2, kind: input, shape index: {}]   ;;  %s8595_s3 = inlined_call_operand.vmem [shape: f32[128,128], index: 3, kind: input, shape index: {}]   ;;  %s8596_s4 = inlined_call_operand.vmem [shape: f32[128,512], index: 4, kind: input, shape index: {}]   ;;  %s8597_s5 = inlined_call_operand.vmem [shape: f32[1,512], index: 5, kind: input, shape index: {}]   ;;  %s8598_s6 = inlined_call_operand.hbm [shape: f32[128,128], index: 6, kind: input, shape index: {}]   ;;  %s8599_s7 = inlined_call_operand.hbm [shape: f32[128,384], index: 7, kind: input, shape index: {}]   ;;  %s8600_s8 = inlined_call_operand.vmem [shape: f32[1,384], index: 8, kind: input, shape index: {}]   ;;  %s8601_s9 = inlined_call_operand.hbm [shape: f32[128,256], index: 9, kind: input, shape index: {}]   ;;  %s8602_s10 = inlined_call_operand.vmem [shape: f32[1,256], index: 10, kind: input, shape index: {}]   ;;  %s8603_s11 = inlined_call_operand.hbm [shape: f32[6,256], index: 11, kind: output, shape index: {0}]   ;;  %s8604_s12 = inlined_call_operand.hbm [shape: f32[6,128], index: 12, kind: output, shape index: {1}]   ;;  %s8605_s13 = inlined_call_operand.hbm [shape: f32[6,128], index: 13, kind: output, shape index: {2}]  }
   0x1   :  { %20 = vsyncpa [#allocation6], 0 }
   0x2   :  { %21 = vsyncpa [#allocation4], 0 }
   0x3   :  { %22 = vsyncpa [#allocation10], 0  ;;  %s6371_s25 = smov [#allocation5]   ;;  %s6231_s29 = scalar_lea.hbm %s8599_s7, 6144 }
   0x4   :  { %s52_s26 = sshll.u32 %s6371_s25, 4  ;;  %p6232_p0 = scmp.ne.s32.totalorder %s8599_s7, %s6231_s29  ;;  %s53_s26 = int_to_ptr.vmem [resolvable:$true] %s52_s26 }
   0x5   :  { %p6235_p1 = scmp.lt.u32.totalorder %s6231_s29, %s8599_s7 }
   0x7   :  { %p6237_p2 = pnand %p6235_p1, %p6232_p0 }
   0x9   :  { %6240 = shalt.err (!%p6237_p2)
}
   0xa   :  { %s6241_s17 = scalar_lea.vmem %s53_s26, 6144  ;;  %p6246_p4 = scmp.lt.s32.totalorder %s53_s26, %s53_s26 }
   0xb   :  { %p6242_p3 = scmp.ne.s32.totalorder %s53_s26, %s6241_s17  ;;  %p6247_p5 = scmp.lt.s32.totalorder %s6241_s17, %s6241_s17 }
   0xd   :  { %p6248_p6 = por %p6247_p5, %p6246_p4 }
   0xf   :  { %p6249_p7 = pnand %p6248_p6, %p6242_p3 }
  0x11   :  { %6252 = shalt.err (!%p6249_p7)
}
  0x12   :  { %s6372_s18 = smov 384   ;;  %s6373_s19 = smov 24  }
  0x13   :  { %58 = dma.hbm_to_vmem [thread:$0]  %s8599_s7, 6144, %s53_s26, [#allocation6], %s6372_s18, %s6372_s18, %s6373_s19  }
  0x14   :  { %s6374_s22 = smov [#allocation2]   ;;  %s6253_s27 = scalar_lea.hbm %s8598_s6, 2048 }
  0x15   :  { %s40_s23 = sshll.u32 %s6374_s22, 4  ;;  %p6254_p8 = scmp.ne.s32.totalorder %s8598_s6, %s6253_s27  ;;  %s41_s23 = int_to_ptr.vmem [resolvable:$true] %s40_s23 }
  0x16   :  { %p6257_p9 = scmp.lt.u32.totalorder %s6253_s27, %s8598_s6 }
  0x18   :  { %p6259_p10 = pnand %p6257_p9, %p6254_p8 }
  0x1a   :  { %6262 = shalt.err (!%p6259_p10)
}
  0x1b   :  { %s6263_s15 = scalar_lea.vmem %s41_s23, 2048  ;;  %p6268_p12 = scmp.lt.s32.totalorder %s41_s23, %s41_s23 }
  0x1c   :  { %p6264_p11 = scmp.ne.s32.totalorder %s41_s23, %s6263_s15  ;;  %p6269_p13 = scmp.lt.s32.totalorder %s6263_s15, %s6263_s15 }
  0x1e   :  { %p6270_p0 = por %p6269_p13, %p6268_p12 }
  0x20   :  { %p6271_p1 = pnand %p6270_p0, %p6264_p11 }
  0x22   :  { %6274 = shalt.err (!%p6271_p1)
}
  0x23   :  { %s6375_s7 = smov 128   ;;  %s6376_s26 = smov 8  }
  0x24   :  { %46 = dma.hbm_to_vmem [thread:$0]  %s8598_s6, 2048, %s41_s23, [#allocation3], %s6375_s7, %s6375_s7, %s6376_s26  }
  0x25   :  { %s6377_s18 = smov [#allocation7]   ;;  %s6275_s22 = scalar_lea.hbm %s8601_s9, 4096 }
  0x26   :  { %s66_s19 = sshll.u32 %s6377_s18, 4  ;;  %p6276_p2 = scmp.ne.s32.totalorder %s8601_s9, %s6275_s22  ;;  %s67_s19 = int_to_ptr.vmem [resolvable:$true] %s66_s19 }
  0x27   :  { %p6279_p3 = scmp.lt.u32.totalorder %s6275_s22, %s8601_s9 }
  0x29   :  { %p6281_p4 = pnand %p6279_p3, %p6276_p2 }
  0x2b   :  { %6284 = shalt.err (!%p6281_p4)
}
  0x2c   :  { %s6285_s29 = scalar_lea.vmem %s67_s19, 4096  ;;  %p6290_p6 = scmp.lt.s32.totalorder %s67_s19, %s67_s19 }
  0x2d   :  { %p6286_p5 = scmp.ne.s32.totalorder %s67_s19, %s6285_s29  ;;  %p6291_p7 = scmp.lt.s32.totalorder %s6285_s29, %s6285_s29 }
  0x2f   :  { %p6292_p8 = por %p6291_p7, %p6290_p6 }
  0x31   :  { %p6293_p9 = pnand %p6292_p8, %p6286_p5 }
  0x33   :  { %6296 = shalt.err (!%p6293_p9)
}
  0x34   :  { %s6378_s6 = smov 256   ;;  %s6379_s23 = smov 16  }
  0x35   :  { %72 = dma.hbm_to_vmem [thread:$0]  %s8601_s9, 4096, %s67_s19, [#allocation6], %s6378_s6, %s6378_s6, %s6379_s23  }
  0x36   :  { %6363 = dma.done.wait [#allocation3], 2048  }
  0x37   :  { %6364 = vsyncadd [#allocation3], 4294965248 }
  0x38   :  { %6365 = dma.done.wait [#allocation6], 10240  }
  0x39   :  { %6366 = vsyncadd [#allocation6], 4294957056  ;;  %v8611_v0 = vmov 0.0   ;;  %v86_v1 = vld [vmem:[%s8596_s4 + $0x8] sm:$0xff]  ;;  %v85_v3 = vld [vmem:[%s8596_s4] sm:$0xff]  ;;  %v151_v50 = vlaneseq  ;;  %vm315_vm0 = vcmask 1040384  }
  0x3a   :  { %235 = vmatprep.mubr.f32.mxu0 %v8611_v0  ;;  %306 = vmatprep.mubr.f32.mxu1 %v8611_v0  ;;  %v90_v2 = vld [vmem:[%s8596_s4 + $0x28] sm:$0xff]  ;;  %v89_v5 = vld [vmem:[%s8596_s4 + $0x20] sm:$0xff]  ;;  %v330_v63 = vld [vmem:[%s8595_s3 + $0x10] sm:$0xff]  ;;  %vm6382_vm1 = vmmov 0   ;;  %vm4072_vm2 = vcmask 1045504  }
  0x3b   :  { %v6503_v4 = vpack.c.bf16 %v90_v2, %v86_v1  ;;  %v94_v6 = vld [vmem:[%s8596_s4 + $0x48] sm:$0xff]  ;;  %v6514_v8 = vpack.c.bf16 %v89_v5, %v85_v3  ;;  %v93_v10 = vld [vmem:[%s8596_s4 + $0x40] sm:$0xff]  ;;  %v6644_v51 = vshrl.u32 %v151_v50, 7  ;;  %v8609_v1 = vmov 0.0|0.0   ;;  %v331_v3 = vld [vmem:[%s8595_s3 + $0x18] sm:$0xff] }
  0x3c   :  { %v98_v7 = vld [vmem:[%s8596_s4 + $0x68] sm:$0xff]  ;;  %v97_v11 = vld [vmem:[%s8596_s4 + $0x60] sm:$0xff]  ;;  %v6678_v5 = vpack.c.bf16 %v331_v3, %v330_v63  ;;  %v96_v50 = vld [vmem:[%s8596_s4 + $0x58] sm:$0xff] }
  0x3d   :  { %v6516_v9 = vpack.c.bf16 %v98_v7, %v94_v6  ;;  %v102_v12 = vld [vmem:[%s8596_s4 + $0x88] sm:$0xff]  ;;  %5087 = vmatprep.subr.bf16.mxu0 %v6503_v4  ;;  %v6532_v14 = vpack.c.bf16 %v97_v11, %v93_v10  ;;  %v101_v16 = vld [vmem:[%s8596_s4 + $0x80] sm:$0xff]  ;;  %v6647_v52 = vsub.s32 0, %v6644_v51  ;;  %v334_v11 = vld [vmem:[%s8595_s3 + $0x30] sm:$0xff] }
  0x3e   :  { %v106_v13 = vld [vmem:[%s8596_s4 + $0xa8] sm:$0xff]  ;;  %5089 = vmatpush1.bf16.msra.mxu0 %v6514_v8  ;;  %v105_v17 = vld [vmem:[%s8596_s4 + $0xa0] sm:$0xff]  ;;  %v103_v3 = vld [vmem:[%s8596_s4 + $0x90] sm:$0xff] }
  0x3f   :  { %5091 = vmatprep.subr.bf16.mxu0 %v6516_v9  ;;  %v6535_v15 = vpack.c.bf16 %v106_v13, %v102_v12  ;;  %v110_v18 = vld [vmem:[%s8596_s4 + $0xc8] sm:$0xff]  ;;  %v6550_v20 = vpack.c.bf16 %v105_v17, %v101_v16  ;;  %v109_v22 = vld [vmem:[%s8596_s4 + $0xc0] sm:$0xff]  ;;  %v335_v12 = vld [vmem:[%s8595_s3 + $0x38] sm:$0xff] }
  0x40   :  { %v114_v19 = vld [vmem:[%s8596_s4 + $0xe8] sm:$0xff]  ;;  %v113_v23 = vld [vmem:[%s8596_s4 + $0xe0] sm:$0xff]  ;;  %v6698_v13 = vpack.c.bf16 %v335_v12, %v334_v11  ;;  %v116_v11 = vld [vmem:[%s8596_s4 + $0xf8] sm:$0xff] }
  0x41   :  { %v6553_v21 = vpack.c.bf16 %v114_v19, %v110_v18  ;;  %v118_v24 = vld [vmem:[%s8596_s4 + $0x108] sm:$0xff]  ;;  %v6568_v26 = vpack.c.bf16 %v113_v23, %v109_v22  ;;  %v117_v28 = vld [vmem:[%s8596_s4 + $0x100] sm:$0xff] }
  0x42   :  { %5093 = vmatpush1.bf16.msra.mxu0 %v6532_v14  ;;  %v122_v25 = vld [vmem:[%s8596_s4 + $0x128] sm:$0xff]  ;;  %v121_v29 = vld [vmem:[%s8596_s4 + $0x120] sm:$0xff] }
  0x43   :  { %5095 = vmatprep.subr.bf16.mxu0 %v6535_v15  ;;  %v6571_v27 = vpack.c.bf16 %v122_v25, %v118_v24  ;;  %v126_v30 = vld [vmem:[%s8596_s4 + $0x148] sm:$0xff]  ;;  %v6586_v32 = vpack.c.bf16 %v121_v29, %v117_v28  ;;  %v125_v34 = vld [vmem:[%s8596_s4 + $0x140] sm:$0xff]  ;;  %v338_v28 = vld [vmem:[%s8595_s3 + $0x50] sm:$0xff] }
  0x44   :  { %v130_v31 = vld [vmem:[%s8596_s4 + $0x168] sm:$0xff]  ;;  %v129_v35 = vld [vmem:[%s8596_s4 + $0x160] sm:$0xff]  ;;  %v339_v29 = vld [vmem:[%s8595_s3 + $0x58] sm:$0xff] }
  0x45   :  { %v6589_v33 = vpack.c.bf16 %v130_v31, %v126_v30  ;;  %v134_v36 = vld [vmem:[%s8596_s4 + $0x188] sm:$0xff]  ;;  %v6604_v38 = vpack.c.bf16 %v129_v35, %v125_v34  ;;  %v133_v40 = vld [vmem:[%s8596_s4 + $0x180] sm:$0xff]  ;;  %v6723_v30 = vpack.c.bf16 %v339_v29, %v338_v28  ;;  %v119_v29 = vld [vmem:[%s8596_s4 + $0x110] sm:$0xff] }
  0x46   :  { %5097 = vmatpush1.bf16.msra.mxu0 %v6550_v20  ;;  %v138_v37 = vld [vmem:[%s8596_s4 + $0x1a8] sm:$0xff]  ;;  %v137_v41 = vld [vmem:[%s8596_s4 + $0x1a0] sm:$0xff] }
  0x47   :  { %5099 = vmatprep.subr.bf16.mxu0 %v6553_v21  ;;  %v6607_v39 = vpack.c.bf16 %v138_v37, %v134_v36  ;;  %v142_v42 = vld [vmem:[%s8596_s4 + $0x1c8] sm:$0xff]  ;;  %v6622_v44 = vpack.c.bf16 %v137_v41, %v133_v40  ;;  %v141_v46 = vld [vmem:[%s8596_s4 + $0x1c0] sm:$0xff]  ;;  %v342_v36 = vld [vmem:[%s8595_s3 + $0x70] sm:$0xff] }
  0x48   :  { %v146_v43 = vld [vmem:[%s8596_s4 + $0x1e8] sm:$0xff]  ;;  %v145_v47 = vld [vmem:[%s8596_s4 + $0x1e0] sm:$0xff]  ;;  %v343_v37 = vld [vmem:[%s8595_s3 + $0x78] sm:$0xff] }
  0x49   :  { %v6625_v45 = vpack.c.bf16 %v146_v43, %v142_v42  ;;  %v6634_v48 = vpack.c.bf16 %v145_v47, %v141_v46  ;;  %v6641_v49 = vld [vmem:[%s8594_s2] sm:$0x1]  ;;  %v329_v62 = vld [vmem:[%s8595_s3 + $0x8] sm:$0xff]  ;;  %v6744_v40 = vpack.c.bf16 %v343_v37, %v342_v36  ;;  %v88_v41 = vld [vmem:[%s8596_s4 + $0x18] sm:$0xff] }
  0x4a   :  { %5101 = vmatpush1.bf16.msra.mxu0 %v6568_v26  ;;  %v6652_v53 = vld [vmem:[%s8597_s5] sm:$0xf]  ;;  %v333_v7 = vld [vmem:[%s8595_s3 + $0x28] sm:$0xff]  ;;  %v92_v42 = vld [vmem:[%s8596_s4 + $0x38] sm:$0xff] }
  0x4b   :  { %5103 = vmatprep.subr.bf16.mxu0 %v6571_v27  ;;  %v154_v54 = vrot.slane %v6652_v53, %v6647_v52  ;;  %v313_v56 = vld [vmem:[%s8592_s0] sm:$0x1]  ;;  %v337_v17 = vld [vmem:[%s8595_s3 + $0x48] sm:$0xff]  ;;  %8687 = vst [vmem:[#allocation17_spill] sm:$0xff] %v6744_v40  ;;  %v87_v43 = vld [vmem:[%s8596_s4 + $0x10] sm:$0xff]  ;;  %v6757_v46 = vpack.c.bf16 %v92_v42, %v88_v41 }
  0x4c   :  { %v328_v61 = vld [vmem:[%s8595_s3] sm:$0xff]  ;;  %v341_v34 = vld [vmem:[%s8595_s3 + $0x68] sm:$0xff]  ;;  %v91_v47 = vld [vmem:[%s8596_s4 + $0x30] sm:$0xff] }
  0x4d   :  { %v6672_v2 = vpack.c.bf16 %v329_v62, %v328_v61  ;;  %v332_v6 = vld [vmem:[%s8595_s3 + $0x20] sm:$0xff]  ;;  %5119 = vmatprep.subr.bf16.mxu1 %v6757_v46  ;;  %v108_v61 = vld [vmem:[%s8596_s4 + $0xb8] sm:$0xff]  ;;  %v127_v42 = vld [vmem:[%s8596_s4 + $0x150] sm:$0xff] }
  0x4e   :  { %5105 = vmatpush1.bf16.msra.mxu0 %v6586_v32  ;;  %v6688_v10 = vpack.c.bf16 %v333_v7, %v332_v6  ;;  %v336_v16 = vld [vmem:[%s8595_s3 + $0x40] sm:$0xff]  ;;  %v107_v6 = vld [vmem:[%s8596_s4 + $0xb0] sm:$0xff]  ;;  %v112_v7 = vld [vmem:[%s8596_s4 + $0xd8] sm:$0xff] }
  0x4f   :  { %5107 = vmatprep.subr.bf16.mxu0 %v6589_v33  ;;  %v6708_v18 = vpack.c.bf16 %v337_v17, %v336_v16  ;;  %v340_v31 = vld [vmem:[%s8595_s3 + $0x60] sm:$0xff]  ;;  %v6804_v12 = vpack.c.bf16 %v107_v6, %v103_v3  ;;  %v6807_v16 = vpack.c.bf16 %v116_v11, %v112_v7  ;;  %v111_v17 = vld [vmem:[%s8596_s4 + $0xd0] sm:$0xff]  ;;  %v132_v36 = vld [vmem:[%s8596_s4 + $0x178] sm:$0xff] }
  0x50   :  { %v6734_v35 = vpack.c.bf16 %v341_v34, %v340_v31  ;;  %v123_v31 = vld [vmem:[%s8596_s4 + $0x130] sm:$0xff]  ;;  %v128_v34 = vld [vmem:[%s8596_s4 + $0x158] sm:$0xff] }
  0x51   :  { %v6840_v37 = vpack.c.bf16 %v123_v31, %v119_v29  ;;  %v6843_v41 = vpack.c.bf16 %v132_v36, %v128_v34  ;;  %v148_v3 = vld [vmem:[%s8596_s4 + $0x1f8] sm:$0xff]  ;;  %v143_v11 = vld [vmem:[%s8596_s4 + $0x1d0] sm:$0xff] }
  0x52   :  { %5109 = vmatpush1.bf16.msra.mxu0 %v6604_v38  ;;  %8686 = vst [vmem:[#allocation16_spill] sm:$0xff] %v6734_v35  ;;  %v417_v31 = vld [vmem:[#allocation2 + $0x10] sm:$0xff]  ;;  %v418_v34 = vld [vmem:[#allocation2 + $0x18] sm:$0xff] }
  0x53   :  { %5111 = vmatprep.subr.bf16.mxu0 %v6607_v39  ;;  %v6897_v36 = vpack.c.bf16 %v418_v34, %v417_v31  ;;  %v427_v31 = vld [vmem:[#allocation2 + $0x60] sm:$0xff]  ;;  %v428_v34 = vld [vmem:[#allocation2 + $0x68] sm:$0xff] }
  0x56   :  { %5113 = vmatpush1.bf16.msra.mxu0 %v6622_v44 }
  0x57   :  { %5115 = vmatprep.subr.bf16.mxu0 %v6625_v45 }
  0x5a   :  { %5117 = vmatpush1.bf16.msra.mxu0 %v6634_v48 }
  0x5b   :  { %5150 = vmatprep.subr.bf16.mxu0 %v8609_v1 }
  0x5d   :  { %236 = vmatmul.mubr.f32.vlgmr.msra.gmra.mrb[0].mxu0 %v6641_v49 }
  0x5e   :  { %5152 = vmatpush3.bf16.msra.mxu0 %v6672_v2  ;;  %4488 = vmatprep.mubr.msk.f32.mxu0 %vm6382_vm1, %v8611_v0 }
  0x5f   :  { %5153 = vmatprep.subr.bf16.mxu0 %v8609_v1 }
  0x62   :  { %5155 = vmatpush3.bf16.msra.mxu0 %v6678_v5 }
  0x63   :  { %5156 = vmatprep.subr.bf16.mxu0 %v8609_v1 }
  0x66   :  { %5158 = vmatpush3.bf16.msra.mxu0 %v6688_v10 }
  0x67   :  { %5159 = vmatprep.subr.bf16.mxu0 %v8609_v1 }
  0x6a   :  { %5161 = vmatpush3.bf16.msra.mxu0 %v6698_v13 }
  0x6b   :  { %5162 = vmatprep.subr.bf16.mxu0 %v8609_v1 }
  0x6e   :  { %5164 = vmatpush3.bf16.msra.mxu0 %v6708_v18 }
  0x6f   :  { %5165 = vmatprep.subr.bf16.mxu0 %v8609_v1 }
  0x72   :  { %5167 = vmatpush3.bf16.msra.mxu0 %v6723_v30 }
  0x73   :  { %5168 = vmatprep.subr.bf16.mxu0 %v8609_v1 }
  0x76   :  { %5170 = vmatpush3.bf16.msra.mxu0 %v6734_v35 }
  0x77   :  { %5171 = vmatprep.subr.bf16.mxu0 %v8609_v1 }
  0x7a   :  { %5173 = vmatpush3.bf16.msra.mxu0 %v6744_v40 }
 0x130   :  { %v237_v55 = vpop.f32.mrb[0].mxu0 }
 0x131   :  { %v238_v57 = vadd.f32 %v237_v55, %v154_v54  ;;  %v6659_v58 = vpop.f32.mrb[1].mxu0  ;;  %v100_v54 = vld [vmem:[%s8596_s4 + $0x78] sm:$0xff]  ;;  %v6768_v55 = vpack.c.bf16 %v91_v47, %v87_v43  ;;  %v131_v43 = vld [vmem:[%s8596_s4 + $0x170] sm:$0xff] }
 0x132   :  { %v136_v47 = vld [vmem:[%s8596_s4 + $0x198] sm:$0xff] }
 0x133   :  { %v314_v59 = vadd.f32 %v313_v56, %v238_v57  ;;  %v6770_v56 = vpack.c.bf16 %v100_v54, %v96_v50  ;;  %v95_v57 = vld [vmem:[%s8596_s4 + $0x50] sm:$0xff]  ;;  %5121 = vmatpush1.bf16.msra.mxu1 %v6768_v55  ;;  %v140_v50 = vld [vmem:[%s8596_s4 + $0x1b8] sm:$0xff]  ;;  %v6858_v54 = vpack.c.bf16 %v131_v43, %v127_v42  ;;  %v419_v42 = vld [vmem:[#allocation2 + $0x20] sm:$0xff] }
 0x134   :  { %v420_v43 = vld [vmem:[#allocation2 + $0x28] sm:$0xff] }
 0x135   :  { %v316_v60 = vsel %vm315_vm0, %v314_v59, -inf  ;;  %5123 = vmatprep.subr.bf16.mxu1 %v6770_v56 }
 0x136   :  { %317 = vmax.xlane.f32.xlu0 %v316_v60  ;;  %v104_v60 = vld [vmem:[%s8596_s4 + $0x98] sm:$0xff] }
 0x137   :  { %v6789_v63 = vpack.c.bf16 %v108_v61, %v104_v60  ;;  %v139_v60 = vld [vmem:[%s8596_s4 + $0x1b0] sm:$0xff]  ;;  %v144_v61 = vld [vmem:[%s8596_s4 + $0x1d8] sm:$0xff] }
 0x138   :  { %v6879_v7 = vpack.c.bf16 %v148_v3, %v144_v61  ;;  %v423_v61 = vld [vmem:[#allocation2 + $0x40] sm:$0xff]  ;;  %v424_v3 = vld [vmem:[#allocation2 + $0x48] sm:$0xff] }
 0x1c3   :  { %v318_v19 = vpop.xlane.xlu0 %317 }
 0x1c4   :  { %v319_v22 = vsub.f32 %v314_v59, %v318_v19  ;;  %v99_v59 = vld [vmem:[%s8596_s4 + $0x70] sm:$0xff] }
 0x1c5   :  { %v6786_v62 = vpack.c.bf16 %v99_v59, %v95_v57  ;;  %v115_v19 = vld [vmem:[%s8596_s4 + $0xf0] sm:$0xff]  ;;  %v6861_v57 = vpack.c.bf16 %v140_v50, %v136_v47  ;;  %v6903_v47 = vpack.c.bf16 %v420_v43, %v419_v42  ;;  %v6919_v42 = vpack.c.bf16 %v428_v34, %v427_v31  ;;  %v507_v31 = vld [vmem:[#allocation5 + $0x20] sm:$0xff] }
 0x1c6   :  { %v320_v23 = vmul.f32 1.442695, %v319_v22  ;;  %v120_v22 = vld [vmem:[%s8596_s4 + $0x118] sm:$0xff]  ;;  %v135_v59 = vld [vmem:[%s8596_s4 + $0x190] sm:$0xff]  ;;  %v503_v34 = vld [vmem:[#allocation5] sm:$0xff] }
 0x1c7   :  { %5125 = vmatpush1.bf16.msra.mxu1 %v6786_v62  ;;  %v6876_v6 = vpack.c.bf16 %v139_v60, %v135_v59  ;;  %v421_v50 = vld [vmem:[#allocation2 + $0x30] sm:$0xff]  ;;  %v422_v59 = vld [vmem:[#allocation2 + $0x38] sm:$0xff]  ;;  %8689 = vst [vmem:[#allocation19_spill] sm:$0xff] %v6919_v42 }
 0x1c8   :  { %6141 = vpow2.f32 %v320_v23  ;;  %5127 = vmatprep.subr.bf16.mxu1 %v6789_v63  ;;  %v124_v23 = vld [vmem:[%s8596_s4 + $0x138] sm:$0xff]  ;;  %v6907_v60 = vpack.c.bf16 %v422_v59, %v421_v50  ;;  %v429_v43 = vld [vmem:[#allocation2 + $0x70] sm:$0xff] }
 0x1c9   :  { %v6825_v28 = vpack.c.bf16 %v124_v23, %v120_v22  ;;  %v415_v22 = vld [vmem:[#allocation2] sm:$0xff]  ;;  %v416_v23 = vld [vmem:[#allocation2 + $0x8] sm:$0xff]  ;;  %v430_v50 = vld [vmem:[#allocation2 + $0x78] sm:$0xff] }
 0x1ca   :  { %v6892_v29 = vpack.c.bf16 %v416_v23, %v415_v22  ;;  %v426_v22 = vld [vmem:[#allocation2 + $0x58] sm:$0xff]  ;;  %v6923_v59 = vpack.c.bf16 %v430_v50, %v429_v43 }
 0x1cb   :  { %5129 = vmatpush1.bf16.msra.mxu1 %v6804_v12  ;;  %v506_v50 = vld [vmem:[#allocation5 + $0x18] sm:$0xff] }
 0x1cc   :  { %5131 = vmatprep.subr.bf16.mxu1 %v6807_v16  ;;  %8690 = vst [vmem:[#allocation20_spill] sm:$0xff] %v6923_v59  ;;  %v6932_v40 = vpack.c.bf16 %v506_v50, %v503_v34  ;;  %v515_v34 = vld [vmem:[#allocation5 + $0x60] sm:$0xff]  ;;  %v518_v50 = vld [vmem:[#allocation5 + $0x78] sm:$0xff] }
 0x1ce   :  { %8692 = vst [vmem:[#allocation22_spill] sm:$0xff] %v6932_v40 }
 0x1d2   :  { %v6713_v24 = vpop.eup %6141 }
 0x1d3   :  { %v322_v25 = vsel %vm315_vm0, %v6713_v24, 0.0 }
 0x1d4   :  { %323 = vadd.xlane.f32.xlu0 %v322_v25  ;;  %v6822_v25 = vpack.c.bf16 %v115_v19, %v111_v17  ;;  %v147_v17 = vld [vmem:[%s8596_s4 + $0x1f0] sm:$0xff] }
 0x1d5   :  { %v6888_v19 = vpack.c.bf16 %v147_v17, %v143_v11  ;;  %v6911_v11 = vpack.c.bf16 %v424_v3, %v423_v61  ;;  %v425_v17 = vld [vmem:[#allocation2 + $0x50] sm:$0xff] }
 0x1d6   :  { %5133 = vmatpush1.bf16.msra.mxu1 %v6822_v25  ;;  %v6915_v23 = vpack.c.bf16 %v426_v22, %v425_v17  ;;  %v504_v22 = vld [vmem:[#allocation5 + $0x8] sm:$0xff] }
 0x1d7   :  { %5135 = vmatprep.subr.bf16.mxu1 %v6825_v28  ;;  %v6930_v43 = vpack.c.bf16 %v507_v31, %v504_v22  ;;  %v519_v22 = vld [vmem:[#allocation5 + $0x80] sm:$0xff] }
 0x1d8   :  { %8688 = vst [vmem:[#allocation18_spill] sm:$0xff] %v6915_v23 }
 0x1d9   :  { %8691 = vst [vmem:[#allocation21_spill] sm:$0xff] %v6930_v43  ;;  %5199 = vmatprep.subr.bf16.mxu0 %v6930_v43 }
 0x1da   :  { %5137 = vmatpush1.bf16.msra.mxu1 %v6840_v37 }
 0x1db   :  { %5139 = vmatprep.subr.bf16.mxu1 %v6843_v41 }
 0x1de   :  { %5141 = vmatpush1.bf16.msra.mxu1 %v6858_v54 }
 0x1df   :  { %5143 = vmatprep.subr.bf16.mxu1 %v6861_v57 }
 0x1e2   :  { %5145 = vmatpush1.bf16.msra.mxu1 %v6876_v6 }
 0x1e3   :  { %5147 = vmatprep.subr.bf16.mxu1 %v6879_v7 }
 0x1e6   :  { %5149 = vmatpush1.bf16.msra.mxu1 %v6888_v19 }
 0x1e7   :  { %5174 = vmatprep.subr.bf16.mxu1 %v8609_v1 }
 0x1e9   :  { %307 = vmatmul.mubr.f32.vlgmr.msra.gmra.mrb[0].mxu1 %v6641_v49 }
 0x1ea   :  { %5176 = vmatpush3.bf16.msra.mxu1 %v6892_v29  ;;  %4523 = vmatprep.mubr.msk.f32.mxu1 %vm6382_vm1, %v8611_v0 }
 0x1eb   :  { %5177 = vmatprep.subr.bf16.mxu1 %v8609_v1 }
 0x1ee   :  { %5179 = vmatpush3.bf16.msra.mxu1 %v6897_v36 }
 0x1ef   :  { %5180 = vmatprep.subr.bf16.mxu1 %v8609_v1 }
 0x1f2   :  { %5182 = vmatpush3.bf16.msra.mxu1 %v6903_v47 }
 0x1f3   :  { %5183 = vmatprep.subr.bf16.mxu1 %v8609_v1 }
 0x1f6   :  { %5185 = vmatpush3.bf16.msra.mxu1 %v6907_v60 }
 0x1f7   :  { %5186 = vmatprep.subr.bf16.mxu1 %v8609_v1 }
 0x1fa   :  { %5188 = vmatpush3.bf16.msra.mxu1 %v6911_v11 }
 0x1fb   :  { %5189 = vmatprep.subr.bf16.mxu1 %v8609_v1 }
 0x1fe   :  { %5191 = vmatpush3.bf16.msra.mxu1 %v6915_v23  ;;  %v550_v23 = vld [vmem:[#allocation5 + $0x178] sm:$0xff] }
 0x1ff   :  { %5192 = vmatprep.subr.bf16.mxu1 %v8609_v1 }
 0x202   :  { %5194 = vmatpush3.bf16.msra.mxu1 %v6919_v42  ;;  %v513_v42 = vld [vmem:[#allocation5 + $0x50] sm:$0xff] }
 0x203   :  { %5195 = vmatprep.subr.bf16.mxu1 %v8609_v1 }
 0x206   :  { %5197 = vmatpush3.bf16.msra.mxu1 %v6923_v59  ;;  %v510_v59 = vld [vmem:[#allocation5 + $0x38] sm:$0xff] }
 0x207   :  { %5230 = vmatprep.subr.bf16.mxu1 %v8609_v1  ;;  %v509_v1 = vld [vmem:[#allocation5 + $0x30] sm:$0xff] }
 0x261   :  { %v324_v61 = vpop.xlane.xlu0 %323 }
 0x262   :  { %6143 = vrcp.f32 %v324_v61  ;;  %v6935_v61 = vpack.c.bf16 %v513_v42, %v510_v59  ;;  %v522_v42 = vld [vmem:[#allocation5 + $0x98] sm:$0xff]  ;;  %v525_v59 = vld [vmem:[#allocation5 + $0xb0] sm:$0xff] }
 0x263   :  { %v6947_v43 = vpack.c.bf16 %v525_v59, %v522_v42  ;;  %v534_v42 = vld [vmem:[#allocation5 + $0xf8] sm:$0xff]  ;;  %v537_v59 = vld [vmem:[#allocation5 + $0x110] sm:$0xff] }
 0x264   :  { %8693 = vst [vmem:[#allocation23_spill] sm:$0xff] %v6935_v61 }
 0x265   :  { %8697 = vst [vmem:[#allocation27_spill] sm:$0xff] %v6947_v43 }
 0x26c   :  { %v6144_v3 = vpop.eup %6143 }
 0x26d   :  { %v326_v17 = vmul.f32 %v6144_v3, %v6713_v24  ;;  %v512_v24 = vld [vmem:[#allocation5 + $0x48] sm:$0xff] }
 0x26e   :  { %v6938_v3 = vpack.c.bf16 %v512_v24, %v509_v1  ;;  %v521_v1 = vld [vmem:[#allocation5 + $0x90] sm:$0xff]  ;;  %v524_v24 = vld [vmem:[#allocation5 + $0xa8] sm:$0xff] }
 0x26f   :  { %327 = vst [vmem:[#allocation11] sm:$0x1] %v326_v17  ;;  %4489 = vmatmul.mubr.f32.vlgmr.msra.gmra.mrb[2].mxu0 %v326_v17  ;;  %v516_v17 = vld [vmem:[#allocation5 + $0x68] sm:$0xff] }
 0x270   :  { %632 = vmatprep.mubr.f32.mxu0 %v8611_v0  ;;  %5201 = vmatpush1.bf16.msra.mxu0 %v6932_v40  ;;  %8694 = vst [vmem:[#allocation24_spill] sm:$0xff] %v6938_v3  ;;  %v6941_v31 = vpack.c.bf16 %v519_v22, %v516_v17  ;;  %v6944_v0 = vpack.c.bf16 %v518_v50, %v515_v34  ;;  %v528_v17 = vld [vmem:[#allocation5 + $0xc8] sm:$0xff]  ;;  %v531_v22 = vld [vmem:[#allocation5 + $0xe0] sm:$0xff]  ;;  %v530_v50 = vld [vmem:[#allocation5 + $0xd8] sm:$0xff] }
 0x271   :  { %5203 = vmatprep.subr.bf16.mxu0 %v6935_v61  ;;  %v6950_v61 = vpack.c.bf16 %v524_v24, %v521_v1  ;;  %v6953_v40 = vpack.c.bf16 %v531_v22, %v528_v17  ;;  %v527_v34 = vld [vmem:[#allocation5 + $0xc0] sm:$0xff]  ;;  %v533_v1 = vld [vmem:[#allocation5 + $0xf0] sm:$0xff]  ;;  %v536_v24 = vld [vmem:[#allocation5 + $0x108] sm:$0xff] }
 0x272   :  { %8695 = vst [vmem:[#allocation25_spill] sm:$0xff] %v6941_v31  ;;  %8696 = vst [vmem:[#allocation26_spill] sm:$0xff] %v6944_v0  ;;  %v540_v17 = vld [vmem:[#allocation5 + $0x128] sm:$0xff]  ;;  %v543_v22 = vld [vmem:[#allocation5 + $0x140] sm:$0xff] }
 0x273   :  { %8698 = vst [vmem:[#allocation28_spill] sm:$0xff] %v6950_v61  ;;  %8699 = vst [vmem:[#allocation29_spill] sm:$0xff] %v6953_v40 }
 0x274   :  { %5205 = vmatpush1.bf16.msra.mxu0 %v6938_v3  ;;  %v6959_v3 = vpack.c.bf16 %v537_v59, %v534_v42 }
 0x275   :  { %5207 = vmatprep.subr.bf16.mxu0 %v6941_v31  ;;  %v6956_v31 = vpack.c.bf16 %v530_v50, %v527_v34  ;;  %v539_v34 = vld [vmem:[#allocation5 + $0x120] sm:$0xff]  ;;  %v542_v50 = vld [vmem:[#allocation5 + $0x138] sm:$0xff] }
 0x276   :  { %8701 = vst [vmem:[#allocation31_spill] sm:$0xff] %v6959_v3 }
 0x277   :  { %8700 = vst [vmem:[#allocation30_spill] sm:$0xff] %v6956_v31 }
 0x278   :  { %5209 = vmatpush1.bf16.msra.mxu0 %v6944_v0  ;;  %v6965_v0 = vpack.c.bf16 %v543_v22, %v540_v17  ;;  %v511_v17 = vld [vmem:[#allocation5 + $0x40] sm:$0xff]  ;;  %v514_v22 = vld [vmem:[#allocation5 + $0x58] sm:$0xff] }
 0x279   :  { %5211 = vmatprep.subr.bf16.mxu0 %v6947_v43  ;;  %v6962_v43 = vpack.c.bf16 %v536_v24, %v533_v1  ;;  %v505_v1 = vld [vmem:[#allocation5 + $0x10] sm:$0xff]  ;;  %v508_v24 = vld [vmem:[#allocation5 + $0x28] sm:$0xff] }
 0x27a   :  { %8703 = vst [vmem:[#allocation33_spill] sm:$0xff] %v6965_v0 }
 0x27b   :  { %8702 = vst [vmem:[#allocation32_spill] sm:$0xff] %v6962_v43 }
 0x27c   :  { %5213 = vmatpush1.bf16.msra.mxu0 %v6950_v61 }
 0x27d   :  { %5215 = vmatprep.subr.bf16.mxu0 %v6953_v40  ;;  %v6968_v40 = vpack.c.bf16 %v542_v50, %v539_v34  ;;  %v6979_v34 = vpack.c.bf16 %v514_v22, %v511_v17  ;;  %v8707_v50 = vmov 0.0   ;;  %v529_v17 = vld [vmem:[#allocation5 + $0xd0] sm:$0xff]  ;;  %v532_v22 = vld [vmem:[#allocation5 + $0xe8] sm:$0xff] }
 0x27f   :  { %8704 = vst [vmem:[#allocation34_spill] sm:$0xff] %v6968_v40  ;;  %8706 = vst [vmem:[#allocation36_spill] sm:$0xff] %v6979_v34 }
 0x280   :  { %5217 = vmatpush1.bf16.msra.mxu0 %v6956_v31 }
 0x281   :  { %5219 = vmatprep.subr.bf16.mxu0 %v6959_v3  ;;  %v6976_v3 = vpack.c.bf16 %v508_v24, %v505_v1  ;;  %v523_v24 = vld [vmem:[#allocation5 + $0xa0] sm:$0xff] }
 0x283   :  { %8705 = vst [vmem:[#allocation35_spill] sm:$0xff] %v6976_v3 }
 0x284   :  { %5221 = vmatpush1.bf16.msra.mxu0 %v6962_v43  ;;  %v520_v43 = vld [vmem:[#allocation5 + $0x88] sm:$0xff] }
 0x285   :  { %5223 = vmatprep.subr.bf16.mxu0 %v6965_v0  ;;  %v517_v0 = vld [vmem:[#allocation5 + $0x70] sm:$0xff] }
 0x286   :  { %v6985_v1 = vpack.c.bf16 %v520_v43, %v517_v0  ;;  %v535_v0 = vld [vmem:[#allocation5 + $0x100] sm:$0xff]  ;;  %v538_v43 = vld [vmem:[#allocation5 + $0x118] sm:$0xff] }
 0x288   :  { %5225 = vmatpush1.bf16.msra.mxu0 %v6968_v40  ;;  %v8708_v40 = vmov 0.0|0.0   ;;  %8709 = vst [vmem:[#allocation37_spill] sm:$0xff] %v6985_v1 }
 0x2bc   :  { %v6972_v42 = vpop.f32.mrb[0].mxu1 }
 0x2bd   :  { %v6974_v59 = vpop.f32.mrb[1].mxu1 }
 0x342   :  { %v410_v31 = vpop.f32.mrb[2].mxu0 }
 0x343   :  { %v4490_v61 = vpop.f32.mrb[3].mxu0  ;;  %4524 = vmatmul.mubr.f32.vlgmr.msra.gmra.mrb[2].mxu1 %v410_v31 }
 0x344   :  { %5232 = vmatpush3.bf16.msra.mxu1 %v6976_v3  ;;  %4558 = vmatprep.mubr.msk.f32.mxu1 %vm6382_vm1, %v8707_v50  ;;  %v526_v61 = vld [vmem:[#allocation5 + $0xb8] sm:$0xff]  ;;  %v6993_v3 = vpack.c.bf16 %v532_v22, %v529_v17  ;;  %v549_v22 = vld [vmem:[#allocation5 + $0x170] sm:$0xff] }
 0x345   :  { %5233 = vmatprep.subr.bf16.mxu1 %v8708_v40  ;;  %v6989_v31 = vpack.c.bf16 %v526_v61, %v523_v24  ;;  %v541_v24 = vld [vmem:[#allocation5 + $0x130] sm:$0xff]  ;;  %v544_v61 = vld [vmem:[#allocation5 + $0x148] sm:$0xff]  ;;  %v546_v17 = vld [vmem:[#allocation5 + $0x158] sm:$0xff] }
 0x346   :  { %8711 = vst [vmem:[#allocation39_spill] sm:$0xff] %v6993_v3 }
 0x347   :  { %8710 = vst [vmem:[#allocation38_spill] sm:$0xff] %v6989_v31 }
 0x348   :  { %5235 = vmatpush3.bf16.msra.mxu1 %v6979_v34  ;;  %v6997_v34 = vpack.c.bf16 %v538_v43, %v535_v0  ;;  %v545_v0 = vld [vmem:[#allocation5 + $0x150] sm:$0xff]  ;;  %v548_v43 = vld [vmem:[#allocation5 + $0x168] sm:$0xff] }
 0x349   :  { %5236 = vmatprep.subr.bf16.mxu1 %v8708_v40  ;;  %v7008_v35 = vpack.c.bf16 %v548_v43, %v545_v0 }
 0x34c   :  { %5238 = vmatpush3.bf16.msra.mxu1 %v6985_v1  ;;  %v7001_v1 = vpack.c.bf16 %v544_v61, %v541_v24  ;;  %v414_v61 = vld [vmem:[%s8593_s1] sm:$0x1] }
 0x34d   :  { %5239 = vmatprep.subr.bf16.mxu1 %v8708_v40 }
 0x350   :  { %5241 = vmatpush3.bf16.msra.mxu1 %v6989_v31  ;;  %v7006_v31 = vpack.c.bf16 %v549_v22, %v546_v17 }
 0x351   :  { %5242 = vmatprep.subr.bf16.mxu1 %v8708_v40 }
 0x352   :  { %5227 = vmatprep.subr.bf16.mxu0 %v7006_v31 }
 0x353   :  { %5229 = vmatpush1.bf16.msra.mxu0 %v7008_v35 }
 0x354   :  { %5244 = vmatpush3.bf16.msra.mxu1 %v6993_v3  ;;  %v547_v3 = vld [vmem:[#allocation5 + $0x160] sm:$0xff]  ;;  %5255 = vmatprep.subr.bf16.mxu0 %v6503_v4  ;;  %v7055_v4 = vsub.s32 1, %v6644_v51 }
 0x355   :  { %5245 = vmatprep.subr.bf16.mxu1 %v8708_v40  ;;  %v7011_v24 = vpack.c.bf16 %v550_v23, %v547_v3 }
 0x358   :  { %5247 = vmatpush3.bf16.msra.mxu1 %v6997_v34 }
 0x359   :  { %5248 = vmatprep.subr.bf16.mxu1 %v8708_v40 }
 0x35c   :  { %5250 = vmatpush3.bf16.msra.mxu1 %v7001_v1 }
 0x35d   :  { %5251 = vmatprep.subr.bf16.mxu1 %v8708_v40 }
 0x360   :  { %5253 = vmatpush3.bf16.msra.mxu1 %v7011_v24 }
 0x361   :  { %5287 = vmatprep.subr.bf16.mxu1 %v6757_v46 }
 0x416   :  { %v497_v17 = vpop.f32.mrb[2].mxu1 }
 0x417   :  { %v501_v22 = vadd.f32 %v497_v17, %v414_v61  ;;  %v4525_v0 = vpop.f32.mrb[3].mxu1 }
 0x419   :  { %v502_v43 = vmax.f32 %v501_v22, 0.0 }
 0x41b   :  { %633 = vmatmul.mubr.f32.vlgmr.msra.gmra.mrb[4].mxu0 %v502_v43  ;;  %4559 = vmatmul.mubr.f32.vlgmr.msra.gmra.mrb[4].mxu1 %v502_v43 }
 0x41c   :  { %5257 = vmatpush1.bf16.msra.mxu0 %v6514_v8  ;;  %5289 = vmatpush1.bf16.msra.mxu1 %v6768_v55  ;;  %v7058_v8 = vsub.s32 2, %v6644_v51 }
 0x41d   :  { %5259 = vmatprep.subr.bf16.mxu0 %v6516_v9  ;;  %5291 = vmatprep.subr.bf16.mxu1 %v6770_v56  ;;  %v551_v9 = vld [vmem:[%s8600_s8] sm:$0x7] }
 0x41e   :  { %881 = vmatprep.mubr.f32.mxu0 %v8707_v50  ;;  %952 = vmatprep.mubr.f32.mxu1 %v8707_v50 }
 0x420   :  { %5261 = vmatpush1.bf16.msra.mxu0 %v6532_v14  ;;  %5293 = vmatpush1.bf16.msra.mxu1 %v6786_v62  ;;  %v158_v14 = vrot.slane %v6652_v53, %v7055_v4 }
 0x421   :  { %5263 = vmatprep.subr.bf16.mxu0 %v6535_v15  ;;  %5295 = vmatprep.subr.bf16.mxu1 %v6789_v63  ;;  %v556_v15 = vrot.slane %v551_v9, %v6647_v52 }
 0x424   :  { %5265 = vmatpush1.bf16.msra.mxu0 %v6550_v20  ;;  %5297 = vmatpush1.bf16.msra.mxu1 %v6804_v12  ;;  %v162_v20 = vrot.slane %v6652_v53, %v7058_v8  ;;  %v7072_v12 = vsub.s32 3, %v6644_v51 }
 0x425   :  { %5267 = vmatprep.subr.bf16.mxu0 %v6553_v21  ;;  %5299 = vmatprep.subr.bf16.mxu1 %v6807_v16  ;;  %v560_v21 = vrot.slane %v551_v9, %v7055_v4 }
 0x428   :  { %5269 = vmatpush1.bf16.msra.mxu0 %v6568_v26  ;;  %5301 = vmatpush1.bf16.msra.mxu1 %v6822_v25  ;;  %v564_v25 = vrot.slane %v551_v9, %v7058_v8 }
 0x429   :  { %5271 = vmatprep.subr.bf16.mxu0 %v6571_v27  ;;  %5303 = vmatprep.subr.bf16.mxu1 %v6825_v28 }
 0x42c   :  { %5273 = vmatpush1.bf16.msra.mxu0 %v6586_v32  ;;  %5305 = vmatpush1.bf16.msra.mxu1 %v6840_v37  ;;  %v240_v32 = vadd.f32 %v6659_v58, %v158_v14  ;;  %v166_v58 = vrot.slane %v6652_v53, %v7072_v12  ;;  %v8713_v53 = vld [vmem:[#allocation16_spill] sm:$0xff] }
 0x42d   :  { %5275 = vmatprep.subr.bf16.mxu0 %v6589_v33  ;;  %5307 = vmatprep.subr.bf16.mxu1 %v6843_v41 }
 0x42e   :  { %v311_v37 = vadd.f32 %v6974_v59, %v166_v58  ;;  %v8731_v58 = vld [vmem:[#allocation35_spill] sm:$0xff] }
 0x430   :  { %5277 = vmatpush1.bf16.msra.mxu0 %v6604_v38  ;;  %5309 = vmatpush1.bf16.msra.mxu1 %v6858_v54 }
 0x431   :  { %5279 = vmatprep.subr.bf16.mxu0 %v6607_v39  ;;  %5311 = vmatprep.subr.bf16.mxu1 %v6861_v57 }
 0x434   :  { %5281 = vmatpush1.bf16.msra.mxu0 %v6622_v44  ;;  %5313 = vmatpush1.bf16.msra.mxu1 %v6876_v6  ;;  %v309_v44 = vadd.f32 %v6972_v42, %v162_v20 }
 0x435   :  { %5283 = vmatprep.subr.bf16.mxu0 %v6625_v45  ;;  %5315 = vmatprep.subr.bf16.mxu1 %v6879_v7 }
 0x438   :  { %5285 = vmatpush1.bf16.msra.mxu0 %v6634_v48  ;;  %5317 = vmatpush1.bf16.msra.mxu1 %v6888_v19 }
 0x439   :  { %5318 = vmatprep.subr.bf16.mxu0 %v8708_v40  ;;  %5342 = vmatprep.subr.bf16.mxu1 %v8708_v40 }
 0x4ee   :  { %v634_v26 = vpop.f32.mrb[4].mxu0  ;;  %v705_v27 = vpop.f32.mrb[4].mxu1 }
 0x4ef   :  { %v635_v33 = vadd.f32 %v634_v26, %v556_v15  ;;  %v636_v38 = vpop.f32.mrb[5].mxu0  ;;  %v4560_v39 = vpop.f32.mrb[5].mxu1  ;;  %v706_v54 = vadd.f32 %v705_v27, %v564_v25  ;;  %v8718_v26 = vld [vmem:[#allocation22_spill] sm:$0xff]  ;;  %v8719_v27 = vld [vmem:[#allocation23_spill] sm:$0xff]  ;;  %v8732_v25 = vld [vmem:[#allocation36_spill] sm:$0xff] }
 0x4f0   :  { %v637_v45 = vadd.f32 %v636_v38, %v560_v21  ;;  %v8722_v38 = vld [vmem:[#allocation26_spill] sm:$0xff]  ;;  %v8723_v39 = vld [vmem:[#allocation27_spill] sm:$0xff] }
 0x4f1   :  { %v709_v48 = vadd.f32 %v635_v33, %v240_v32  ;;  %v8720_v32 = vld [vmem:[#allocation24_spill] sm:$0xff]  ;;  %v8721_v33 = vld [vmem:[#allocation25_spill] sm:$0xff] }
 0x4f2   :  { %v716_v46 = vadd.f32 %v637_v45, %v309_v44  ;;  %v8724_v44 = vld [vmem:[#allocation28_spill] sm:$0xff]  ;;  %v8725_v45 = vld [vmem:[#allocation29_spill] sm:$0xff] }
 0x4f3   :  { %v4138_v55 = vmul.f32 -1.442695, %v709_v48  ;;  %v8726_v48 = vld [vmem:[#allocation30_spill] sm:$0xff] }
 0x4f4   :  { %v4139_v56 = vmul.f32 -1.442695, %v716_v46  ;;  %v8727_v46 = vld [vmem:[#allocation31_spill] sm:$0xff] }
 0x4f5   :  { %6145 = vpow2.f32 %v4138_v55  ;;  %v8728_v55 = vld [vmem:[#allocation32_spill] sm:$0xff] }
 0x4f6   :  { %6147 = vpow2.f32 %v4139_v56  ;;  %v8729_v56 = vld [vmem:[#allocation33_spill] sm:$0xff] }
 0x4ff   :  { %v6146_v62 = vpop.eup %6145 }
 0x500   :  { %v713_v63 = vadd.f32 1.0, %v6146_v62  ;;  %v6148_v16 = vpop.eup %6147  ;;  %v8730_v62 = vld [vmem:[#allocation34_spill] sm:$0xff] }
 0x501   :  { %v720_v28 = vadd.f32 1.0, %v6148_v16 }
 0x502   :  { %6149 = vrcp.f32 %v713_v63 }
 0x503   :  { %6151 = vrcp.f32 %v720_v28  ;;  %v8733_v28 = vld [vmem:[#allocation37_spill] sm:$0xff] }
 0x50c   :  { %v6150_v41 = vpop.eup %6149 }
 0x50d   :  { %v723_v57 = vmul.f32 %v6150_v41, %v311_v37  ;;  %v6152_v7 = vpop.eup %6151  ;;  %v1059_v37 = vld [vmem:[%s8593_s1 + $0x1] sm:$0x1] }
 0x50e   :  { %v726_v19 = vsub.f32 1.0, %v6152_v7  ;;  %v728_v3 = vmul.f32 %v6152_v7, %v6641_v49  ;;  %v8712_v49 = vld [vmem:[#allocation18_spill] sm:$0xff] }
 0x50f   :  { %v724_v6 = vadd.f32 %v723_v57, %v706_v54 }
 0x511   :  { %6153 = vtanh.f32 %v724_v6 }
 0x51b   :  { %v6154_v23 = vpop.eup %6153 }
 0x51c   :  { %v727_v51 = vmul.f32 %v6154_v23, %v726_v19  ;;  %v1383_v19 = vld [vmem:[%s8596_s4 + $0x38] sm:$0xff]  ;;  %v1376_v23 = vld [vmem:[%s8596_s4] sm:$0xff] }
 0x51e   :  { %v7079_v42 = vadd.f32 %v728_v3, %v727_v51  ;;  %v1380_v51 = vld [vmem:[%s8596_s4 + $0x20] sm:$0xff] }
 0x520   :  { %730 = vst [vmem:[#allocation9] sm:$0x1] %v7079_v42  ;;  %882 = vmatmul.mubr.f32.vlgmr.msra.gmra.mrb[6].mxu0 %v7079_v42  ;;  %953 = vmatmul.mubr.f32.vlgmr.msra.gmra.mrb[6].mxu1 %v7079_v42 }
 0x521   :  { %5320 = vmatpush3.bf16.msra.mxu0 %v6672_v2  ;;  %4593 = vmatprep.mubr.msk.f32.mxu0 %vm6382_vm1, %v8707_v50  ;;  %v8714_v2 = vld [vmem:[#allocation19_spill] sm:$0xff] }
 0x522   :  { %5321 = vmatprep.subr.bf16.mxu0 %v8708_v40  ;;  %5344 = vmatpush3.bf16.msra.mxu1 %v6892_v29 }
 0x523   :  { %5345 = vmatprep.subr.bf16.mxu1 %v8708_v40  ;;  %4628 = vmatprep.mubr.msk.f32.mxu1 %vm6382_vm1, %v8707_v50 }
 0x525   :  { %5323 = vmatpush3.bf16.msra.mxu0 %v6678_v5  ;;  %v8715_v5 = vld [vmem:[#allocation17_spill] sm:$0xff] }
 0x526   :  { %5324 = vmatprep.subr.bf16.mxu0 %v8708_v40  ;;  %5347 = vmatpush3.bf16.msra.mxu1 %v6897_v36 }
 0x527   :  { %5348 = vmatprep.subr.bf16.mxu1 %v8708_v40 }
 0x529   :  { %5326 = vmatpush3.bf16.msra.mxu0 %v6688_v10  ;;  %v8716_v10 = vld [vmem:[#allocation20_spill] sm:$0xff] }
 0x52a   :  { %5327 = vmatprep.subr.bf16.mxu0 %v8708_v40  ;;  %5350 = vmatpush3.bf16.msra.mxu1 %v6903_v47  ;;  %v959_v47 = vld [vmem:[%s8592_s0 + $0x1] sm:$0x1] }
 0x52b   :  { %5351 = vmatprep.subr.bf16.mxu1 %v8708_v40 }
 0x52d   :  { %5329 = vmatpush3.bf16.msra.mxu0 %v6698_v13  ;;  %v8717_v13 = vld [vmem:[#allocation21_spill] sm:$0xff] }
 0x52e   :  { %5330 = vmatprep.subr.bf16.mxu0 %v8708_v40  ;;  %5353 = vmatpush3.bf16.msra.mxu1 %v6907_v60 }
 0x52f   :  { %5354 = vmatprep.subr.bf16.mxu1 %v8708_v40 }
 0x531   :  { %5332 = vmatpush3.bf16.msra.mxu0 %v6708_v18  ;;  %v7123_v18 = vld [vmem:[%s8597_s5] sm:$0xf] }
 0x532   :  { %5333 = vmatprep.subr.bf16.mxu0 %v8708_v40  ;;  %5356 = vmatpush3.bf16.msra.mxu1 %v6911_v11 }
 0x533   :  { %5357 = vmatprep.subr.bf16.mxu1 %v8708_v40 }
 0x535   :  { %5335 = vmatpush3.bf16.msra.mxu0 %v6723_v30  ;;  %v800_v30 = vrot.slane %v7123_v18, %v6647_v52 }
 0x536   :  { %5336 = vmatprep.subr.bf16.mxu0 %v8708_v40  ;;  %5359 = vmatpush3.bf16.msra.mxu1 %v8712_v49  ;;  %v7198_v49 = vpack.c.bf16 %v1380_v51, %v1376_v23  ;;  %v1410_v23 = vld [vmem:[%s8596_s4 + $0x110] sm:$0xff] }
 0x537   :  { %5360 = vmatprep.subr.bf16.mxu1 %v8708_v40  ;;  %v1414_v51 = vld [vmem:[%s8596_s4 + $0x130] sm:$0xff] }
 0x539   :  { %5338 = vmatpush3.bf16.msra.mxu0 %v8713_v53  ;;  %v1378_v53 = vld [vmem:[%s8596_s4 + $0x10] sm:$0xff] }
 0x53a   :  { %5339 = vmatprep.subr.bf16.mxu0 %v8708_v40  ;;  %5362 = vmatpush3.bf16.msra.mxu1 %v8714_v2  ;;  %v1382_v2 = vld [vmem:[%s8596_s4 + $0x30] sm:$0xff] }
 0x53b   :  { %5363 = vmatprep.subr.bf16.mxu1 %v8708_v40 }
 0x53d   :  { %5341 = vmatpush3.bf16.msra.mxu0 %v8715_v5  ;;  %v7207_v5 = vpack.c.bf16 %v1382_v2, %v1378_v53  ;;  %v7351_v53 = vpack.c.bf16 %v1414_v51, %v1410_v23  ;;  %v1417_v2 = vld [vmem:[%s8596_s4 + $0x148] sm:$0xff]  ;;  %v1436_v23 = vld [vmem:[%s8596_s4 + $0x1e0] sm:$0xff]  ;;  %v1434_v51 = vld [vmem:[%s8596_s4 + $0x1d0] sm:$0xff] }
 0x53e   :  { %5365 = vmatpush3.bf16.msra.mxu1 %v8716_v10  ;;  %5367 = vmatprep.subr.bf16.mxu0 %v8717_v13  ;;  %v1385_v10 = vld [vmem:[%s8596_s4 + $0x48] sm:$0xff] }
 0x53f   :  { %5398 = vmatprep.subr.bf16.mxu1 %v8708_v40  ;;  %v1389_v13 = vld [vmem:[%s8596_s4 + $0x68] sm:$0xff] }
 0x5f3   :  { %v883_v29 = vpop.f32.mrb[6].mxu0  ;;  %v7127_v36 = vpop.f32.mrb[6].mxu1 }
 0x5f4   :  { %v884_v60 = vadd.f32 %v883_v29, %v800_v30  ;;  %v7132_v11 = vpop.f32.mrb[7].mxu0  ;;  %v7134_v59 = vpop.f32.mrb[7].mxu1  ;;  %v1387_v30 = vld [vmem:[%s8596_s4 + $0x58] sm:$0xff]  ;;  %v7221_v29 = vpack.c.bf16 %v1389_v13, %v1385_v10  ;;  %v1421_v10 = vld [vmem:[%s8596_s4 + $0x168] sm:$0xff] }
 0x5f5   :  { %v1419_v13 = vld [vmem:[%s8596_s4 + $0x158] sm:$0xff] }
 0x5f6   :  { %v960_v61 = vadd.f32 %v959_v47, %v884_v60  ;;  %v1391_v47 = vld [vmem:[%s8596_s4 + $0x78] sm:$0xff]  ;;  %v1384_v60 = vld [vmem:[%s8596_s4 + $0x40] sm:$0xff] }
 0x5f8   :  { %v961_v17 = vsel %vm315_vm0, %v960_v61, -inf }
 0x5f9   :  { %962 = vmax.xlane.f32.xlu1 %v961_v17  ;;  %v7232_v17 = vpack.c.bf16 %v1391_v47, %v1387_v30  ;;  %v7365_v30 = vpack.c.bf16 %v1421_v10, %v1417_v2  ;;  %v1423_v47 = vld [vmem:[%s8596_s4 + $0x178] sm:$0xff]  ;;  %v1438_v2 = vld [vmem:[%s8596_s4 + $0x1f0] sm:$0xff] }
 0x686   :  { %v963_v22 = vpop.xlane.xlu1 %962 }
 0x687   :  { %v964_v0 = vsub.f32 %v960_v61, %v963_v22  ;;  %v1388_v61 = vld [vmem:[%s8596_s4 + $0x60] sm:$0xff] }
 0x688   :  { %v7234_v22 = vpack.c.bf16 %v1388_v61, %v1384_v60  ;;  %v1416_v60 = vld [vmem:[%s8596_s4 + $0x140] sm:$0xff] }
 0x689   :  { %v965_v43 = vmul.f32 1.442695, %v964_v0  ;;  %v1386_v0 = vld [vmem:[%s8596_s4 + $0x50] sm:$0xff]  ;;  %v1420_v61 = vld [vmem:[%s8596_s4 + $0x160] sm:$0xff] }
 0x68b   :  { %6155 = vpow2.f32 %v965_v43  ;;  %v1390_v43 = vld [vmem:[%s8596_s4 + $0x70] sm:$0xff] }
 0x695   :  { %v6156_v9 = vpop.eup %6155 }
 0x696   :  { %v967_v14 = vsel %vm315_vm0, %v6156_v9, 0.0 }
 0x697   :  { %968 = vadd.xlane.f32.xlu1 %v967_v14  ;;  %v1393_v14 = vld [vmem:[%s8596_s4 + $0x88] sm:$0xff] }
 0x724   :  { %v969_v15 = vpop.xlane.xlu1 %968 }
 0x725   :  { %6157 = vrcp.f32 %v969_v15  ;;  %v1397_v15 = vld [vmem:[%s8596_s4 + $0xa8] sm:$0xff] }
 0x72f   :  { %v6158_v20 = vpop.eup %6157 }
 0x730   :  { %v971_v21 = vmul.f32 %v6158_v20, %v6156_v9  ;;  %v7243_v9 = vpack.c.bf16 %v1390_v43, %v1386_v0  ;;  %v1395_v20 = vld [vmem:[%s8596_s4 + $0x98] sm:$0xff]  ;;  %v7376_v0 = vpack.c.bf16 %v1423_v47, %v1419_v13  ;;  %v7378_v43 = vpack.c.bf16 %v1420_v61, %v1416_v60  ;;  %v1196_v47 = vld [vmem:[%s8600_s8] sm:$0x7] }
 0x731   :  { %v7459_v13 = vpack.c.bf16 %v1438_v2, %v1434_v51  ;;  %v804_v60 = vrot.slane %v7123_v18, %v7055_v4  ;;  %v1201_v61 = vrot.slane %v1196_v47, %v6647_v52  ;;  %v812_v2 = vrot.slane %v7123_v18, %v7072_v12 }
 0x732   :  { %972 = vst [vmem:[#allocation11 + $0x1] sm:$0x1] %v971_v21  ;;  %4594 = vmatmul.mubr.f32.vlgmr.msra.gmra.mrb[8].mxu0 %v971_v21  ;;  %v7257_v21 = vpack.c.bf16 %v1397_v15, %v1393_v14  ;;  %v1418_v14 = vld [vmem:[%s8596_s4 + $0x150] sm:$0xff] }
 0x733   :  { %5369 = vmatpush1.bf16.msra.mxu0 %v8718_v26  ;;  %1277 = vmatprep.mubr.f32.mxu0 %v8707_v50  ;;  %v1399_v26 = vld [vmem:[%s8596_s4 + $0xb8] sm:$0xff]  ;;  %v1422_v15 = vld [vmem:[%s8596_s4 + $0x170] sm:$0xff] }
 0x734   :  { %5371 = vmatprep.subr.bf16.mxu0 %v8719_v27  ;;  %v1392_v27 = vld [vmem:[%s8596_s4 + $0x80] sm:$0xff] }
 0x737   :  { %5373 = vmatpush1.bf16.msra.mxu0 %v8720_v32  ;;  %v1396_v32 = vld [vmem:[%s8596_s4 + $0xa0] sm:$0xff] }
 0x738   :  { %5375 = vmatprep.subr.bf16.mxu0 %v8721_v33  ;;  %v7268_v33 = vpack.c.bf16 %v1399_v26, %v1395_v20  ;;  %v1425_v20 = vld [vmem:[%s8596_s4 + $0x188] sm:$0xff]  ;;  %v7390_v26 = vpack.c.bf16 %v1422_v15, %v1418_v14  ;;  %v808_v14 = vrot.slane %v7123_v18, %v7058_v8  ;;  %v1205_v15 = vrot.slane %v1196_v47, %v7055_v4  ;;  %v7494_v18 = vld [vmem:[%s8597_s5] sm:$0xf] }
 0x73b   :  { %5377 = vmatpush1.bf16.msra.mxu0 %v8722_v38  ;;  %v7270_v38 = vpack.c.bf16 %v1396_v32, %v1392_v27  ;;  %v1429_v27 = vld [vmem:[%s8596_s4 + $0x1a8] sm:$0xff]  ;;  %v1427_v32 = vld [vmem:[%s8596_s4 + $0x198] sm:$0xff] }
 0x73c   :  { %5379 = vmatprep.subr.bf16.mxu0 %v8723_v39  ;;  %v1394_v39 = vld [vmem:[%s8596_s4 + $0x90] sm:$0xff] }
 0x73f   :  { %5381 = vmatpush1.bf16.msra.mxu0 %v8724_v44  ;;  %v1398_v44 = vld [vmem:[%s8596_s4 + $0xb0] sm:$0xff] }
 0x740   :  { %5383 = vmatprep.subr.bf16.mxu0 %v8725_v45  ;;  %v7279_v45 = vpack.c.bf16 %v1398_v44, %v1394_v39  ;;  %v1431_v39 = vld [vmem:[%s8596_s4 + $0x1b8] sm:$0xff]  ;;  %v7403_v44 = vpack.c.bf16 %v1429_v27, %v1425_v20 }
 0x743   :  { %5385 = vmatpush1.bf16.msra.mxu0 %v8726_v48  ;;  %v1401_v48 = vld [vmem:[%s8596_s4 + $0xc8] sm:$0xff] }
 0x744   :  { %5387 = vmatprep.subr.bf16.mxu0 %v8727_v46  ;;  %v1405_v46 = vld [vmem:[%s8596_s4 + $0xe8] sm:$0xff] }
 0x747   :  { %5389 = vmatpush1.bf16.msra.mxu0 %v8728_v55  ;;  %v1403_v55 = vld [vmem:[%s8596_s4 + $0xd8] sm:$0xff] }
 0x748   :  { %5391 = vmatprep.subr.bf16.mxu0 %v8729_v56  ;;  %v7293_v56 = vpack.c.bf16 %v1405_v46, %v1401_v48  ;;  %v7405_v48 = vpack.c.bf16 %v1431_v39, %v1427_v32  ;;  %v1424_v46 = vld [vmem:[%s8596_s4 + $0x180] sm:$0xff]  ;;  %v886_v32 = vadd.f32 %v7132_v11, %v804_v60  ;;  %v1209_v11 = vrot.slane %v1196_v47, %v7058_v8 }
 0x74b   :  { %5393 = vmatpush1.bf16.msra.mxu0 %v8730_v62  ;;  %v1407_v62 = vld [vmem:[%s8596_s4 + $0xf8] sm:$0xff] }
 0x74c   :  { %5395 = vmatprep.subr.bf16.mxu0 %v7006_v31  ;;  %v8734_v31 = vld [vmem:[#allocation38_spill] sm:$0xff] }
 0x74f   :  { %5397 = vmatpush1.bf16.msra.mxu0 %v7008_v35  ;;  %v8735_v35 = vld [vmem:[#allocation39_spill] sm:$0xff] }
 0x805   :  { %v1055_v63 = vpop.f32.mrb[8].mxu0 }
 0x806   :  { %v4595_v16 = vpop.f32.mrb[9].mxu0  ;;  %4629 = vmatmul.mubr.f32.vlgmr.msra.gmra.mrb[8].mxu1 %v1055_v63  ;;  %v1400_v63 = vld [vmem:[%s8596_s4 + $0xc0] sm:$0xff] }
 0x807   :  { %5400 = vmatpush3.bf16.msra.mxu1 %v8731_v58  ;;  %4663 = vmatprep.mubr.msk.f32.mxu1 %vm6382_vm1, %v8707_v50  ;;  %v1404_v16 = vld [vmem:[%s8596_s4 + $0xe0] sm:$0xff]  ;;  %v7304_v58 = vpack.c.bf16 %v1407_v62, %v1403_v55  ;;  %v1426_v62 = vld [vmem:[%s8596_s4 + $0x190] sm:$0xff] }
 0x808   :  { %5401 = vmatprep.subr.bf16.mxu1 %v8708_v40  ;;  %v1428_v55 = vld [vmem:[%s8596_s4 + $0x1a0] sm:$0xff] }
 0x80b   :  { %5403 = vmatpush3.bf16.msra.mxu1 %v8732_v25  ;;  %v7306_v25 = vpack.c.bf16 %v1404_v16, %v1400_v63  ;;  %v7417_v63 = vpack.c.bf16 %v1428_v55, %v1424_v46  ;;  %v1430_v16 = vld [vmem:[%s8596_s4 + $0x1b0] sm:$0xff] }
 0x80c   :  { %5404 = vmatprep.subr.bf16.mxu1 %v8708_v40 }
 0x80f   :  { %5406 = vmatpush3.bf16.msra.mxu1 %v8733_v28  ;;  %v1402_v28 = vld [vmem:[%s8596_s4 + $0xd0] sm:$0xff] }
 0x810   :  { %5407 = vmatprep.subr.bf16.mxu1 %v8708_v40 }
 0x813   :  { %5409 = vmatpush3.bf16.msra.mxu1 %v8734_v31  ;;  %v1406_v31 = vld [vmem:[%s8596_s4 + $0xf0] sm:$0xff] }
 0x814   :  { %5410 = vmatprep.subr.bf16.mxu1 %v8708_v40 }
 0x817   :  { %5412 = vmatpush3.bf16.msra.mxu1 %v8735_v35  ;;  %v7315_v35 = vpack.c.bf16 %v1406_v31, %v1402_v28  ;;  %v1433_v28 = vld [vmem:[%s8596_s4 + $0x1c8] sm:$0xff] }
 0x818   :  { %5413 = vmatprep.subr.bf16.mxu1 %v8708_v40  ;;  %v1437_v31 = vld [vmem:[%s8596_s4 + $0x1e8] sm:$0xff] }
 0x81b   :  { %5415 = vmatpush3.bf16.msra.mxu1 %v6997_v34  ;;  %v1377_v34 = vld [vmem:[%s8596_s4 + $0x8] sm:$0xff] }
 0x81c   :  { %5416 = vmatprep.subr.bf16.mxu1 %v8708_v40 }
 0x81f   :  { %5418 = vmatpush3.bf16.msra.mxu1 %v7001_v1  ;;  %v1381_v1 = vld [vmem:[%s8596_s4 + $0x28] sm:$0xff] }
 0x820   :  { %5419 = vmatprep.subr.bf16.mxu1 %v8708_v40  ;;  %v7185_v7 = vpack.c.bf16 %v1381_v1, %v1377_v34  ;;  %v1408_v34 = vld [vmem:[%s8596_s4 + $0x100] sm:$0xff] }
 0x821   :  { %v1412_v1 = vld [vmem:[%s8596_s4 + $0x120] sm:$0xff] }
 0x822   :  { %5423 = vmatprep.subr.bf16.mxu0 %v7185_v7 }
 0x823   :  { %5421 = vmatpush3.bf16.msra.mxu1 %v7011_v24  ;;  %v1379_v24 = vld [vmem:[%s8596_s4 + $0x18] sm:$0xff] }
 0x824   :  { %v7196_v3 = vpack.c.bf16 %v1383_v19, %v1379_v24  ;;  %v7342_v19 = vpack.c.bf16 %v1412_v1, %v1408_v34  ;;  %v1432_v34 = vld [vmem:[%s8596_s4 + $0x1c0] sm:$0xff] }
 0x825   :  { %v7455_v10 = vpack.c.bf16 %v1436_v23, %v1432_v34 }
 0x826   :  { %5455 = vmatprep.subr.bf16.mxu1 %v7196_v3 }
 0x8d9   :  { %v1142_v41 = vpop.f32.mrb[8].mxu1 }
 0x8da   :  { %v1146_v54 = vadd.f32 %v1142_v41, %v1059_v37  ;;  %v4630_v57 = vpop.f32.mrb[9].mxu1  ;;  %v1409_v37 = vld [vmem:[%s8596_s4 + $0x108] sm:$0xff] }
 0x8db   :  { %v1413_v41 = vld [vmem:[%s8596_s4 + $0x128] sm:$0xff] }
 0x8dc   :  { %v1147_v6 = vmax.f32 %v1146_v54, 0.0  ;;  %v1411_v54 = vld [vmem:[%s8596_s4 + $0x118] sm:$0xff]  ;;  %v7329_v57 = vpack.c.bf16 %v1413_v41, %v1409_v37  ;;  %v7430_v37 = vpack.c.bf16 %v1430_v16, %v1426_v62  ;;  %v7432_v41 = vpack.c.bf16 %v1437_v31, %v1433_v28 }
 0x8dd   :  { %v955_v62 = vadd.f32 %v7127_v36, %v808_v14 }
 0x8de   :  { %1278 = vmatmul.mubr.f32.vlgmr.msra.gmra.mrb[10].mxu0 %v1147_v6  ;;  %4664 = vmatmul.mubr.f32.vlgmr.msra.gmra.mrb[10].mxu1 %v1147_v6  ;;  %v1415_v6 = vld [vmem:[%s8596_s4 + $0x138] sm:$0xff] }
 0x8df   :  { %1526 = vmatprep.mubr.f32.mxu0 %v8707_v50  ;;  %1597 = vmatprep.mubr.f32.mxu1 %v8707_v50  ;;  %v7340_v24 = vpack.c.bf16 %v1415_v6, %v1411_v54  ;;  %v1435_v54 = vld [vmem:[%s8596_s4 + $0x1d8] sm:$0xff] }
 0x8e0   :  { %5425 = vmatpush1.bf16.msra.mxu0 %v7198_v49  ;;  %5457 = vmatpush1.bf16.msra.mxu1 %v7207_v5  ;;  %v1439_v6 = vld [vmem:[%s8596_s4 + $0x1f8] sm:$0xff] }
 0x8e1   :  { %5427 = vmatprep.subr.bf16.mxu0 %v7221_v29  ;;  %5459 = vmatprep.subr.bf16.mxu1 %v7232_v17  ;;  %v7443_v1 = vpack.c.bf16 %v1439_v6, %v1435_v54 }
 0x8e4   :  { %5429 = vmatpush1.bf16.msra.mxu0 %v7234_v22  ;;  %5461 = vmatpush1.bf16.msra.mxu1 %v7243_v9 }
 0x8e5   :  { %5431 = vmatprep.subr.bf16.mxu0 %v7257_v21  ;;  %5463 = vmatprep.subr.bf16.mxu1 %v7268_v33 }
 0x8e8   :  { %5433 = vmatpush1.bf16.msra.mxu0 %v7270_v38  ;;  %5465 = vmatpush1.bf16.msra.mxu1 %v7279_v45 }
 0x8e9   :  { %5435 = vmatprep.subr.bf16.mxu0 %v7293_v56  ;;  %5467 = vmatprep.subr.bf16.mxu1 %v7304_v58 }
 0x8ec   :  { %5437 = vmatpush1.bf16.msra.mxu0 %v7306_v25  ;;  %5469 = vmatpush1.bf16.msra.mxu1 %v7315_v35 }
 0x8ed   :  { %5439 = vmatprep.subr.bf16.mxu0 %v7329_v57  ;;  %5471 = vmatprep.subr.bf16.mxu1 %v7340_v24 }
 0x8f0   :  { %5441 = vmatpush1.bf16.msra.mxu0 %v7342_v19  ;;  %5473 = vmatpush1.bf16.msra.mxu1 %v7351_v53 }
 0x8f1   :  { %5443 = vmatprep.subr.bf16.mxu0 %v7365_v30  ;;  %5475 = vmatprep.subr.bf16.mxu1 %v7376_v0 }
 0x8f4   :  { %5445 = vmatpush1.bf16.msra.mxu0 %v7378_v43  ;;  %5477 = vmatpush1.bf16.msra.mxu1 %v7390_v26 }
 0x8f5   :  { %5447 = vmatprep.subr.bf16.mxu0 %v7403_v44  ;;  %5479 = vmatprep.subr.bf16.mxu1 %v7405_v48 }
 0x8f8   :  { %5449 = vmatpush1.bf16.msra.mxu0 %v7417_v63  ;;  %5481 = vmatpush1.bf16.msra.mxu1 %v7430_v37 }
 0x8f9   :  { %5451 = vmatprep.subr.bf16.mxu0 %v7432_v41  ;;  %5483 = vmatprep.subr.bf16.mxu1 %v7443_v1 }
 0x8fc   :  { %5453 = vmatpush1.bf16.msra.mxu0 %v7455_v10  ;;  %5485 = vmatpush1.bf16.msra.mxu1 %v7459_v13 }
 0x8fd   :  { %5486 = vmatprep.subr.bf16.mxu0 %v8708_v40  ;;  %5510 = vmatprep.subr.bf16.mxu1 %v8708_v40 }
 0x9b1   :  { %v1279_v20 = vpop.f32.mrb[10].mxu0  ;;  %v1350_v27 = vpop.f32.mrb[10].mxu1 }
 0x9b2   :  { %v1280_v39 = vadd.f32 %v1279_v20, %v1201_v61  ;;  %v1281_v46 = vpop.f32.mrb[11].mxu0  ;;  %v4665_v55 = vpop.f32.mrb[11].mxu1  ;;  %v957_v61 = vadd.f32 %v7134_v59, %v812_v2  ;;  %v1351_v14 = vadd.f32 %v1350_v27, %v1209_v11  ;;  %v1604_v27 = vld [vmem:[%s8592_s0 + $0x2] sm:$0x1]  ;;  %v1620_v2 = vld [vmem:[%s8595_s3 + $0x10] sm:$0xff] }
 0x9b3   :  { %v1282_v16 = vadd.f32 %v1281_v46, %v1205_v15 }
 0x9b4   :  { %v1354_v28 = vadd.f32 %v1280_v39, %v886_v32 }
 0x9b5   :  { %v1361_v31 = vadd.f32 %v1282_v16, %v955_v62 }
 0x9b6   :  { %v4140_v54 = vmul.f32 -1.442695, %v1354_v28 }
 0x9b7   :  { %v4141_v6 = vmul.f32 -1.442695, %v1361_v31 }
 0x9b8   :  { %6159 = vpow2.f32 %v4140_v54 }
 0x9b9   :  { %6161 = vpow2.f32 %v4141_v6 }
 0x9c2   :  { %v6160_v34 = vpop.eup %6159 }
 0x9c3   :  { %v1358_v23 = vadd.f32 1.0, %v6160_v34  ;;  %v6162_v51 = vpop.eup %6161 }
 0x9c4   :  { %v1365_v60 = vadd.f32 1.0, %v6162_v51  ;;  %v1619_v51 = vld [vmem:[%s8595_s3 + $0x8] sm:$0xff] }
 0x9c5   :  { %6163 = vrcp.f32 %v1358_v23  ;;  %v1618_v23 = vld [vmem:[%s8595_s3] sm:$0xff] }
 0x9c6   :  { %6165 = vrcp.f32 %v1365_v60  ;;  %v7517_v11 = vpack.c.bf16 %v1619_v51, %v1618_v23  ;;  %v1621_v60 = vld [vmem:[%s8595_s3 + $0x18] sm:$0xff]  ;;  %v1628_v23 = vld [vmem:[%s8595_s3 + $0x50] sm:$0xff] }
 0x9c7   :  { %v1629_v51 = vld [vmem:[%s8595_s3 + $0x58] sm:$0xff] }
 0x9cf   :  { %v6164_v36 = vpop.eup %6163 }
 0x9d0   :  { %v1368_v15 = vmul.f32 %v6164_v36, %v957_v61  ;;  %v6166_v32 = vpop.eup %6165  ;;  %v7523_v61 = vpack.c.bf16 %v1621_v60, %v1620_v2  ;;  %v1622_v36 = vld [vmem:[%s8595_s3 + $0x20] sm:$0xff]  ;;  %v7565_v2 = vpack.c.bf16 %v1629_v51, %v1628_v23  ;;  %v1631_v60 = vld [vmem:[%s8595_s3 + $0x68] sm:$0xff] }
 0x9d1   :  { %v1371_v39 = vsub.f32 1.0, %v6166_v32  ;;  %v1373_v62 = vmul.f32 %v6166_v32, %v7079_v42  ;;  %v1445_v42 = vrot.slane %v7494_v18, %v6647_v52  ;;  %v1625_v32 = vld [vmem:[%s8595_s3 + $0x38] sm:$0xff]  ;;  %v1709_v23 = vld [vmem:[#allocation2 + $0x20] sm:$0xff]  ;;  %v1710_v51 = vld [vmem:[#allocation2 + $0x28] sm:$0xff] }
 0x9d2   :  { %v1369_v20 = vadd.f32 %v1368_v15, %v1351_v14  ;;  %v1623_v14 = vld [vmem:[%s8595_s3 + $0x28] sm:$0xff]  ;;  %8737 = vst [vmem:[#allocation16_spill] sm:$0xff] %v7565_v2 }
 0x9d3   :  { %v7533_v15 = vpack.c.bf16 %v1623_v14, %v1622_v36  ;;  %v1632_v14 = vld [vmem:[%s8595_s3 + $0x70] sm:$0xff] }
 0x9d4   :  { %6167 = vtanh.f32 %v1369_v20  ;;  %v1624_v20 = vld [vmem:[%s8595_s3 + $0x30] sm:$0xff] }
 0x9de   :  { %v6168_v46 = vpop.eup %6167 }
 0x9df   :  { %v1372_v55 = vmul.f32 %v6168_v46, %v1371_v39  ;;  %v7543_v39 = vpack.c.bf16 %v1625_v32, %v1624_v20  ;;  %v1626_v46 = vld [vmem:[%s8595_s3 + $0x40] sm:$0xff]  ;;  %v1633_v20 = vld [vmem:[%s8595_s3 + $0x78] sm:$0xff] }
 0x9e0   :  { %v7584_v32 = vpack.c.bf16 %v1633_v20, %v1632_v14  ;;  %v1712_v14 = vld [vmem:[#allocation2 + $0x38] sm:$0xff] }
 0x9e1   :  { %v7482_v16 = vadd.f32 %v1373_v62, %v1372_v55  ;;  %v1627_v55 = vld [vmem:[%s8595_s3 + $0x48] sm:$0xff] }
 0x9e2   :  { %v7553_v62 = vpack.c.bf16 %v1627_v55, %v1626_v46  ;;  %8739 = vst [vmem:[#allocation17_spill] sm:$0xff] %v7584_v32  ;;  %v1705_v46 = vld [vmem:[#allocation2] sm:$0xff]  ;;  %v1706_v55 = vld [vmem:[#allocation2 + $0x8] sm:$0xff] }
 0x9e3   :  { %1375 = vst [vmem:[#allocation9 + $0x1] sm:$0x1] %v7482_v16  ;;  %1527 = vmatmul.mubr.f32.vlgmr.msra.gmra.mrb[12].mxu0 %v7482_v16  ;;  %1598 = vmatmul.mubr.f32.vlgmr.msra.gmra.mrb[12].mxu1 %v7482_v16 }
 0x9e4   :  { %4698 = vmatprep.mubr.msk.f32.mxu0 %vm6382_vm1, %v8707_v50  ;;  %4733 = vmatprep.mubr.msk.f32.mxu1 %vm6382_vm1, %v8707_v50  ;;  %8736 = vst [vmem:[#allocation18_spill] sm:$0xff] %v7553_v62 }
 0x9e5   :  { %5488 = vmatpush3.bf16.msra.mxu0 %v7517_v11 }
 0x9e6   :  { %5489 = vmatprep.subr.bf16.mxu0 %v8708_v40 }
 0x9e9   :  { %5491 = vmatpush3.bf16.msra.mxu0 %v7523_v61 }
 0x9ea   :  { %5492 = vmatprep.subr.bf16.mxu0 %v8708_v40 }
 0x9ed   :  { %5494 = vmatpush3.bf16.msra.mxu0 %v7533_v15 }
 0x9ee   :  { %5495 = vmatprep.subr.bf16.mxu0 %v8708_v40 }
 0x9f1   :  { %5497 = vmatpush3.bf16.msra.mxu0 %v7543_v39 }
 0x9f2   :  { %5498 = vmatprep.subr.bf16.mxu0 %v8708_v40 }
 0x9f5   :  { %5500 = vmatpush3.bf16.msra.mxu0 %v7553_v62  ;;  %v1799_v62 = vld [vmem:[#allocation5 + $0x30] sm:$0xff] }
 0x9f6   :  { %5501 = vmatprep.subr.bf16.mxu0 %v8708_v40 }
 0x9f9   :  { %5503 = vmatpush3.bf16.msra.mxu0 %v7565_v2  ;;  %v1793_v2 = vld [vmem:[#allocation5] sm:$0xff] }
 0x9fa   :  { %5504 = vmatprep.subr.bf16.mxu0 %v8708_v40 }
 0xab6   :  { %v1528_v59 = vpop.f32.mrb[12].mxu0  ;;  %v7498_v47 = vpop.f32.mrb[12].mxu1 }
 0xab7   :  { %v1529_v28 = vadd.f32 %v1528_v59, %v1445_v42  ;;  %v7503_v31 = vpop.f32.mrb[13].mxu0  ;;  %v7505_v54 = vpop.f32.mrb[13].mxu1 }
 0xab9   :  { %v1605_v6 = vadd.f32 %v1604_v27, %v1529_v28 }
 0xabb   :  { %v1606_v34 = vsel %vm315_vm0, %v1605_v6, -inf }
 0xabc   :  { %1607 = vmax.xlane.f32.xlu0 %v1606_v34 }
 0xb49   :  { %v1608_v42 = vpop.xlane.xlu0 %1607 }
 0xb4a   :  { %v1609_v59 = vsub.f32 %v1605_v6, %v1608_v42  ;;  %v1630_v6 = vld [vmem:[%s8595_s3 + $0x60] sm:$0xff]  ;;  %v1707_v42 = vld [vmem:[#allocation2 + $0x10] sm:$0xff] }
 0xb4b   :  { %v7574_v36 = vpack.c.bf16 %v1631_v60, %v1630_v6  ;;  %v7595_v6 = vpack.c.bf16 %v1710_v51, %v1709_v23  ;;  %v1711_v60 = vld [vmem:[#allocation2 + $0x30] sm:$0xff]  ;;  %v1716_v23 = vld [vmem:[#allocation2 + $0x58] sm:$0xff] }
 0xb4c   :  { %v1610_v27 = vmul.f32 1.442695, %v1609_v59  ;;  %v7588_v59 = vpack.c.bf16 %v1706_v55, %v1705_v46  ;;  %v7599_v20 = vpack.c.bf16 %v1712_v14, %v1711_v60  ;;  %v1713_v46 = vld [vmem:[#allocation2 + $0x40] sm:$0xff]  ;;  %v1714_v55 = vld [vmem:[#allocation2 + $0x48] sm:$0xff] }
 0xb4d   :  { %8738 = vst [vmem:[#allocation19_spill] sm:$0xff] %v7574_v36  ;;  %5506 = vmatpush3.bf16.msra.mxu0 %v7574_v36  ;;  %v1717_v60 = vld [vmem:[#allocation2 + $0x60] sm:$0xff]  ;;  %v1718_v14 = vld [vmem:[#allocation2 + $0x68] sm:$0xff] }
 0xb4e   :  { %6169 = vpow2.f32 %v1610_v27  ;;  %5507 = vmatprep.subr.bf16.mxu0 %v8708_v40  ;;  %v1708_v27 = vld [vmem:[#allocation2 + $0x18] sm:$0xff]  ;;  %5512 = vmatpush3.bf16.msra.mxu1 %v7588_v59  ;;  %8740 = vst [vmem:[#allocation20_spill] sm:$0xff] %v7599_v20 }
 0xb4f   :  { %5513 = vmatprep.subr.bf16.mxu1 %v8708_v40 }
 0xb51   :  { %5509 = vmatpush3.bf16.msra.mxu0 %v7584_v32  ;;  %v7611_v32 = vpack.c.bf16 %v1718_v14, %v1717_v60  ;;  %v1794_v60 = vld [vmem:[#allocation5 + $0x8] sm:$0xff]  ;;  %v1797_v14 = vld [vmem:[#allocation5 + $0x20] sm:$0xff] }
 0xb53   :  { %8743 = vst [vmem:[#allocation23_spill] sm:$0xff] %v7611_v32 }
 0xb58   :  { %v6170_v28 = vpop.eup %6169 }
 0xb59   :  { %v1612_v34 = vsel %vm315_vm0, %v6170_v28, 0.0 }
 0xb5a   :  { %1613 = vadd.xlane.f32.xlu1 %v1612_v34  ;;  %v7591_v34 = vpack.c.bf16 %v1708_v27, %v1707_v42  ;;  %v7603_v42 = vpack.c.bf16 %v1714_v55, %v1713_v46  ;;  %v1715_v27 = vld [vmem:[#allocation2 + $0x50] sm:$0xff]  ;;  %v1720_v55 = vld [vmem:[#allocation2 + $0x78] sm:$0xff] }
 0xb5b   :  { %v7607_v51 = vpack.c.bf16 %v1716_v23, %v1715_v27  ;;  %v1719_v46 = vld [vmem:[#allocation2 + $0x70] sm:$0xff] }
 0xb5c   :  { %5515 = vmatpush3.bf16.msra.mxu1 %v7591_v34  ;;  %8741 = vst [vmem:[#allocation21_spill] sm:$0xff] %v7603_v42  ;;  %v7615_v36 = vpack.c.bf16 %v1720_v55, %v1719_v46  ;;  %v1796_v46 = vld [vmem:[#allocation5 + $0x18] sm:$0xff] }
 0xb5d   :  { %5516 = vmatprep.subr.bf16.mxu1 %v8708_v40  ;;  %8742 = vst [vmem:[#allocation22_spill] sm:$0xff] %v7607_v51  ;;  %v7623_v55 = vpack.c.bf16 %v1796_v46, %v1793_v2  ;;  %v1805_v2 = vld [vmem:[#allocation5 + $0x60] sm:$0xff]  ;;  %v1808_v46 = vld [vmem:[#allocation5 + $0x78] sm:$0xff] }
 0xb5e   :  { %8744 = vst [vmem:[#allocation24_spill] sm:$0xff] %v7615_v36 }
 0xb5f   :  { %8746 = vst [vmem:[#allocation26_spill] sm:$0xff] %v7623_v55 }
 0xb60   :  { %5518 = vmatpush3.bf16.msra.mxu1 %v7595_v6 }
 0xb61   :  { %5519 = vmatprep.subr.bf16.mxu1 %v8708_v40 }
 0xb64   :  { %5521 = vmatpush3.bf16.msra.mxu1 %v7599_v20  ;;  %v7635_v20 = vpack.c.bf16 %v1808_v46, %v1805_v2  ;;  %v1817_v2 = vld [vmem:[#allocation5 + $0xc0] sm:$0xff]  ;;  %v1820_v46 = vld [vmem:[#allocation5 + $0xd8] sm:$0xff] }
 0xb65   :  { %5522 = vmatprep.subr.bf16.mxu1 %v8708_v40 }
 0xb66   :  { %8750 = vst [vmem:[#allocation30_spill] sm:$0xff] %v7635_v20 }
 0xb68   :  { %5524 = vmatpush3.bf16.msra.mxu1 %v7603_v42  ;;  %v1800_v42 = vld [vmem:[#allocation5 + $0x38] sm:$0xff] }
 0xb69   :  { %5525 = vmatprep.subr.bf16.mxu1 %v8708_v40 }
 0xb6c   :  { %5527 = vmatpush3.bf16.msra.mxu1 %v7607_v51 }
 0xb6d   :  { %5528 = vmatprep.subr.bf16.mxu1 %v8708_v40 }
 0xb70   :  { %5530 = vmatpush3.bf16.msra.mxu1 %v7611_v32  ;;  %v7621_v32 = vpack.c.bf16 %v1797_v14, %v1794_v60  ;;  %v1809_v60 = vld [vmem:[#allocation5 + $0x80] sm:$0xff] }
 0xb71   :  { %5531 = vmatprep.subr.bf16.mxu1 %v8708_v40 }
 0xb72   :  { %8745 = vst [vmem:[#allocation25_spill] sm:$0xff] %v7621_v32  ;;  %5535 = vmatprep.subr.bf16.mxu0 %v7621_v32 }
 0xb74   :  { %5533 = vmatpush3.bf16.msra.mxu1 %v7615_v36  ;;  %v1803_v36 = vld [vmem:[#allocation5 + $0x50] sm:$0xff] }
 0xb75   :  { %5566 = vmatprep.subr.bf16.mxu1 %v8708_v40 }
 0xbe7   :  { %v1614_v27 = vpop.xlane.xlu1 %1613 }
 0xbe8   :  { %6171 = vrcp.f32 %v1614_v27  ;;  %v7626_v27 = vpack.c.bf16 %v1803_v36, %v1800_v42  ;;  %v1812_v36 = vld [vmem:[#allocation5 + $0x98] sm:$0xff]  ;;  %v1815_v42 = vld [vmem:[#allocation5 + $0xb0] sm:$0xff] }
 0xbe9   :  { %v7638_v32 = vpack.c.bf16 %v1815_v42, %v1812_v36  ;;  %v1824_v36 = vld [vmem:[#allocation5 + $0xf8] sm:$0xff]  ;;  %v1827_v42 = vld [vmem:[#allocation5 + $0x110] sm:$0xff] }
 0xbea   :  { %8747 = vst [vmem:[#allocation27_spill] sm:$0xff] %v7626_v27 }
 0xbeb   :  { %8751 = vst [vmem:[#allocation31_spill] sm:$0xff] %v7638_v32 }
 0xbf2   :  { %v6172_v23 = vpop.eup %6171 }
 0xbf3   :  { %v1616_v51 = vmul.f32 %v6172_v23, %v6170_v28  ;;  %v1802_v28 = vld [vmem:[#allocation5 + $0x48] sm:$0xff] }
 0xbf4   :  { %v1806_v23 = vld [vmem:[#allocation5 + $0x68] sm:$0xff] }
 0xbf5   :  { %1617 = vst [vmem:[#allocation11 + $0x2] sm:$0x1] %v1616_v51  ;;  %4699 = vmatmul.mubr.f32.vlgmr.msra.gmra.mrb[14].mxu0 %v1616_v51  ;;  %v7629_v51 = vpack.c.bf16 %v1802_v28, %v1799_v62  ;;  %v7632_v14 = vpack.c.bf16 %v1809_v60, %v1806_v23  ;;  %v1811_v62 = vld [vmem:[#allocation5 + $0x90] sm:$0xff]  ;;  %v1814_v28 = vld [vmem:[#allocation5 + $0xa8] sm:$0xff]  ;;  %v1821_v60 = vld [vmem:[#allocation5 + $0xe0] sm:$0xff] }
 0xbf6   :  { %1922 = vmatprep.mubr.f32.mxu0 %v8707_v50  ;;  %5537 = vmatpush1.bf16.msra.mxu0 %v7623_v55  ;;  %v1818_v23 = vld [vmem:[#allocation5 + $0xc8] sm:$0xff] }
 0xbf7   :  { %8748 = vst [vmem:[#allocation28_spill] sm:$0xff] %v7629_v51  ;;  %5539 = vmatprep.subr.bf16.mxu0 %v7626_v27  ;;  %8749 = vst [vmem:[#allocation29_spill] sm:$0xff] %v7632_v14  ;;  %v7641_v27 = vpack.c.bf16 %v1814_v28, %v1811_v62  ;;  %v7644_v55 = vpack.c.bf16 %v1821_v60, %v1818_v23  ;;  %v1823_v62 = vld [vmem:[#allocation5 + $0xf0] sm:$0xff]  ;;  %v1826_v28 = vld [vmem:[#allocation5 + $0x108] sm:$0xff] }
 0xbf8   :  { %v1830_v23 = vld [vmem:[#allocation5 + $0x128] sm:$0xff]  ;;  %v1833_v60 = vld [vmem:[#allocation5 + $0x140] sm:$0xff] }
 0xbf9   :  { %8752 = vst [vmem:[#allocation32_spill] sm:$0xff] %v7641_v27  ;;  %8753 = vst [vmem:[#allocation33_spill] sm:$0xff] %v7644_v55 }
 0xbfa   :  { %5541 = vmatpush1.bf16.msra.mxu0 %v7629_v51  ;;  %v7650_v51 = vpack.c.bf16 %v1827_v42, %v1824_v36  ;;  %v1795_v36 = vld [vmem:[#allocation5 + $0x10] sm:$0xff]  ;;  %v1798_v42 = vld [vmem:[#allocation5 + $0x28] sm:$0xff] }
 0xbfb   :  { %5543 = vmatprep.subr.bf16.mxu0 %v7632_v14  ;;  %v7647_v14 = vpack.c.bf16 %v1820_v46, %v1817_v2  ;;  %v1829_v2 = vld [vmem:[#allocation5 + $0x120] sm:$0xff]  ;;  %v1832_v46 = vld [vmem:[#allocation5 + $0x138] sm:$0xff] }
 0xbfc   :  { %8755 = vst [vmem:[#allocation35_spill] sm:$0xff] %v7650_v51 }
 0xbfd   :  { %8754 = vst [vmem:[#allocation34_spill] sm:$0xff] %v7647_v14 }
 0xbfe   :  { %5545 = vmatpush1.bf16.msra.mxu0 %v7635_v20  ;;  %v7656_v20 = vpack.c.bf16 %v1833_v60, %v1830_v23  ;;  %v1807_v60 = vld [vmem:[#allocation5 + $0x70] sm:$0xff] }
 0xbff   :  { %5547 = vmatprep.subr.bf16.mxu0 %v7638_v32  ;;  %v7653_v32 = vpack.c.bf16 %v1826_v28, %v1823_v62  ;;  %v7663_v62 = vpack.c.bf16 %v1798_v42, %v1795_v36  ;;  %v1801_v28 = vld [vmem:[#allocation5 + $0x40] sm:$0xff]  ;;  %v1822_v42 = vld [vmem:[#allocation5 + $0xe8] sm:$0xff] }
 0xc00   :  { %v1813_v36 = vld [vmem:[#allocation5 + $0xa0] sm:$0xff] }
 0xc01   :  { %8757 = vst [vmem:[#allocation37_spill] sm:$0xff] %v7663_v62 }
 0xc02   :  { %5549 = vmatpush1.bf16.msra.mxu0 %v7641_v27 }
 0xc03   :  { %5551 = vmatprep.subr.bf16.mxu0 %v7644_v55  ;;  %v7659_v55 = vpack.c.bf16 %v1832_v46, %v1829_v2  ;;  %v1810_v2 = vld [vmem:[#allocation5 + $0x88] sm:$0xff] }
 0xc04   :  { %v7672_v46 = vpack.c.bf16 %v1810_v2, %v1807_v60  ;;  %v1825_v60 = vld [vmem:[#allocation5 + $0x100] sm:$0xff]  ;;  %v1828_v2 = vld [vmem:[#allocation5 + $0x118] sm:$0xff] }
 0xc05   :  { %8756 = vst [vmem:[#allocation36_spill] sm:$0xff] %v7659_v55 }
 0xc06   :  { %5553 = vmatpush1.bf16.msra.mxu0 %v7647_v14  ;;  %8759 = vst [vmem:[#allocation39_spill] sm:$0xff] %v7672_v46 }
 0xc07   :  { %5555 = vmatprep.subr.bf16.mxu0 %v7650_v51  ;;  %v1804_v51 = vld [vmem:[#allocation5 + $0x58] sm:$0xff] }
 0xc08   :  { %v7666_v23 = vpack.c.bf16 %v1804_v51, %v1801_v28  ;;  %v1819_v51 = vld [vmem:[#allocation5 + $0xd0] sm:$0xff] }
 0xc09   :  { %v7680_v28 = vpack.c.bf16 %v1822_v42, %v1819_v51  ;;  %v1836_v51 = vld [vmem:[#allocation5 + $0x158] sm:$0xff]  ;;  %v1839_v42 = vld [vmem:[#allocation5 + $0x170] sm:$0xff] }
 0xc0a   :  { %5557 = vmatpush1.bf16.msra.mxu0 %v7653_v32  ;;  %8758 = vst [vmem:[#allocation38_spill] sm:$0xff] %v7666_v23 }
 0xc0b   :  { %5559 = vmatprep.subr.bf16.mxu0 %v7656_v20  ;;  %8761 = vst [vmem:[#allocation41_spill] sm:$0xff] %v7680_v28 }
 0xc0e   :  { %5561 = vmatpush1.bf16.msra.mxu0 %v7659_v55  ;;  %v1840_v55 = vld [vmem:[#allocation5 + $0x178] sm:$0xff] }
 0xcc8   :  { %v1700_v14 = vpop.f32.mrb[14].mxu0 }
 0xcc9   :  { %v4700_v27 = vpop.f32.mrb[15].mxu0  ;;  %4734 = vmatmul.mubr.f32.vlgmr.msra.gmra.mrb[14].mxu1 %v1700_v14 }
 0xcca   :  { %5568 = vmatpush3.bf16.msra.mxu1 %v7663_v62  ;;  %4768 = vmatprep.mubr.msk.f32.mxu1 %vm6382_vm1, %v8707_v50  ;;  %v1816_v27 = vld [vmem:[#allocation5 + $0xb8] sm:$0xff] }
 0xccb   :  { %5569 = vmatprep.subr.bf16.mxu1 %v8708_v40  ;;  %v7676_v14 = vpack.c.bf16 %v1816_v27, %v1813_v36  ;;  %v1831_v36 = vld [vmem:[#allocation5 + $0x130] sm:$0xff]  ;;  %v1834_v27 = vld [vmem:[#allocation5 + $0x148] sm:$0xff] }
 0xccd   :  { %8760 = vst [vmem:[#allocation40_spill] sm:$0xff] %v7676_v14 }
 0xcce   :  { %5571 = vmatpush3.bf16.msra.mxu1 %v7666_v23  ;;  %v7684_v23 = vpack.c.bf16 %v1828_v2, %v1825_v60  ;;  %v1835_v60 = vld [vmem:[#allocation5 + $0x150] sm:$0xff]  ;;  %v1838_v2 = vld [vmem:[#allocation5 + $0x168] sm:$0xff] }
 0xccf   :  { %5572 = vmatprep.subr.bf16.mxu1 %v8708_v40  ;;  %v7695_v62 = vpack.c.bf16 %v1838_v2, %v1835_v60 }
 0xcd2   :  { %5574 = vmatpush3.bf16.msra.mxu1 %v7672_v46  ;;  %v7688_v46 = vpack.c.bf16 %v1834_v27, %v1831_v36  ;;  %v1704_v27 = vld [vmem:[%s8593_s1 + $0x2] sm:$0x1] }
 0xcd3   :  { %5575 = vmatprep.subr.bf16.mxu1 %v8708_v40 }
 0xcd6   :  { %5577 = vmatpush3.bf16.msra.mxu1 %v7676_v14  ;;  %v7693_v14 = vpack.c.bf16 %v1839_v42, %v1836_v51 }
 0xcd7   :  { %5578 = vmatprep.subr.bf16.mxu1 %v8708_v40 }
 0xcd8   :  { %5563 = vmatprep.subr.bf16.mxu0 %v7693_v14 }
 0xcd9   :  { %5565 = vmatpush1.bf16.msra.mxu0 %v7695_v62 }
 0xcda   :  { %5580 = vmatpush3.bf16.msra.mxu1 %v7680_v28  ;;  %v1837_v28 = vld [vmem:[#allocation5 + $0x160] sm:$0xff]  ;;  %5591 = vmatprep.subr.bf16.mxu0 %v7185_v7 }
 0xcdb   :  { %5581 = vmatprep.subr.bf16.mxu1 %v8708_v40  ;;  %v7698_v36 = vpack.c.bf16 %v1840_v55, %v1837_v28  ;;  %v1841_v7 = vld [vmem:[%s8600_s8] sm:$0x7] }
 0xcdc   :  { %v7801_v55 = vld [vmem:[%s8597_s5] sm:$0xf] }
 0xcdd   :  { %v2090_v28 = vrot.slane %v7801_v55, %v6647_v52 }
 0xcde   :  { %5583 = vmatpush3.bf16.msra.mxu1 %v7684_v23 }
 0xcdf   :  { %5584 = vmatprep.subr.bf16.mxu1 %v8708_v40 }
 0xce2   :  { %5586 = vmatpush3.bf16.msra.mxu1 %v7688_v46 }
 0xce3   :  { %5587 = vmatprep.subr.bf16.mxu1 %v8708_v40 }
 0xce6   :  { %5589 = vmatpush3.bf16.msra.mxu1 %v7698_v36 }
 0xce7   :  { %5623 = vmatprep.subr.bf16.mxu1 %v7196_v3  ;;  %v1449_v3 = vrot.slane %v7494_v18, %v7055_v4 }
 0xd9c   :  { %v1787_v51 = vpop.f32.mrb[14].mxu1 }
 0xd9d   :  { %v1791_v42 = vadd.f32 %v1787_v51, %v1704_v27  ;;  %v4735_v60 = vpop.f32.mrb[15].mxu1 }
 0xd9f   :  { %v1792_v2 = vmax.f32 %v1791_v42, 0.0  ;;  %v2249_v42 = vld [vmem:[%s8592_s0 + $0x3] sm:$0x1] }
 0xda1   :  { %1923 = vmatmul.mubr.f32.vlgmr.msra.gmra.mrb[16].mxu0 %v1792_v2  ;;  %4769 = vmatmul.mubr.f32.vlgmr.msra.gmra.mrb[16].mxu1 %v1792_v2 }
 0xda2   :  { %5593 = vmatpush1.bf16.msra.mxu0 %v7198_v49  ;;  %5625 = vmatpush1.bf16.msra.mxu1 %v7207_v5  ;;  %v1846_v49 = vrot.slane %v1841_v7, %v6647_v52  ;;  %v1453_v5 = vrot.slane %v7494_v18, %v7058_v8 }
 0xda3   :  { %5595 = vmatprep.subr.bf16.mxu0 %v7221_v29  ;;  %5627 = vmatprep.subr.bf16.mxu1 %v7232_v17  ;;  %v1850_v29 = vrot.slane %v1841_v7, %v7055_v4 }
 0xda4   :  { %2171 = vmatprep.mubr.f32.mxu0 %v8707_v50  ;;  %2242 = vmatprep.mubr.f32.mxu1 %v8707_v50 }
 0xda6   :  { %5597 = vmatpush1.bf16.msra.mxu0 %v7234_v22  ;;  %5629 = vmatpush1.bf16.msra.mxu1 %v7243_v9  ;;  %v1531_v9 = vadd.f32 %v7503_v31, %v1449_v3 }
 0xda7   :  { %5599 = vmatprep.subr.bf16.mxu0 %v7257_v21  ;;  %5631 = vmatprep.subr.bf16.mxu1 %v7268_v33 }
 0xdaa   :  { %5601 = vmatpush1.bf16.msra.mxu0 %v7270_v38  ;;  %5633 = vmatpush1.bf16.msra.mxu1 %v7279_v45  ;;  %v1600_v45 = vadd.f32 %v7498_v47, %v1453_v5 }
 0xdab   :  { %5603 = vmatprep.subr.bf16.mxu0 %v7293_v56  ;;  %5635 = vmatprep.subr.bf16.mxu1 %v7304_v58 }
 0xdae   :  { %5605 = vmatpush1.bf16.msra.mxu0 %v7306_v25  ;;  %5637 = vmatpush1.bf16.msra.mxu1 %v7315_v35 }
 0xdaf   :  { %5607 = vmatprep.subr.bf16.mxu0 %v7329_v57  ;;  %5639 = vmatprep.subr.bf16.mxu1 %v7340_v24 }
 0xdb2   :  { %5609 = vmatpush1.bf16.msra.mxu0 %v7342_v19  ;;  %5641 = vmatpush1.bf16.msra.mxu1 %v7351_v53 }
 0xdb3   :  { %5611 = vmatprep.subr.bf16.mxu0 %v7365_v30  ;;  %5643 = vmatprep.subr.bf16.mxu1 %v7376_v0  ;;  %v1457_v30 = vrot.slane %v7494_v18, %v7072_v12  ;;  %v1854_v0 = vrot.slane %v1841_v7, %v7058_v8  ;;  %v8763_v18 = vld [vmem:[#allocation18_spill] sm:$0xff] }
 0xdb6   :  { %5613 = vmatpush1.bf16.msra.mxu0 %v7378_v43  ;;  %5645 = vmatpush1.bf16.msra.mxu1 %v7390_v26  ;;  %v1602_v26 = vadd.f32 %v7505_v54, %v1457_v30  ;;  %v8764_v54 = vld [vmem:[#allocation21_spill] sm:$0xff]  ;;  %v8781_v30 = vld [vmem:[#allocation35_spill] sm:$0xff] }
 0xdb7   :  { %5615 = vmatprep.subr.bf16.mxu0 %v7403_v44  ;;  %5647 = vmatprep.subr.bf16.mxu1 %v7405_v48 }
 0xdba   :  { %5617 = vmatpush1.bf16.msra.mxu0 %v7417_v63  ;;  %5649 = vmatpush1.bf16.msra.mxu1 %v7430_v37 }
 0xdbb   :  { %5619 = vmatprep.subr.bf16.mxu0 %v7432_v41  ;;  %5651 = vmatprep.subr.bf16.mxu1 %v7443_v1 }
 0xdbe   :  { %5621 = vmatpush1.bf16.msra.mxu0 %v7455_v10  ;;  %5653 = vmatpush1.bf16.msra.mxu1 %v7459_v13 }
 0xdbf   :  { %5654 = vmatprep.subr.bf16.mxu0 %v8708_v40  ;;  %5678 = vmatprep.subr.bf16.mxu1 %v8708_v40 }
 0xe74   :  { %v1924_v17 = vpop.f32.mrb[16].mxu0  ;;  %v1995_v22 = vpop.f32.mrb[16].mxu1 }
 0xe75   :  { %v1925_v21 = vadd.f32 %v1924_v17, %v1846_v49  ;;  %v1926_v33 = vpop.f32.mrb[17].mxu0  ;;  %v4770_v38 = vpop.f32.mrb[17].mxu1  ;;  %v1996_v48 = vadd.f32 %v1995_v22, %v1854_v0  ;;  %v8782_v0 = vld [vmem:[#allocation36_spill] sm:$0xff] }
 0xe76   :  { %v1927_v56 = vadd.f32 %v1926_v33, %v1850_v29 }
 0xe77   :  { %v1999_v58 = vadd.f32 %v1925_v21, %v1531_v9 }
 0xe78   :  { %v2006_v25 = vadd.f32 %v1927_v56, %v1600_v45  ;;  %v8772_v45 = vld [vmem:[#allocation26_spill] sm:$0xff]  ;;  %v8773_v56 = vld [vmem:[#allocation27_spill] sm:$0xff] }
 0xe79   :  { %v4142_v35 = vmul.f32 -1.442695, %v1999_v58  ;;  %v8774_v58 = vld [vmem:[#allocation28_spill] sm:$0xff] }
 0xe7a   :  { %v4143_v57 = vmul.f32 -1.442695, %v2006_v25  ;;  %v8775_v25 = vld [vmem:[#allocation29_spill] sm:$0xff] }
 0xe7b   :  { %6173 = vpow2.f32 %v4142_v35  ;;  %v8776_v35 = vld [vmem:[#allocation30_spill] sm:$0xff] }
 0xe7c   :  { %6175 = vpow2.f32 %v4143_v57  ;;  %v8777_v57 = vld [vmem:[#allocation31_spill] sm:$0xff] }
 0xe85   :  { %v6174_v24 = vpop.eup %6173 }
 0xe86   :  { %v2003_v19 = vadd.f32 1.0, %v6174_v24  ;;  %v6176_v53 = vpop.eup %6175  ;;  %v8778_v24 = vld [vmem:[#allocation32_spill] sm:$0xff] }
 0xe87   :  { %v2010_v43 = vadd.f32 1.0, %v6176_v53  ;;  %v8780_v53 = vld [vmem:[#allocation34_spill] sm:$0xff] }
 0xe88   :  { %6177 = vrcp.f32 %v2003_v19  ;;  %v8779_v19 = vld [vmem:[#allocation33_spill] sm:$0xff] }
 0xe89   :  { %6179 = vrcp.f32 %v2010_v43 }
 0xe92   :  { %v6178_v44 = vpop.eup %6177 }
 0xe93   :  { %v2013_v63 = vmul.f32 %v6178_v44, %v1602_v26  ;;  %v6180_v41 = vpop.eup %6179  ;;  %v8783_v44 = vld [vmem:[#allocation37_spill] sm:$0xff] }
 0xe94   :  { %v2016_v1 = vsub.f32 1.0, %v6180_v41  ;;  %v2018_v47 = vmul.f32 %v6180_v41, %v7482_v16  ;;  %v8762_v16 = vld [vmem:[#allocation20_spill] sm:$0xff] }
 0xe95   :  { %v2014_v37 = vadd.f32 %v2013_v63, %v1996_v48  ;;  %v8784_v48 = vld [vmem:[#allocation38_spill] sm:$0xff] }
 0xe97   :  { %6181 = vtanh.f32 %v2014_v37 }
 0xea1   :  { %v6182_v10 = vpop.eup %6181 }
 0xea2   :  { %v2017_v13 = vmul.f32 %v6182_v10, %v2016_v1 }
 0xea4   :  { %v7757_v31 = vadd.f32 %v2018_v47, %v2017_v13  ;;  %v2673_v13 = vld [vmem:[%s8596_s4 + $0x38] sm:$0xff]  ;;  %v2666_v47 = vld [vmem:[%s8596_s4] sm:$0xff] }
 0xea6   :  { %2020 = vst [vmem:[#allocation9 + $0x2] sm:$0x1] %v7757_v31  ;;  %2172 = vmatmul.mubr.f32.vlgmr.msra.gmra.mrb[18].mxu0 %v7757_v31  ;;  %2243 = vmatmul.mubr.f32.vlgmr.msra.gmra.mrb[18].mxu1 %v7757_v31 }
 0xea7   :  { %5656 = vmatpush3.bf16.msra.mxu0 %v7517_v11  ;;  %4803 = vmatprep.mubr.msk.f32.mxu0 %vm6382_vm1, %v8707_v50  ;;  %v8765_v11 = vld [vmem:[#allocation16_spill] sm:$0xff] }
 0xea8   :  { %5657 = vmatprep.subr.bf16.mxu0 %v8708_v40  ;;  %5680 = vmatpush3.bf16.msra.mxu1 %v7588_v59  ;;  %v8769_v59 = vld [vmem:[#allocation17_spill] sm:$0xff] }
 0xea9   :  { %5681 = vmatprep.subr.bf16.mxu1 %v8708_v40  ;;  %4838 = vmatprep.mubr.msk.f32.mxu1 %vm6382_vm1, %v8707_v50 }
 0xeab   :  { %5659 = vmatpush3.bf16.msra.mxu0 %v7523_v61  ;;  %v8766_v61 = vld [vmem:[#allocation22_spill] sm:$0xff] }
 0xeac   :  { %5660 = vmatprep.subr.bf16.mxu0 %v8708_v40  ;;  %5683 = vmatpush3.bf16.msra.mxu1 %v7591_v34  ;;  %v8770_v34 = vld [vmem:[#allocation24_spill] sm:$0xff] }
 0xead   :  { %5684 = vmatprep.subr.bf16.mxu1 %v8708_v40 }
 0xeaf   :  { %5662 = vmatpush3.bf16.msra.mxu0 %v7533_v15  ;;  %v8767_v15 = vld [vmem:[#allocation19_spill] sm:$0xff] }
 0xeb0   :  { %5663 = vmatprep.subr.bf16.mxu0 %v8708_v40  ;;  %5686 = vmatpush3.bf16.msra.mxu1 %v7595_v6  ;;  %v8771_v6 = vld [vmem:[#allocation25_spill] sm:$0xff] }
 0xeb1   :  { %5687 = vmatprep.subr.bf16.mxu1 %v8708_v40 }
 0xeb3   :  { %5665 = vmatpush3.bf16.msra.mxu0 %v7543_v39  ;;  %v8768_v39 = vld [vmem:[#allocation23_spill] sm:$0xff] }
 0xeb4   :  { %5666 = vmatprep.subr.bf16.mxu0 %v8708_v40  ;;  %5689 = vmatpush3.bf16.msra.mxu1 %v8762_v16  ;;  %v2670_v16 = vld [vmem:[%s8596_s4 + $0x20] sm:$0xff] }
 0xeb5   :  { %5690 = vmatprep.subr.bf16.mxu1 %v8708_v40 }
 0xeb7   :  { %5668 = vmatpush3.bf16.msra.mxu0 %v8763_v18 }
 0xeb8   :  { %5669 = vmatprep.subr.bf16.mxu0 %v8708_v40  ;;  %5692 = vmatpush3.bf16.msra.mxu1 %v8764_v54  ;;  %v7876_v54 = vpack.c.bf16 %v2670_v16, %v2666_v47  ;;  %v2700_v47 = vld [vmem:[%s8596_s4 + $0x110] sm:$0xff] }
 0xeb9   :  { %5693 = vmatprep.subr.bf16.mxu1 %v8708_v40  ;;  %v2704_v16 = vld [vmem:[%s8596_s4 + $0x130] sm:$0xff] }
 0xebb   :  { %5671 = vmatpush3.bf16.msra.mxu0 %v8765_v11  ;;  %v2668_v11 = vld [vmem:[%s8596_s4 + $0x10] sm:$0xff] }
 0xebc   :  { %5672 = vmatprep.subr.bf16.mxu0 %v8708_v40  ;;  %5695 = vmatpush3.bf16.msra.mxu1 %v8766_v61  ;;  %v2672_v61 = vld [vmem:[%s8596_s4 + $0x30] sm:$0xff] }
 0xebd   :  { %5696 = vmatprep.subr.bf16.mxu1 %v8708_v40 }
 0xebf   :  { %5674 = vmatpush3.bf16.msra.mxu0 %v8767_v15  ;;  %v7885_v15 = vpack.c.bf16 %v2672_v61, %v2668_v11  ;;  %v8029_v11 = vpack.c.bf16 %v2704_v16, %v2700_v47  ;;  %v2707_v61 = vld [vmem:[%s8596_s4 + $0x148] sm:$0xff]  ;;  %v2726_v47 = vld [vmem:[%s8596_s4 + $0x1e0] sm:$0xff]  ;;  %v2724_v16 = vld [vmem:[%s8596_s4 + $0x1d0] sm:$0xff] }
 0xec0   :  { %5675 = vmatprep.subr.bf16.mxu0 %v8708_v40  ;;  %5698 = vmatpush3.bf16.msra.mxu1 %v8768_v39  ;;  %v2675_v39 = vld [vmem:[%s8596_s4 + $0x48] sm:$0xff] }
 0xec1   :  { %5699 = vmatprep.subr.bf16.mxu1 %v8708_v40 }
 0xec3   :  { %5677 = vmatpush3.bf16.msra.mxu0 %v8769_v59  ;;  %v2679_v59 = vld [vmem:[%s8596_s4 + $0x68] sm:$0xff] }
 0xec4   :  { %5701 = vmatpush3.bf16.msra.mxu1 %v8770_v34  ;;  %5703 = vmatprep.subr.bf16.mxu0 %v8771_v6  ;;  %v2677_v34 = vld [vmem:[%s8596_s4 + $0x58] sm:$0xff]  ;;  %v7899_v6 = vpack.c.bf16 %v2679_v59, %v2675_v39  ;;  %v2711_v39 = vld [vmem:[%s8596_s4 + $0x168] sm:$0xff] }
 0xec5   :  { %5734 = vmatprep.subr.bf16.mxu1 %v8708_v40  ;;  %v2709_v59 = vld [vmem:[%s8596_s4 + $0x158] sm:$0xff] }
 0xf79   :  { %v2173_v27 = vpop.f32.mrb[18].mxu0  ;;  %v7805_v51 = vpop.f32.mrb[18].mxu1 }
 0xf7a   :  { %v2174_v60 = vadd.f32 %v2173_v27, %v2090_v28  ;;  %v7810_v2 = vpop.f32.mrb[19].mxu0  ;;  %v7812_v7 = vpop.f32.mrb[19].mxu1  ;;  %v2681_v28 = vld [vmem:[%s8596_s4 + $0x78] sm:$0xff]  ;;  %v2674_v27 = vld [vmem:[%s8596_s4 + $0x40] sm:$0xff] }
 0xf7c   :  { %v2250_v3 = vadd.f32 %v2249_v42, %v2174_v60  ;;  %v2678_v42 = vld [vmem:[%s8596_s4 + $0x60] sm:$0xff]  ;;  %v7910_v60 = vpack.c.bf16 %v2681_v28, %v2677_v34  ;;  %v8043_v34 = vpack.c.bf16 %v2711_v39, %v2707_v61  ;;  %v2713_v28 = vld [vmem:[%s8596_s4 + $0x178] sm:$0xff]  ;;  %v2728_v61 = vld [vmem:[%s8596_s4 + $0x1f0] sm:$0xff] }
 0xf7e   :  { %v2251_v49 = vsel %vm315_vm0, %v2250_v3, -inf }
 0xf7f   :  { %2252 = vmax.xlane.f32.xlu0 %v2251_v49  ;;  %v2676_v49 = vld [vmem:[%s8596_s4 + $0x50] sm:$0xff] }
0x100c   :  { %v2253_v5 = vpop.xlane.xlu0 %2252 }
0x100d   :  { %v2254_v29 = vsub.f32 %v2250_v3, %v2253_v5  ;;  %v7912_v3 = vpack.c.bf16 %v2678_v42, %v2674_v27  ;;  %v2680_v5 = vld [vmem:[%s8596_s4 + $0x70] sm:$0xff]  ;;  %v2706_v27 = vld [vmem:[%s8596_s4 + $0x140] sm:$0xff] }
0x100e   :  { %v2710_v42 = vld [vmem:[%s8596_s4 + $0x160] sm:$0xff] }
0x100f   :  { %v2255_v17 = vmul.f32 1.442695, %v2254_v29  ;;  %v7921_v29 = vpack.c.bf16 %v2680_v5, %v2676_v49  ;;  %v8054_v49 = vpack.c.bf16 %v2713_v28, %v2709_v59  ;;  %v8056_v5 = vpack.c.bf16 %v2710_v42, %v2706_v27  ;;  %v2486_v28 = vld [vmem:[%s8600_s8] sm:$0x7] }
0x1010   :  { %v8137_v59 = vpack.c.bf16 %v2728_v61, %v2724_v16  ;;  %v2094_v27 = vrot.slane %v7801_v55, %v7055_v4  ;;  %v2491_v42 = vrot.slane %v2486_v28, %v6647_v52  ;;  %v2102_v61 = vrot.slane %v7801_v55, %v7072_v12 }
0x1011   :  { %6183 = vpow2.f32 %v2255_v17  ;;  %v2683_v17 = vld [vmem:[%s8596_s4 + $0x88] sm:$0xff] }
0x101b   :  { %v6184_v22 = vpop.eup %6183 }
0x101c   :  { %v2257_v9 = vsel %vm315_vm0, %v6184_v22, 0.0 }
0x101d   :  { %2258 = vadd.xlane.f32.xlu1 %v2257_v9  ;;  %v2685_v9 = vld [vmem:[%s8596_s4 + $0x98] sm:$0xff] }
0x10aa   :  { %v2259_v21 = vpop.xlane.xlu1 %2258 }
0x10ab   :  { %6185 = vrcp.f32 %v2259_v21 }
0x10b5   :  { %v6186_v33 = vpop.eup %6185 }
0x10b6   :  { %v2261_v38 = vmul.f32 %v6186_v33, %v6184_v22  ;;  %v2687_v22 = vld [vmem:[%s8596_s4 + $0xa8] sm:$0xff]  ;;  %v2689_v33 = vld [vmem:[%s8596_s4 + $0xb8] sm:$0xff] }
0x10b7   :  { %v7935_v21 = vpack.c.bf16 %v2687_v22, %v2683_v17  ;;  %v2708_v17 = vld [vmem:[%s8596_s4 + $0x150] sm:$0xff] }
0x10b8   :  { %2262 = vst [vmem:[#allocation11 + $0x3] sm:$0x1] %v2261_v38  ;;  %4804 = vmatmul.mubr.f32.vlgmr.msra.gmra.mrb[20].mxu0 %v2261_v38  ;;  %v2682_v38 = vld [vmem:[%s8596_s4 + $0x80] sm:$0xff]  ;;  %v2712_v22 = vld [vmem:[%s8596_s4 + $0x170] sm:$0xff] }
0x10b9   :  { %5705 = vmatpush1.bf16.msra.mxu0 %v8772_v45  ;;  %2567 = vmatprep.mubr.f32.mxu0 %v8707_v50  ;;  %v2686_v45 = vld [vmem:[%s8596_s4 + $0xa0] sm:$0xff] }
0x10ba   :  { %5707 = vmatprep.subr.bf16.mxu0 %v8773_v56  ;;  %v7946_v56 = vpack.c.bf16 %v2689_v33, %v2685_v9  ;;  %v2715_v9 = vld [vmem:[%s8596_s4 + $0x188] sm:$0xff]  ;;  %v8068_v33 = vpack.c.bf16 %v2712_v22, %v2708_v17  ;;  %v2098_v17 = vrot.slane %v7801_v55, %v7058_v8  ;;  %v2495_v22 = vrot.slane %v2486_v28, %v7055_v4  ;;  %v8172_v55 = vld [vmem:[%s8597_s5] sm:$0xf] }
0x10bd   :  { %5709 = vmatpush1.bf16.msra.mxu0 %v8774_v58  ;;  %v7948_v58 = vpack.c.bf16 %v2686_v45, %v2682_v38  ;;  %v2719_v38 = vld [vmem:[%s8596_s4 + $0x1a8] sm:$0xff]  ;;  %v2717_v45 = vld [vmem:[%s8596_s4 + $0x198] sm:$0xff] }
0x10be   :  { %5711 = vmatprep.subr.bf16.mxu0 %v8775_v25  ;;  %v2684_v25 = vld [vmem:[%s8596_s4 + $0x90] sm:$0xff] }
0x10c1   :  { %5713 = vmatpush1.bf16.msra.mxu0 %v8776_v35  ;;  %v2688_v35 = vld [vmem:[%s8596_s4 + $0xb0] sm:$0xff] }
0x10c2   :  { %5715 = vmatprep.subr.bf16.mxu0 %v8777_v57  ;;  %v7957_v57 = vpack.c.bf16 %v2688_v35, %v2684_v25  ;;  %v2721_v25 = vld [vmem:[%s8596_s4 + $0x1b8] sm:$0xff]  ;;  %v8081_v35 = vpack.c.bf16 %v2719_v38, %v2715_v9 }
0x10c5   :  { %5717 = vmatpush1.bf16.msra.mxu0 %v8778_v24  ;;  %v2691_v24 = vld [vmem:[%s8596_s4 + $0xc8] sm:$0xff] }
0x10c6   :  { %5719 = vmatprep.subr.bf16.mxu0 %v8779_v19  ;;  %v2695_v19 = vld [vmem:[%s8596_s4 + $0xe8] sm:$0xff] }
0x10c9   :  { %5721 = vmatpush1.bf16.msra.mxu0 %v8780_v53  ;;  %v2693_v53 = vld [vmem:[%s8596_s4 + $0xd8] sm:$0xff] }
0x10ca   :  { %5723 = vmatprep.subr.bf16.mxu0 %v8781_v30  ;;  %v7971_v30 = vpack.c.bf16 %v2695_v19, %v2691_v24  ;;  %v8083_v24 = vpack.c.bf16 %v2721_v25, %v2717_v45  ;;  %v2714_v19 = vld [vmem:[%s8596_s4 + $0x180] sm:$0xff]  ;;  %v2176_v45 = vadd.f32 %v7810_v2, %v2094_v27  ;;  %v2499_v2 = vrot.slane %v2486_v28, %v7058_v8 }
0x10cd   :  { %5725 = vmatpush1.bf16.msra.mxu0 %v7653_v32  ;;  %v8785_v32 = vld [vmem:[#allocation39_spill] sm:$0xff] }
0x10ce   :  { %5727 = vmatprep.subr.bf16.mxu0 %v7656_v20  ;;  %v8786_v20 = vld [vmem:[#allocation40_spill] sm:$0xff] }
0x10d1   :  { %5729 = vmatpush1.bf16.msra.mxu0 %v8782_v0  ;;  %v2697_v0 = vld [vmem:[%s8596_s4 + $0xf8] sm:$0xff] }
0x10d2   :  { %5731 = vmatprep.subr.bf16.mxu0 %v7693_v14  ;;  %v2349_v14 = vld [vmem:[%s8593_s1 + $0x3] sm:$0x1] }
0x10d5   :  { %5733 = vmatpush1.bf16.msra.mxu0 %v7695_v62  ;;  %v8787_v62 = vld [vmem:[#allocation41_spill] sm:$0xff] }
0x118b   :  { %v2345_v43 = vpop.f32.mrb[20].mxu0 }
0x118c   :  { %v4805_v26 = vpop.f32.mrb[21].mxu0  ;;  %4839 = vmatmul.mubr.f32.vlgmr.msra.gmra.mrb[20].mxu1 %v2345_v43  ;;  %v2690_v43 = vld [vmem:[%s8596_s4 + $0xc0] sm:$0xff] }
0x118d   :  { %5736 = vmatpush3.bf16.msra.mxu1 %v8783_v44  ;;  %4873 = vmatprep.mubr.msk.f32.mxu1 %vm6382_vm1, %v8707_v50  ;;  %v2694_v26 = vld [vmem:[%s8596_s4 + $0xe0] sm:$0xff]  ;;  %v7982_v44 = vpack.c.bf16 %v2697_v0, %v2693_v53  ;;  %v2716_v0 = vld [vmem:[%s8596_s4 + $0x190] sm:$0xff] }
0x118e   :  { %5737 = vmatprep.subr.bf16.mxu1 %v8708_v40  ;;  %v2718_v53 = vld [vmem:[%s8596_s4 + $0x1a0] sm:$0xff] }
0x1191   :  { %5739 = vmatpush3.bf16.msra.mxu1 %v8784_v48  ;;  %v7984_v48 = vpack.c.bf16 %v2694_v26, %v2690_v43  ;;  %v8095_v43 = vpack.c.bf16 %v2718_v53, %v2714_v19  ;;  %v2720_v26 = vld [vmem:[%s8596_s4 + $0x1b0] sm:$0xff] }
0x1192   :  { %5740 = vmatprep.subr.bf16.mxu1 %v8708_v40 }
0x1195   :  { %5742 = vmatpush3.bf16.msra.mxu1 %v8785_v32  ;;  %v2692_v32 = vld [vmem:[%s8596_s4 + $0xd0] sm:$0xff] }
0x1196   :  { %5743 = vmatprep.subr.bf16.mxu1 %v8708_v40 }
0x1199   :  { %5745 = vmatpush3.bf16.msra.mxu1 %v8786_v20  ;;  %v2696_v20 = vld [vmem:[%s8596_s4 + $0xf0] sm:$0xff] }
0x119a   :  { %5746 = vmatprep.subr.bf16.mxu1 %v8708_v40 }
0x119d   :  { %5748 = vmatpush3.bf16.msra.mxu1 %v8787_v62  ;;  %v7993_v62 = vpack.c.bf16 %v2696_v20, %v2692_v32  ;;  %v2723_v32 = vld [vmem:[%s8596_s4 + $0x1c8] sm:$0xff] }
0x119e   :  { %5749 = vmatprep.subr.bf16.mxu1 %v8708_v40  ;;  %v2727_v20 = vld [vmem:[%s8596_s4 + $0x1e8] sm:$0xff] }
0x11a1   :  { %5751 = vmatpush3.bf16.msra.mxu1 %v7684_v23  ;;  %v2667_v23 = vld [vmem:[%s8596_s4 + $0x8] sm:$0xff] }
0x11a2   :  { %5752 = vmatprep.subr.bf16.mxu1 %v8708_v40 }
0x11a5   :  { %5754 = vmatpush3.bf16.msra.mxu1 %v7688_v46  ;;  %v2671_v46 = vld [vmem:[%s8596_s4 + $0x28] sm:$0xff] }
0x11a6   :  { %5755 = vmatprep.subr.bf16.mxu1 %v8708_v40  ;;  %v7863_v10 = vpack.c.bf16 %v2671_v46, %v2667_v23  ;;  %v2698_v23 = vld [vmem:[%s8596_s4 + $0x100] sm:$0xff] }
0x11a7   :  { %v2702_v46 = vld [vmem:[%s8596_s4 + $0x120] sm:$0xff] }
0x11a8   :  { %5759 = vmatprep.subr.bf16.mxu0 %v7863_v10 }
0x11a9   :  { %5757 = vmatpush3.bf16.msra.mxu1 %v7698_v36  ;;  %v2669_v36 = vld [vmem:[%s8596_s4 + $0x18] sm:$0xff] }
0x11aa   :  { %v7874_v18 = vpack.c.bf16 %v2673_v13, %v2669_v36  ;;  %v8020_v13 = vpack.c.bf16 %v2702_v46, %v2698_v23  ;;  %v2722_v23 = vld [vmem:[%s8596_s4 + $0x1c0] sm:$0xff] }
0x11ab   :  { %v8133_v39 = vpack.c.bf16 %v2726_v47, %v2722_v23 }
0x11ac   :  { %5791 = vmatprep.subr.bf16.mxu1 %v7874_v18 }
0x125f   :  { %v2432_v63 = vpop.f32.mrb[20].mxu1 }
0x1260   :  { %v2436_v37 = vadd.f32 %v2432_v63, %v2349_v14  ;;  %v4840_v41 = vpop.f32.mrb[21].mxu1  ;;  %v2699_v14 = vld [vmem:[%s8596_s4 + $0x108] sm:$0xff] }
0x1261   :  { %v2703_v63 = vld [vmem:[%s8596_s4 + $0x128] sm:$0xff] }
0x1262   :  { %v2437_v1 = vmax.f32 %v2436_v37, 0.0  ;;  %v2701_v37 = vld [vmem:[%s8596_s4 + $0x118] sm:$0xff]  ;;  %v8007_v41 = vpack.c.bf16 %v2703_v63, %v2699_v14  ;;  %v8108_v14 = vpack.c.bf16 %v2720_v26, %v2716_v0  ;;  %v8110_v63 = vpack.c.bf16 %v2727_v20, %v2723_v32 }
0x1263   :  { %v2245_v0 = vadd.f32 %v7805_v51, %v2098_v17 }
0x1264   :  { %2568 = vmatmul.mubr.f32.vlgmr.msra.gmra.mrb[22].mxu0 %v2437_v1  ;;  %4874 = vmatmul.mubr.f32.vlgmr.msra.gmra.mrb[22].mxu1 %v2437_v1  ;;  %v2705_v1 = vld [vmem:[%s8596_s4 + $0x138] sm:$0xff] }
0x1265   :  { %2816 = vmatprep.mubr.f32.mxu0 %v8707_v50  ;;  %2887 = vmatprep.mubr.f32.mxu1 %v8707_v50  ;;  %v8018_v36 = vpack.c.bf16 %v2705_v1, %v2701_v37  ;;  %v2725_v37 = vld [vmem:[%s8596_s4 + $0x1d8] sm:$0xff] }
0x1266   :  { %5761 = vmatpush1.bf16.msra.mxu0 %v7876_v54  ;;  %5793 = vmatpush1.bf16.msra.mxu1 %v7885_v15  ;;  %v2729_v1 = vld [vmem:[%s8596_s4 + $0x1f8] sm:$0xff] }
0x1267   :  { %5763 = vmatprep.subr.bf16.mxu0 %v7899_v6  ;;  %5795 = vmatprep.subr.bf16.mxu1 %v7910_v60  ;;  %v8121_v46 = vpack.c.bf16 %v2729_v1, %v2725_v37 }
0x126a   :  { %5765 = vmatpush1.bf16.msra.mxu0 %v7912_v3  ;;  %5797 = vmatpush1.bf16.msra.mxu1 %v7921_v29 }
0x126b   :  { %5767 = vmatprep.subr.bf16.mxu0 %v7935_v21  ;;  %5799 = vmatprep.subr.bf16.mxu1 %v7946_v56 }
0x126e   :  { %5769 = vmatpush1.bf16.msra.mxu0 %v7948_v58  ;;  %5801 = vmatpush1.bf16.msra.mxu1 %v7957_v57 }
0x126f   :  { %5771 = vmatprep.subr.bf16.mxu0 %v7971_v30  ;;  %5803 = vmatprep.subr.bf16.mxu1 %v7982_v44 }
0x1272   :  { %5773 = vmatpush1.bf16.msra.mxu0 %v7984_v48  ;;  %5805 = vmatpush1.bf16.msra.mxu1 %v7993_v62 }
0x1273   :  { %5775 = vmatprep.subr.bf16.mxu0 %v8007_v41  ;;  %5807 = vmatprep.subr.bf16.mxu1 %v8018_v36 }
0x1276   :  { %5777 = vmatpush1.bf16.msra.mxu0 %v8020_v13  ;;  %5809 = vmatpush1.bf16.msra.mxu1 %v8029_v11 }
0x1277   :  { %5779 = vmatprep.subr.bf16.mxu0 %v8043_v34  ;;  %5811 = vmatprep.subr.bf16.mxu1 %v8054_v49 }
0x127a   :  { %5781 = vmatpush1.bf16.msra.mxu0 %v8056_v5  ;;  %5813 = vmatpush1.bf16.msra.mxu1 %v8068_v33 }
0x127b   :  { %5783 = vmatprep.subr.bf16.mxu0 %v8081_v35  ;;  %5815 = vmatprep.subr.bf16.mxu1 %v8083_v24 }
0x127e   :  { %5785 = vmatpush1.bf16.msra.mxu0 %v8095_v43  ;;  %5817 = vmatpush1.bf16.msra.mxu1 %v8108_v14 }
0x127f   :  { %5787 = vmatprep.subr.bf16.mxu0 %v8110_v63  ;;  %5819 = vmatprep.subr.bf16.mxu1 %v8121_v46 }
0x1282   :  { %5789 = vmatpush1.bf16.msra.mxu0 %v8133_v39  ;;  %5821 = vmatpush1.bf16.msra.mxu1 %v8137_v59 }
0x1283   :  { %5822 = vmatprep.subr.bf16.mxu0 %v8708_v40  ;;  %5846 = vmatprep.subr.bf16.mxu1 %v8708_v40 }
0x1337   :  { %v2569_v9 = vpop.f32.mrb[22].mxu0  ;;  %v2640_v38 = vpop.f32.mrb[22].mxu1 }
0x1338   :  { %v2570_v25 = vadd.f32 %v2569_v9, %v2491_v42  ;;  %v2571_v19 = vpop.f32.mrb[23].mxu0  ;;  %v4875_v53 = vpop.f32.mrb[23].mxu1  ;;  %v2247_v42 = vadd.f32 %v7812_v7, %v2102_v61  ;;  %v2641_v17 = vadd.f32 %v2640_v38, %v2499_v2  ;;  %v2894_v38 = vld [vmem:[%s8592_s0 + $0x4] sm:$0x1]  ;;  %v2910_v61 = vld [vmem:[%s8595_s3 + $0x10] sm:$0xff] }
0x1339   :  { %v2572_v26 = vadd.f32 %v2571_v19, %v2495_v22 }
0x133a   :  { %v2644_v32 = vadd.f32 %v2570_v25, %v2176_v45 }
0x133b   :  { %v2651_v20 = vadd.f32 %v2572_v26, %v2245_v0 }
0x133c   :  { %v4144_v37 = vmul.f32 -1.442695, %v2644_v32 }
0x133d   :  { %v4145_v1 = vmul.f32 -1.442695, %v2651_v20 }
0x133e   :  { %6187 = vpow2.f32 %v4144_v37 }
0x133f   :  { %6189 = vpow2.f32 %v4145_v1 }
0x1348   :  { %v6188_v23 = vpop.eup %6187 }
0x1349   :  { %v2648_v47 = vadd.f32 1.0, %v6188_v23  ;;  %v6190_v16 = vpop.eup %6189 }
0x134a   :  { %v2655_v27 = vadd.f32 1.0, %v6190_v16  ;;  %v2909_v16 = vld [vmem:[%s8595_s3 + $0x8] sm:$0xff] }
0x134b   :  { %6191 = vrcp.f32 %v2648_v47  ;;  %v2908_v47 = vld [vmem:[%s8595_s3] sm:$0xff] }
0x134c   :  { %6193 = vrcp.f32 %v2655_v27  ;;  %v8195_v2 = vpack.c.bf16 %v2909_v16, %v2908_v47  ;;  %v2911_v27 = vld [vmem:[%s8595_s3 + $0x18] sm:$0xff]  ;;  %v2918_v47 = vld [vmem:[%s8595_s3 + $0x50] sm:$0xff] }
0x134d   :  { %v2919_v16 = vld [vmem:[%s8595_s3 + $0x58] sm:$0xff] }
0x1355   :  { %v6192_v51 = vpop.eup %6191 }
0x1356   :  { %v2658_v22 = vmul.f32 %v6192_v51, %v2247_v42  ;;  %v6194_v45 = vpop.eup %6193  ;;  %v8201_v42 = vpack.c.bf16 %v2911_v27, %v2910_v61  ;;  %v2912_v51 = vld [vmem:[%s8595_s3 + $0x20] sm:$0xff]  ;;  %v8243_v61 = vpack.c.bf16 %v2919_v16, %v2918_v47  ;;  %v2921_v27 = vld [vmem:[%s8595_s3 + $0x68] sm:$0xff] }
0x1357   :  { %v2661_v25 = vsub.f32 1.0, %v6194_v45  ;;  %v2663_v0 = vmul.f32 %v6194_v45, %v7757_v31  ;;  %v2735_v31 = vrot.slane %v8172_v55, %v6647_v52  ;;  %v2915_v45 = vld [vmem:[%s8595_s3 + $0x38] sm:$0xff]  ;;  %v2999_v47 = vld [vmem:[#allocation2 + $0x20] sm:$0xff]  ;;  %v3000_v16 = vld [vmem:[#allocation2 + $0x28] sm:$0xff] }
0x1358   :  { %v2659_v9 = vadd.f32 %v2658_v22, %v2641_v17  ;;  %v2913_v17 = vld [vmem:[%s8595_s3 + $0x28] sm:$0xff]  ;;  %8789 = vst [vmem:[#allocation18_spill] sm:$0xff] %v8243_v61 }
0x1359   :  { %v8211_v22 = vpack.c.bf16 %v2913_v17, %v2912_v51  ;;  %v2922_v17 = vld [vmem:[%s8595_s3 + $0x70] sm:$0xff] }
0x135a   :  { %6195 = vtanh.f32 %v2659_v9  ;;  %v2914_v9 = vld [vmem:[%s8595_s3 + $0x30] sm:$0xff] }
0x1364   :  { %v6196_v19 = vpop.eup %6195 }
0x1365   :  { %v2662_v53 = vmul.f32 %v6196_v19, %v2661_v25  ;;  %v8221_v25 = vpack.c.bf16 %v2915_v45, %v2914_v9  ;;  %v2916_v19 = vld [vmem:[%s8595_s3 + $0x40] sm:$0xff]  ;;  %v2923_v9 = vld [vmem:[%s8595_s3 + $0x78] sm:$0xff] }
0x1366   :  { %v8262_v45 = vpack.c.bf16 %v2923_v9, %v2922_v17  ;;  %v3002_v17 = vld [vmem:[#allocation2 + $0x38] sm:$0xff] }
0x1367   :  { %v8160_v26 = vadd.f32 %v2663_v0, %v2662_v53  ;;  %v2917_v53 = vld [vmem:[%s8595_s3 + $0x48] sm:$0xff] }
0x1368   :  { %v8231_v0 = vpack.c.bf16 %v2917_v53, %v2916_v19  ;;  %8791 = vst [vmem:[#allocation16_spill] sm:$0xff] %v8262_v45  ;;  %v2995_v19 = vld [vmem:[#allocation2] sm:$0xff]  ;;  %v2996_v53 = vld [vmem:[#allocation2 + $0x8] sm:$0xff] }
0x1369   :  { %2665 = vst [vmem:[#allocation9 + $0x3] sm:$0x1] %v8160_v26  ;;  %2817 = vmatmul.mubr.f32.vlgmr.msra.gmra.mrb[24].mxu0 %v8160_v26  ;;  %2888 = vmatmul.mubr.f32.vlgmr.msra.gmra.mrb[24].mxu1 %v8160_v26 }
0x136a   :  { %4908 = vmatprep.mubr.msk.f32.mxu0 %vm6382_vm1, %v8707_v50  ;;  %4943 = vmatprep.mubr.msk.f32.mxu1 %vm6382_vm1, %v8707_v50  ;;  %8788 = vst [vmem:[#allocation20_spill] sm:$0xff] %v8231_v0 }
0x136b   :  { %5824 = vmatpush3.bf16.msra.mxu0 %v8195_v2 }
0x136c   :  { %5825 = vmatprep.subr.bf16.mxu0 %v8708_v40 }
0x136f   :  { %5827 = vmatpush3.bf16.msra.mxu0 %v8201_v42 }
0x1370   :  { %5828 = vmatprep.subr.bf16.mxu0 %v8708_v40 }
0x1373   :  { %5830 = vmatpush3.bf16.msra.mxu0 %v8211_v22 }
0x1374   :  { %5831 = vmatprep.subr.bf16.mxu0 %v8708_v40 }
0x1377   :  { %5833 = vmatpush3.bf16.msra.mxu0 %v8221_v25 }
0x1378   :  { %5834 = vmatprep.subr.bf16.mxu0 %v8708_v40 }
0x137b   :  { %5836 = vmatpush3.bf16.msra.mxu0 %v8231_v0  ;;  %v3089_v0 = vld [vmem:[#allocation5 + $0x30] sm:$0xff] }
0x137c   :  { %5837 = vmatprep.subr.bf16.mxu0 %v8708_v40 }
0x137f   :  { %5839 = vmatpush3.bf16.msra.mxu0 %v8243_v61  ;;  %v3083_v61 = vld [vmem:[#allocation5] sm:$0xff] }
0x1380   :  { %5840 = vmatprep.subr.bf16.mxu0 %v8708_v40 }
0x143c   :  { %v2818_v7 = vpop.f32.mrb[24].mxu0  ;;  %v8176_v28 = vpop.f32.mrb[24].mxu1 }
0x143d   :  { %v2819_v32 = vadd.f32 %v2818_v7, %v2735_v31  ;;  %v8181_v20 = vpop.f32.mrb[25].mxu0  ;;  %v8183_v37 = vpop.f32.mrb[25].mxu1 }
0x143f   :  { %v2895_v1 = vadd.f32 %v2894_v38, %v2819_v32 }
0x1441   :  { %v2896_v23 = vsel %vm315_vm0, %v2895_v1, -inf }
0x1442   :  { %2897 = vmax.xlane.f32.xlu0 %v2896_v23 }
0x14cf   :  { %v2898_v31 = vpop.xlane.xlu0 %2897 }
0x14d0   :  { %v2899_v7 = vsub.f32 %v2895_v1, %v2898_v31  ;;  %v2920_v1 = vld [vmem:[%s8595_s3 + $0x60] sm:$0xff]  ;;  %v2997_v31 = vld [vmem:[#allocation2 + $0x10] sm:$0xff] }
0x14d1   :  { %v8252_v51 = vpack.c.bf16 %v2921_v27, %v2920_v1  ;;  %v8273_v1 = vpack.c.bf16 %v3000_v16, %v2999_v47  ;;  %v3001_v27 = vld [vmem:[#allocation2 + $0x30] sm:$0xff]  ;;  %v3006_v47 = vld [vmem:[#allocation2 + $0x58] sm:$0xff] }
0x14d2   :  { %v2900_v38 = vmul.f32 1.442695, %v2899_v7  ;;  %v8266_v7 = vpack.c.bf16 %v2996_v53, %v2995_v19  ;;  %v8277_v9 = vpack.c.bf16 %v3002_v17, %v3001_v27  ;;  %v3003_v19 = vld [vmem:[#allocation2 + $0x40] sm:$0xff]  ;;  %v3004_v53 = vld [vmem:[#allocation2 + $0x48] sm:$0xff] }
0x14d3   :  { %8790 = vst [vmem:[#allocation21_spill] sm:$0xff] %v8252_v51  ;;  %5842 = vmatpush3.bf16.msra.mxu0 %v8252_v51  ;;  %v3007_v27 = vld [vmem:[#allocation2 + $0x60] sm:$0xff]  ;;  %v3008_v17 = vld [vmem:[#allocation2 + $0x68] sm:$0xff] }
0x14d4   :  { %6197 = vpow2.f32 %v2900_v38  ;;  %5843 = vmatprep.subr.bf16.mxu0 %v8708_v40  ;;  %v2998_v38 = vld [vmem:[#allocation2 + $0x18] sm:$0xff]  ;;  %5848 = vmatpush3.bf16.msra.mxu1 %v8266_v7  ;;  %8792 = vst [vmem:[#allocation22_spill] sm:$0xff] %v8277_v9 }
0x14d5   :  { %5849 = vmatprep.subr.bf16.mxu1 %v8708_v40 }
0x14d7   :  { %5845 = vmatpush3.bf16.msra.mxu0 %v8262_v45  ;;  %v8289_v45 = vpack.c.bf16 %v3008_v17, %v3007_v27  ;;  %v3084_v27 = vld [vmem:[#allocation5 + $0x8] sm:$0xff]  ;;  %v3087_v17 = vld [vmem:[#allocation5 + $0x20] sm:$0xff] }
0x14d9   :  { %8795 = vst [vmem:[#allocation17_spill] sm:$0xff] %v8289_v45 }
0x14de   :  { %v6198_v32 = vpop.eup %6197 }
0x14df   :  { %v2902_v23 = vsel %vm315_vm0, %v6198_v32, 0.0 }
0x14e0   :  { %2903 = vadd.xlane.f32.xlu1 %v2902_v23  ;;  %v8269_v23 = vpack.c.bf16 %v2998_v38, %v2997_v31  ;;  %v8281_v31 = vpack.c.bf16 %v3004_v53, %v3003_v19  ;;  %v3005_v38 = vld [vmem:[#allocation2 + $0x50] sm:$0xff]  ;;  %v3010_v53 = vld [vmem:[#allocation2 + $0x78] sm:$0xff] }
0x14e1   :  { %v8285_v16 = vpack.c.bf16 %v3006_v47, %v3005_v38  ;;  %v3009_v19 = vld [vmem:[#allocation2 + $0x70] sm:$0xff] }
0x14e2   :  { %5851 = vmatpush3.bf16.msra.mxu1 %v8269_v23  ;;  %8793 = vst [vmem:[#allocation19_spill] sm:$0xff] %v8281_v31  ;;  %v8293_v51 = vpack.c.bf16 %v3010_v53, %v3009_v19  ;;  %v3086_v19 = vld [vmem:[#allocation5 + $0x18] sm:$0xff] }
0x14e3   :  { %5852 = vmatprep.subr.bf16.mxu1 %v8708_v40  ;;  %8794 = vst [vmem:[#allocation23_spill] sm:$0xff] %v8285_v16  ;;  %v8301_v53 = vpack.c.bf16 %v3086_v19, %v3083_v61  ;;  %v3095_v61 = vld [vmem:[#allocation5 + $0x60] sm:$0xff]  ;;  %v3098_v19 = vld [vmem:[#allocation5 + $0x78] sm:$0xff] }
0x14e4   :  { %8796 = vst [vmem:[#allocation24_spill] sm:$0xff] %v8293_v51 }
0x14e5   :  { %8798 = vst [vmem:[#allocation26_spill] sm:$0xff] %v8301_v53 }
0x14e6   :  { %5854 = vmatpush3.bf16.msra.mxu1 %v8273_v1 }
0x14e7   :  { %5855 = vmatprep.subr.bf16.mxu1 %v8708_v40 }
0x14ea   :  { %5857 = vmatpush3.bf16.msra.mxu1 %v8277_v9  ;;  %v8313_v9 = vpack.c.bf16 %v3098_v19, %v3095_v61  ;;  %v3107_v61 = vld [vmem:[#allocation5 + $0xc0] sm:$0xff]  ;;  %v3110_v19 = vld [vmem:[#allocation5 + $0xd8] sm:$0xff] }
0x14eb   :  { %5858 = vmatprep.subr.bf16.mxu1 %v8708_v40 }
0x14ec   :  { %8802 = vst [vmem:[#allocation30_spill] sm:$0xff] %v8313_v9 }
0x14ee   :  { %5860 = vmatpush3.bf16.msra.mxu1 %v8281_v31  ;;  %v3090_v31 = vld [vmem:[#allocation5 + $0x38] sm:$0xff] }
0x14ef   :  { %5861 = vmatprep.subr.bf16.mxu1 %v8708_v40 }
0x14f2   :  { %5863 = vmatpush3.bf16.msra.mxu1 %v8285_v16 }
0x14f3   :  { %5864 = vmatprep.subr.bf16.mxu1 %v8708_v40 }
0x14f6   :  { %5866 = vmatpush3.bf16.msra.mxu1 %v8289_v45  ;;  %v8299_v45 = vpack.c.bf16 %v3087_v17, %v3084_v27  ;;  %v3099_v27 = vld [vmem:[#allocation5 + $0x80] sm:$0xff] }
0x14f7   :  { %5867 = vmatprep.subr.bf16.mxu1 %v8708_v40 }
0x14f8   :  { %8797 = vst [vmem:[#allocation25_spill] sm:$0xff] %v8299_v45  ;;  %5871 = vmatprep.subr.bf16.mxu0 %v8299_v45 }
0x14fa   :  { %5869 = vmatpush3.bf16.msra.mxu1 %v8293_v51  ;;  %v3093_v51 = vld [vmem:[#allocation5 + $0x50] sm:$0xff] }
0x14fb   :  { %5902 = vmatprep.subr.bf16.mxu1 %v8708_v40 }
0x156d   :  { %v2904_v38 = vpop.xlane.xlu1 %2903 }
0x156e   :  { %6199 = vrcp.f32 %v2904_v38  ;;  %v8304_v38 = vpack.c.bf16 %v3093_v51, %v3090_v31  ;;  %v3102_v51 = vld [vmem:[#allocation5 + $0x98] sm:$0xff]  ;;  %v3105_v31 = vld [vmem:[#allocation5 + $0xb0] sm:$0xff] }
0x156f   :  { %v8316_v45 = vpack.c.bf16 %v3105_v31, %v3102_v51  ;;  %v3114_v51 = vld [vmem:[#allocation5 + $0xf8] sm:$0xff]  ;;  %v3117_v31 = vld [vmem:[#allocation5 + $0x110] sm:$0xff] }
0x1570   :  { %8799 = vst [vmem:[#allocation27_spill] sm:$0xff] %v8304_v38 }
0x1571   :  { %8803 = vst [vmem:[#allocation31_spill] sm:$0xff] %v8316_v45 }
0x1578   :  { %v6200_v47 = vpop.eup %6199 }
0x1579   :  { %v2906_v16 = vmul.f32 %v6200_v47, %v6198_v32  ;;  %v3092_v32 = vld [vmem:[#allocation5 + $0x48] sm:$0xff] }
0x157a   :  { %v3096_v47 = vld [vmem:[#allocation5 + $0x68] sm:$0xff] }
0x157b   :  { %2907 = vst [vmem:[#allocation11 + $0x4] sm:$0x1] %v2906_v16  ;;  %4909 = vmatmul.mubr.f32.vlgmr.msra.gmra.mrb[26].mxu0 %v2906_v16  ;;  %v8307_v16 = vpack.c.bf16 %v3092_v32, %v3089_v0  ;;  %v8310_v17 = vpack.c.bf16 %v3099_v27, %v3096_v47  ;;  %v3101_v0 = vld [vmem:[#allocation5 + $0x90] sm:$0xff]  ;;  %v3104_v32 = vld [vmem:[#allocation5 + $0xa8] sm:$0xff]  ;;  %v3111_v27 = vld [vmem:[#allocation5 + $0xe0] sm:$0xff] }
0x157c   :  { %3212 = vmatprep.mubr.f32.mxu0 %v8707_v50  ;;  %5873 = vmatpush1.bf16.msra.mxu0 %v8301_v53  ;;  %v3108_v47 = vld [vmem:[#allocation5 + $0xc8] sm:$0xff] }
0x157d   :  { %8800 = vst [vmem:[#allocation28_spill] sm:$0xff] %v8307_v16  ;;  %5875 = vmatprep.subr.bf16.mxu0 %v8304_v38  ;;  %8801 = vst [vmem:[#allocation29_spill] sm:$0xff] %v8310_v17  ;;  %v8319_v38 = vpack.c.bf16 %v3104_v32, %v3101_v0  ;;  %v8322_v53 = vpack.c.bf16 %v3111_v27, %v3108_v47  ;;  %v3113_v0 = vld [vmem:[#allocation5 + $0xf0] sm:$0xff]  ;;  %v3116_v32 = vld [vmem:[#allocation5 + $0x108] sm:$0xff] }
0x157e   :  { %v3120_v47 = vld [vmem:[#allocation5 + $0x128] sm:$0xff]  ;;  %v3123_v27 = vld [vmem:[#allocation5 + $0x140] sm:$0xff] }
0x157f   :  { %8804 = vst [vmem:[#allocation32_spill] sm:$0xff] %v8319_v38  ;;  %8805 = vst [vmem:[#allocation33_spill] sm:$0xff] %v8322_v53 }
0x1580   :  { %5877 = vmatpush1.bf16.msra.mxu0 %v8307_v16  ;;  %v8328_v16 = vpack.c.bf16 %v3117_v31, %v3114_v51  ;;  %v3085_v51 = vld [vmem:[#allocation5 + $0x10] sm:$0xff]  ;;  %v3088_v31 = vld [vmem:[#allocation5 + $0x28] sm:$0xff] }
0x1581   :  { %5879 = vmatprep.subr.bf16.mxu0 %v8310_v17  ;;  %v8325_v17 = vpack.c.bf16 %v3110_v19, %v3107_v61  ;;  %v3119_v61 = vld [vmem:[#allocation5 + $0x120] sm:$0xff]  ;;  %v3122_v19 = vld [vmem:[#allocation5 + $0x138] sm:$0xff] }
0x1582   :  { %8807 = vst [vmem:[#allocation35_spill] sm:$0xff] %v8328_v16 }
0x1583   :  { %8806 = vst [vmem:[#allocation34_spill] sm:$0xff] %v8325_v17 }
0x1584   :  { %5881 = vmatpush1.bf16.msra.mxu0 %v8313_v9  ;;  %v8334_v9 = vpack.c.bf16 %v3123_v27, %v3120_v47  ;;  %v3097_v27 = vld [vmem:[#allocation5 + $0x70] sm:$0xff] }
0x1585   :  { %5883 = vmatprep.subr.bf16.mxu0 %v8316_v45  ;;  %v8331_v45 = vpack.c.bf16 %v3116_v32, %v3113_v0  ;;  %v8341_v0 = vpack.c.bf16 %v3088_v31, %v3085_v51  ;;  %v3091_v32 = vld [vmem:[#allocation5 + $0x40] sm:$0xff]  ;;  %v3112_v31 = vld [vmem:[#allocation5 + $0xe8] sm:$0xff] }
0x1586   :  { %v3103_v51 = vld [vmem:[#allocation5 + $0xa0] sm:$0xff] }
0x1587   :  { %8809 = vst [vmem:[#allocation37_spill] sm:$0xff] %v8341_v0 }
0x1588   :  { %5885 = vmatpush1.bf16.msra.mxu0 %v8319_v38 }
0x1589   :  { %5887 = vmatprep.subr.bf16.mxu0 %v8322_v53  ;;  %v8337_v53 = vpack.c.bf16 %v3122_v19, %v3119_v61  ;;  %v3100_v61 = vld [vmem:[#allocation5 + $0x88] sm:$0xff] }
0x158a   :  { %v8350_v19 = vpack.c.bf16 %v3100_v61, %v3097_v27  ;;  %v3115_v27 = vld [vmem:[#allocation5 + $0x100] sm:$0xff]  ;;  %v3118_v61 = vld [vmem:[#allocation5 + $0x118] sm:$0xff] }
0x158b   :  { %8808 = vst [vmem:[#allocation36_spill] sm:$0xff] %v8337_v53 }
0x158c   :  { %5889 = vmatpush1.bf16.msra.mxu0 %v8325_v17  ;;  %8811 = vst [vmem:[#allocation39_spill] sm:$0xff] %v8350_v19 }
0x158d   :  { %5891 = vmatprep.subr.bf16.mxu0 %v8328_v16  ;;  %v3094_v16 = vld [vmem:[#allocation5 + $0x58] sm:$0xff] }
0x158e   :  { %v8344_v47 = vpack.c.bf16 %v3094_v16, %v3091_v32  ;;  %v3109_v16 = vld [vmem:[#allocation5 + $0xd0] sm:$0xff] }
0x158f   :  { %v8358_v32 = vpack.c.bf16 %v3112_v31, %v3109_v16  ;;  %v3126_v16 = vld [vmem:[#allocation5 + $0x158] sm:$0xff]  ;;  %v3129_v31 = vld [vmem:[#allocation5 + $0x170] sm:$0xff] }
0x1590   :  { %5893 = vmatpush1.bf16.msra.mxu0 %v8331_v45  ;;  %8810 = vst [vmem:[#allocation38_spill] sm:$0xff] %v8344_v47 }
0x1591   :  { %5895 = vmatprep.subr.bf16.mxu0 %v8334_v9  ;;  %8813 = vst [vmem:[#allocation41_spill] sm:$0xff] %v8358_v32 }
0x1594   :  { %5897 = vmatpush1.bf16.msra.mxu0 %v8337_v53  ;;  %v3130_v53 = vld [vmem:[#allocation5 + $0x178] sm:$0xff] }
0x164e   :  { %v2990_v17 = vpop.f32.mrb[26].mxu0 }
0x164f   :  { %v4910_v38 = vpop.f32.mrb[27].mxu0  ;;  %4944 = vmatmul.mubr.f32.vlgmr.msra.gmra.mrb[26].mxu1 %v2990_v17 }
0x1650   :  { %5904 = vmatpush3.bf16.msra.mxu1 %v8341_v0  ;;  %4978 = vmatprep.mubr.msk.f32.mxu1 %vm6382_vm1, %v8707_v50  ;;  %v3106_v38 = vld [vmem:[#allocation5 + $0xb8] sm:$0xff] }
0x1651   :  { %5905 = vmatprep.subr.bf16.mxu1 %v8708_v40  ;;  %v8354_v17 = vpack.c.bf16 %v3106_v38, %v3103_v51  ;;  %v3121_v51 = vld [vmem:[#allocation5 + $0x130] sm:$0xff]  ;;  %v3124_v38 = vld [vmem:[#allocation5 + $0x148] sm:$0xff] }
0x1653   :  { %8812 = vst [vmem:[#allocation40_spill] sm:$0xff] %v8354_v17 }
0x1654   :  { %5907 = vmatpush3.bf16.msra.mxu1 %v8344_v47  ;;  %v8362_v47 = vpack.c.bf16 %v3118_v61, %v3115_v27  ;;  %v3125_v27 = vld [vmem:[#allocation5 + $0x150] sm:$0xff]  ;;  %v3128_v61 = vld [vmem:[#allocation5 + $0x168] sm:$0xff] }
0x1655   :  { %5908 = vmatprep.subr.bf16.mxu1 %v8708_v40  ;;  %v8373_v0 = vpack.c.bf16 %v3128_v61, %v3125_v27 }
0x1658   :  { %5910 = vmatpush3.bf16.msra.mxu1 %v8350_v19  ;;  %v8366_v19 = vpack.c.bf16 %v3124_v38, %v3121_v51  ;;  %v2994_v38 = vld [vmem:[%s8593_s1 + $0x4] sm:$0x1] }
0x1659   :  { %5911 = vmatprep.subr.bf16.mxu1 %v8708_v40 }
0x165c   :  { %5913 = vmatpush3.bf16.msra.mxu1 %v8354_v17  ;;  %v8371_v17 = vpack.c.bf16 %v3129_v31, %v3126_v16 }
0x165d   :  { %5914 = vmatprep.subr.bf16.mxu1 %v8708_v40 }
0x165e   :  { %5899 = vmatprep.subr.bf16.mxu0 %v8371_v17 }
0x165f   :  { %5901 = vmatpush1.bf16.msra.mxu0 %v8373_v0 }
0x1660   :  { %5916 = vmatpush3.bf16.msra.mxu1 %v8358_v32  ;;  %v3127_v32 = vld [vmem:[#allocation5 + $0x160] sm:$0xff]  ;;  %5927 = vmatprep.subr.bf16.mxu0 %v7863_v10 }
0x1661   :  { %5917 = vmatprep.subr.bf16.mxu1 %v8708_v40  ;;  %v8376_v51 = vpack.c.bf16 %v3130_v53, %v3127_v32  ;;  %v3131_v10 = vld [vmem:[%s8600_s8] sm:$0x7] }
0x1662   :  { %v8479_v53 = vld [vmem:[%s8597_s5] sm:$0xf] }
0x1663   :  { %v3380_v32 = vrot.slane %v8479_v53, %v6647_v52 }
0x1664   :  { %5919 = vmatpush3.bf16.msra.mxu1 %v8362_v47 }
0x1665   :  { %5920 = vmatprep.subr.bf16.mxu1 %v8708_v40 }
0x1668   :  { %5922 = vmatpush3.bf16.msra.mxu1 %v8366_v19 }
0x1669   :  { %5923 = vmatprep.subr.bf16.mxu1 %v8708_v40 }
0x166c   :  { %5925 = vmatpush3.bf16.msra.mxu1 %v8376_v51 }
0x166d   :  { %5959 = vmatprep.subr.bf16.mxu1 %v7874_v18  ;;  %v2739_v18 = vrot.slane %v8172_v55, %v7055_v4 }
0x1722   :  { %v3077_v16 = vpop.f32.mrb[26].mxu1 }
0x1723   :  { %v3081_v31 = vadd.f32 %v3077_v16, %v2994_v38  ;;  %v4945_v27 = vpop.f32.mrb[27].mxu1 }
0x1725   :  { %v3082_v61 = vmax.f32 %v3081_v31, 0.0  ;;  %v3539_v31 = vld [vmem:[%s8592_s0 + $0x5] sm:$0x1] }
0x1727   :  { %3213 = vmatmul.mubr.f32.vlgmr.msra.gmra.mrb[28].mxu0 %v3082_v61  ;;  %4979 = vmatmul.mubr.f32.vlgmr.msra.gmra.mrb[28].mxu1 %v3082_v61 }
0x1728   :  { %5929 = vmatpush1.bf16.msra.mxu0 %v7876_v54  ;;  %5961 = vmatpush1.bf16.msra.mxu1 %v7885_v15  ;;  %v3136_v54 = vrot.slane %v3131_v10, %v6647_v52  ;;  %v2743_v15 = vrot.slane %v8172_v55, %v7058_v8 }
0x1729   :  { %5931 = vmatprep.subr.bf16.mxu0 %v7899_v6  ;;  %5963 = vmatprep.subr.bf16.mxu1 %v7910_v60  ;;  %v3140_v6 = vrot.slane %v3131_v10, %v7055_v4 }
0x172a   :  { %3461 = vmatprep.mubr.f32.mxu0 %v8707_v50  ;;  %3532 = vmatprep.mubr.f32.mxu1 %v8707_v50 }
0x172c   :  { %5933 = vmatpush1.bf16.msra.mxu0 %v7912_v3  ;;  %5965 = vmatpush1.bf16.msra.mxu1 %v7921_v29  ;;  %v2821_v29 = vadd.f32 %v8181_v20, %v2739_v18 }
0x172d   :  { %5935 = vmatprep.subr.bf16.mxu0 %v7935_v21  ;;  %5967 = vmatprep.subr.bf16.mxu1 %v7946_v56 }
0x1730   :  { %5937 = vmatpush1.bf16.msra.mxu0 %v7948_v58  ;;  %5969 = vmatpush1.bf16.msra.mxu1 %v7957_v57  ;;  %v2890_v57 = vadd.f32 %v8176_v28, %v2743_v15 }
0x1731   :  { %5939 = vmatprep.subr.bf16.mxu0 %v7971_v30  ;;  %5971 = vmatprep.subr.bf16.mxu1 %v7982_v44 }
0x1734   :  { %5941 = vmatpush1.bf16.msra.mxu0 %v7984_v48  ;;  %5973 = vmatpush1.bf16.msra.mxu1 %v7993_v62 }
0x1735   :  { %5943 = vmatprep.subr.bf16.mxu0 %v8007_v41  ;;  %5975 = vmatprep.subr.bf16.mxu1 %v8018_v36 }
0x1738   :  { %5945 = vmatpush1.bf16.msra.mxu0 %v8020_v13  ;;  %5977 = vmatpush1.bf16.msra.mxu1 %v8029_v11 }
0x1739   :  { %5947 = vmatprep.subr.bf16.mxu0 %v8043_v34  ;;  %5979 = vmatprep.subr.bf16.mxu1 %v8054_v49  ;;  %v2747_v34 = vrot.slane %v8172_v55, %v7072_v12  ;;  %v3144_v49 = vrot.slane %v3131_v10, %v7058_v8  ;;  %v8815_v55 = vld [vmem:[#allocation20_spill] sm:$0xff] }
0x173c   :  { %5949 = vmatpush1.bf16.msra.mxu0 %v8056_v5  ;;  %5981 = vmatpush1.bf16.msra.mxu1 %v8068_v33  ;;  %v2892_v33 = vadd.f32 %v8183_v37, %v2747_v34  ;;  %v8816_v37 = vld [vmem:[#allocation19_spill] sm:$0xff] }
0x173d   :  { %5951 = vmatprep.subr.bf16.mxu0 %v8081_v35  ;;  %5983 = vmatprep.subr.bf16.mxu1 %v8083_v24  ;;  %v8833_v34 = vld [vmem:[#allocation35_spill] sm:$0xff] }
0x1740   :  { %5953 = vmatpush1.bf16.msra.mxu0 %v8095_v43  ;;  %5985 = vmatpush1.bf16.msra.mxu1 %v8108_v14 }
0x1741   :  { %5955 = vmatprep.subr.bf16.mxu0 %v8110_v63  ;;  %5987 = vmatprep.subr.bf16.mxu1 %v8121_v46 }
0x1744   :  { %5957 = vmatpush1.bf16.msra.mxu0 %v8133_v39  ;;  %5989 = vmatpush1.bf16.msra.mxu1 %v8137_v59 }
0x1745   :  { %5990 = vmatprep.subr.bf16.mxu0 %v8708_v40  ;;  %6014 = vmatprep.subr.bf16.mxu1 %v8708_v40 }
0x17fa   :  { %v3214_v60 = vpop.f32.mrb[28].mxu0  ;;  %v3285_v3 = vpop.f32.mrb[28].mxu1 }
0x17fb   :  { %v3215_v21 = vadd.f32 %v3214_v60, %v3136_v54  ;;  %v3216_v56 = vpop.f32.mrb[29].mxu0  ;;  %v4980_v58 = vpop.f32.mrb[29].mxu1  ;;  %v3286_v24 = vadd.f32 %v3285_v3, %v3144_v49  ;;  %v8834_v49 = vld [vmem:[#allocation36_spill] sm:$0xff] }
0x17fc   :  { %v3217_v30 = vadd.f32 %v3216_v56, %v3140_v6 }
0x17fd   :  { %v3289_v44 = vadd.f32 %v3215_v21, %v2821_v29 }
0x17fe   :  { %v3296_v48 = vadd.f32 %v3217_v30, %v2890_v57  ;;  %v8824_v57 = vld [vmem:[#allocation26_spill] sm:$0xff]  ;;  %v8825_v30 = vld [vmem:[#allocation27_spill] sm:$0xff] }
0x17ff   :  { %v4146_v62 = vmul.f32 -1.442695, %v3289_v44  ;;  %v8826_v44 = vld [vmem:[#allocation28_spill] sm:$0xff] }
0x1800   :  { %v4147_v41 = vmul.f32 -1.442695, %v3296_v48  ;;  %v8827_v48 = vld [vmem:[#allocation29_spill] sm:$0xff] }
0x1801   :  { %6201 = vpow2.f32 %v4146_v62  ;;  %v8828_v62 = vld [vmem:[#allocation30_spill] sm:$0xff] }
0x1802   :  { %6203 = vpow2.f32 %v4147_v41  ;;  %v8829_v41 = vld [vmem:[#allocation31_spill] sm:$0xff] }
0x180b   :  { %v6202_v36 = vpop.eup %6201 }
0x180c   :  { %v3293_v13 = vadd.f32 1.0, %v6202_v36  ;;  %v6204_v11 = vpop.eup %6203  ;;  %v8830_v36 = vld [vmem:[#allocation32_spill] sm:$0xff] }
0x180d   :  { %v3300_v5 = vadd.f32 1.0, %v6204_v11  ;;  %v8832_v11 = vld [vmem:[#allocation34_spill] sm:$0xff] }
0x180e   :  { %6205 = vrcp.f32 %v3293_v13  ;;  %v8831_v13 = vld [vmem:[#allocation33_spill] sm:$0xff] }
0x180f   :  { %6207 = vrcp.f32 %v3300_v5 }
0x1818   :  { %v6206_v35 = vpop.eup %6205 }
0x1819   :  { %v3303_v43 = vmul.f32 %v6206_v35, %v2892_v33  ;;  %v6208_v63 = vpop.eup %6207  ;;  %v8835_v35 = vld [vmem:[#allocation37_spill] sm:$0xff] }
0x181a   :  { %v3306_v46 = vsub.f32 1.0, %v6208_v63  ;;  %v3308_v28 = vmul.f32 %v6208_v63, %v8160_v26  ;;  %v8814_v26 = vld [vmem:[#allocation22_spill] sm:$0xff] }
0x181b   :  { %v3304_v14 = vadd.f32 %v3303_v43, %v3286_v24  ;;  %v8836_v24 = vld [vmem:[#allocation38_spill] sm:$0xff] }
0x181d   :  { %6209 = vtanh.f32 %v3304_v14 }
0x1827   :  { %v6210_v39 = vpop.eup %6209 }
0x1828   :  { %v3307_v59 = vmul.f32 %v6210_v39, %v3306_v46  ;;  %v3960_v39 = vld [vmem:[#allocation7 + $0x18] sm:$0xff] }
0x182a   :  { %v8435_v20 = vadd.f32 %v3308_v28, %v3307_v59  ;;  %v3959_v28 = vld [vmem:[#allocation7 + $0x10] sm:$0xff] }
0x182c   :  { %3310 = vst [vmem:[#allocation9 + $0x4] sm:$0x1] %v8435_v20  ;;  %3462 = vmatmul.mubr.f32.vlgmr.msra.gmra.mrb[30].mxu0 %v8435_v20  ;;  %3533 = vmatmul.mubr.f32.vlgmr.msra.gmra.mrb[30].mxu1 %v8435_v20 }
0x182d   :  { %5992 = vmatpush3.bf16.msra.mxu0 %v8195_v2  ;;  %5013 = vmatprep.mubr.msk.f32.mxu0 %vm6382_vm1, %v8707_v50  ;;  %v8817_v2 = vld [vmem:[#allocation18_spill] sm:$0xff] }
0x182e   :  { %5993 = vmatprep.subr.bf16.mxu0 %v8708_v40  ;;  %6016 = vmatpush3.bf16.msra.mxu1 %v8266_v7  ;;  %v8821_v7 = vld [vmem:[#allocation16_spill] sm:$0xff] }
0x182f   :  { %6017 = vmatprep.subr.bf16.mxu1 %v8708_v40  ;;  %5048 = vmatprep.mubr.msk.f32.mxu1 %vm6382_vm1, %v8707_v50 }
0x1831   :  { %5995 = vmatpush3.bf16.msra.mxu0 %v8201_v42  ;;  %v8818_v42 = vld [vmem:[#allocation23_spill] sm:$0xff] }
0x1832   :  { %5996 = vmatprep.subr.bf16.mxu0 %v8708_v40  ;;  %6019 = vmatpush3.bf16.msra.mxu1 %v8269_v23  ;;  %v8822_v23 = vld [vmem:[#allocation24_spill] sm:$0xff] }
0x1833   :  { %6020 = vmatprep.subr.bf16.mxu1 %v8708_v40 }
0x1835   :  { %5998 = vmatpush3.bf16.msra.mxu0 %v8211_v22  ;;  %v8819_v22 = vld [vmem:[#allocation21_spill] sm:$0xff] }
0x1836   :  { %5999 = vmatprep.subr.bf16.mxu0 %v8708_v40  ;;  %6022 = vmatpush3.bf16.msra.mxu1 %v8273_v1  ;;  %v8823_v1 = vld [vmem:[#allocation25_spill] sm:$0xff] }
0x1837   :  { %6023 = vmatprep.subr.bf16.mxu1 %v8708_v40 }
0x1839   :  { %6001 = vmatpush3.bf16.msra.mxu0 %v8221_v25  ;;  %v8820_v25 = vld [vmem:[#allocation17_spill] sm:$0xff] }
0x183a   :  { %6002 = vmatprep.subr.bf16.mxu0 %v8708_v40  ;;  %6025 = vmatpush3.bf16.msra.mxu1 %v8814_v26  ;;  %v3964_v26 = vld [vmem:[#allocation7 + $0x38] sm:$0xff] }
0x183b   :  { %6026 = vmatprep.subr.bf16.mxu1 %v8708_v40 }
0x183d   :  { %6004 = vmatpush3.bf16.msra.mxu0 %v8815_v55 }
0x183e   :  { %6005 = vmatprep.subr.bf16.mxu0 %v8708_v40  ;;  %6028 = vmatpush3.bf16.msra.mxu1 %v8816_v37  ;;  %v3961_v37 = vld [vmem:[#allocation7 + $0x20] sm:$0xff] }
0x183f   :  { %6029 = vmatprep.subr.bf16.mxu1 %v8708_v40 }
0x1841   :  { %6007 = vmatpush3.bf16.msra.mxu0 %v8817_v2  ;;  %v3963_v2 = vld [vmem:[#allocation7 + $0x30] sm:$0xff] }
0x1842   :  { %6008 = vmatprep.subr.bf16.mxu0 %v8708_v40  ;;  %6031 = vmatpush3.bf16.msra.mxu1 %v8818_v42  ;;  %v6100_v42 = vpack.c.bf16 %v3963_v2, %v3961_v37 }
0x1843   :  { %6032 = vmatprep.subr.bf16.mxu1 %v8708_v40 }
0x1845   :  { %6010 = vmatpush3.bf16.msra.mxu0 %v8819_v22  ;;  %v3966_v22 = vld [vmem:[#allocation7 + $0x48] sm:$0xff] }
0x1846   :  { %6011 = vmatprep.subr.bf16.mxu0 %v8708_v40  ;;  %6034 = vmatpush3.bf16.msra.mxu1 %v8820_v25  ;;  %v3968_v25 = vld [vmem:[#allocation7 + $0x58] sm:$0xff] }
0x1847   :  { %6035 = vmatprep.subr.bf16.mxu1 %v8708_v40 }
0x1849   :  { %6013 = vmatpush3.bf16.msra.mxu0 %v8821_v7  ;;  %v6102_v7 = vpack.c.bf16 %v3968_v25, %v3966_v22  ;;  %v3392_v25 = vrot.slane %v8479_v53, %v7072_v12 }
0x184a   :  { %6037 = vmatpush3.bf16.msra.mxu1 %v8822_v23  ;;  %6039 = vmatprep.subr.bf16.mxu0 %v8823_v1  ;;  %v3967_v23 = vld [vmem:[#allocation7 + $0x50] sm:$0xff] }
0x184b   :  { %6070 = vmatprep.subr.bf16.mxu1 %v8708_v40 }
0x18ff   :  { %v3463_v38 = vpop.f32.mrb[30].mxu0  ;;  %v8483_v16 = vpop.f32.mrb[30].mxu1 }
0x1900   :  { %v3464_v27 = vadd.f32 %v3463_v38, %v3380_v32  ;;  %v8488_v61 = vpop.f32.mrb[31].mxu0  ;;  %v8490_v10 = vpop.f32.mrb[31].mxu1  ;;  %v3970_v32 = vld [vmem:[#allocation7 + $0x68] sm:$0xff]  ;;  %v3972_v38 = vld [vmem:[#allocation7 + $0x78] sm:$0xff] }
0x1902   :  { %v3540_v18 = vadd.f32 %v3539_v31, %v3464_v27  ;;  %v6106_v31 = vpack.c.bf16 %v3972_v38, %v3970_v32  ;;  %v3969_v27 = vld [vmem:[#allocation7 + $0x60] sm:$0xff] }
0x1904   :  { %v3541_v54 = vsel %vm315_vm0, %v3540_v18, -inf }
0x1905   :  { %3542 = vmax.xlane.f32.xlu0 %v3541_v54 }
0x1992   :  { %v3543_v15 = vpop.xlane.xlu0 %3542 }
0x1993   :  { %v3544_v6 = vsub.f32 %v3540_v18, %v3543_v15  ;;  %v3971_v18 = vld [vmem:[#allocation7 + $0x70] sm:$0xff]  ;;  %v3974_v15 = vld [vmem:[#allocation7 + $0x88] sm:$0xff] }
0x1994   :  { %v6108_v54 = vpack.c.bf16 %v3971_v18, %v3969_v27 }
0x1995   :  { %v3545_v60 = vmul.f32 1.442695, %v3544_v6  ;;  %v3976_v6 = vld [vmem:[#allocation7 + $0x98] sm:$0xff] }
0x1997   :  { %6211 = vpow2.f32 %v3545_v60  ;;  %v6110_v60 = vpack.c.bf16 %v3976_v6, %v3974_v15 }
0x19a1   :  { %v6212_v3 = vpop.eup %6211 }
0x19a2   :  { %v3547_v29 = vsel %vm315_vm0, %v6212_v3, 0.0 }
0x19a3   :  { %3548 = vadd.xlane.f32.xlu1 %v3547_v29  ;;  %v3975_v29 = vld [vmem:[#allocation7 + $0x90] sm:$0xff] }
0x1a30   :  { %v3549_v21 = vpop.xlane.xlu1 %3548 }
0x1a31   :  { %6213 = vrcp.f32 %v3549_v21 }
0x1a3b   :  { %v6214_v56 = vpop.eup %6213 }
0x1a3c   :  { %v3551_v58 = vmul.f32 %v6214_v56, %v6212_v3  ;;  %v3973_v3 = vld [vmem:[#allocation7 + $0x80] sm:$0xff]  ;;  %v3978_v56 = vld [vmem:[#allocation7 + $0xa8] sm:$0xff] }
0x1a3d   :  { %v6112_v21 = vpack.c.bf16 %v3975_v29, %v3973_v3 }
0x1a3e   :  { %3552 = vst [vmem:[#allocation11 + $0x5] sm:$0x1] %v3551_v58  ;;  %5014 = vmatmul.mubr.f32.vlgmr.msra.gmra.mrb[32].mxu0 %v3551_v58  ;;  %v3980_v58 = vld [vmem:[#allocation7 + $0xb8] sm:$0xff] }
0x1a3f   :  { %6041 = vmatpush1.bf16.msra.mxu0 %v8824_v57  ;;  %3857 = vmatprep.mubr.f32.mxu0 %v8707_v50  ;;  %v6114_v57 = vpack.c.bf16 %v3980_v58, %v3978_v56 }
0x1a40   :  { %6043 = vmatprep.subr.bf16.mxu0 %v8825_v30  ;;  %v3977_v30 = vld [vmem:[#allocation7 + $0xa0] sm:$0xff] }
0x1a43   :  { %6045 = vmatpush1.bf16.msra.mxu0 %v8826_v44  ;;  %v3979_v44 = vld [vmem:[#allocation7 + $0xb0] sm:$0xff] }
0x1a44   :  { %6047 = vmatprep.subr.bf16.mxu0 %v8827_v48  ;;  %v6116_v48 = vpack.c.bf16 %v3979_v44, %v3977_v30 }
0x1a47   :  { %6049 = vmatpush1.bf16.msra.mxu0 %v8828_v62  ;;  %v3982_v62 = vld [vmem:[#allocation7 + $0xc8] sm:$0xff] }
0x1a48   :  { %6051 = vmatprep.subr.bf16.mxu0 %v8829_v41  ;;  %v3984_v41 = vld [vmem:[#allocation7 + $0xd8] sm:$0xff] }
0x1a4b   :  { %6053 = vmatpush1.bf16.msra.mxu0 %v8830_v36  ;;  %v6118_v36 = vpack.c.bf16 %v3984_v41, %v3982_v62 }
0x1a4c   :  { %6055 = vmatprep.subr.bf16.mxu0 %v8831_v13  ;;  %v3981_v13 = vld [vmem:[#allocation7 + $0xc0] sm:$0xff] }
0x1a4f   :  { %6057 = vmatpush1.bf16.msra.mxu0 %v8832_v11  ;;  %v3983_v11 = vld [vmem:[#allocation7 + $0xd0] sm:$0xff] }
0x1a50   :  { %6059 = vmatprep.subr.bf16.mxu0 %v8833_v34  ;;  %v6120_v34 = vpack.c.bf16 %v3983_v11, %v3981_v13 }
0x1a53   :  { %6061 = vmatpush1.bf16.msra.mxu0 %v8331_v45  ;;  %v8837_v45 = vld [vmem:[#allocation39_spill] sm:$0xff] }
0x1a54   :  { %6063 = vmatprep.subr.bf16.mxu0 %v8334_v9  ;;  %v8838_v9 = vld [vmem:[#allocation40_spill] sm:$0xff] }
0x1a57   :  { %6065 = vmatpush1.bf16.msra.mxu0 %v8834_v49  ;;  %v3986_v49 = vld [vmem:[#allocation7 + $0xe8] sm:$0xff] }
0x1a58   :  { %6067 = vmatprep.subr.bf16.mxu0 %v8371_v17  ;;  %v3639_v17 = vld [vmem:[%s8593_s1 + $0x5] sm:$0x1] }
0x1a5b   :  { %6069 = vmatpush1.bf16.msra.mxu0 %v8373_v0  ;;  %v8839_v0 = vld [vmem:[#allocation41_spill] sm:$0xff] }
0x1b11   :  { %v3635_v5 = vpop.f32.mrb[32].mxu0 }
0x1b12   :  { %v5015_v33 = vpop.f32.mrb[33].mxu0  ;;  %5049 = vmatmul.mubr.f32.vlgmr.msra.gmra.mrb[32].mxu1 %v3635_v5  ;;  %v3988_v5 = vld [vmem:[#allocation7 + $0xf8] sm:$0xff] }
0x1b13   :  { %6072 = vmatpush3.bf16.msra.mxu1 %v8835_v35  ;;  %5083 = vmatprep.mubr.msk.f32.mxu1 %vm6382_vm1, %v8707_v50  ;;  %v3985_v33 = vld [vmem:[#allocation7 + $0xe0] sm:$0xff]  ;;  %v6122_v35 = vpack.c.bf16 %v3988_v5, %v3986_v49 }
0x1b14   :  { %6073 = vmatprep.subr.bf16.mxu1 %v8708_v40 }
0x1b17   :  { %6075 = vmatpush3.bf16.msra.mxu1 %v8836_v24  ;;  %v3987_v24 = vld [vmem:[#allocation7 + $0xf0] sm:$0xff] }
0x1b18   :  { %6076 = vmatprep.subr.bf16.mxu1 %v8708_v40 }
0x1b1b   :  { %6078 = vmatpush3.bf16.msra.mxu1 %v8837_v45  ;;  %v6124_v45 = vpack.c.bf16 %v3987_v24, %v3985_v33 }
0x1b1c   :  { %6079 = vmatprep.subr.bf16.mxu1 %v8708_v40 }
0x1b1f   :  { %6081 = vmatpush3.bf16.msra.mxu1 %v8838_v9  ;;  %v3776_v9 = vld [vmem:[%s8600_s8] sm:$0x7] }
0x1b20   :  { %6082 = vmatprep.subr.bf16.mxu1 %v8708_v40 }
0x1b23   :  { %6084 = vmatpush3.bf16.msra.mxu1 %v8839_v0  ;;  %v3384_v0 = vrot.slane %v8479_v53, %v7055_v4 }
0x1b24   :  { %6085 = vmatprep.subr.bf16.mxu1 %v8708_v40 }
0x1b27   :  { %6087 = vmatpush3.bf16.msra.mxu1 %v8362_v47  ;;  %v3958_v47 = vld [vmem:[#allocation7 + $0x8] sm:$0xff] }
0x1b28   :  { %6088 = vmatprep.subr.bf16.mxu1 %v8708_v40  ;;  %v6094_v59 = vpack.c.bf16 %v3960_v39, %v3958_v47  ;;  %v3466_v47 = vadd.f32 %v8488_v61, %v3384_v0  ;;  %v3789_v61 = vrot.slane %v3776_v9, %v7058_v8 }
0x1b2a   :  { %6095 = vmatprep.subr.bf16.mxu0 %v6094_v59 }
0x1b2b   :  { %6090 = vmatpush3.bf16.msra.mxu1 %v8366_v19  ;;  %v3957_v19 = vld [vmem:[#allocation7] sm:$0xff] }
0x1b2c   :  { %6091 = vmatprep.subr.bf16.mxu1 %v8708_v40  ;;  %v6096_v40 = vpack.c.bf16 %v3959_v28, %v3957_v19 }
0x1b2f   :  { %6093 = vmatpush3.bf16.msra.mxu1 %v8376_v51  ;;  %v3962_v51 = vld [vmem:[#allocation7 + $0x28] sm:$0xff] }
0x1b30   :  { %v6098_v55 = vpack.c.bf16 %v3964_v26, %v3962_v51 }
0x1be5   :  { %v3722_v43 = vpop.f32.mrb[32].mxu1 }
0x1be6   :  { %v3726_v14 = vadd.f32 %v3722_v43, %v3639_v17  ;;  %v5050_v63 = vpop.f32.mrb[33].mxu1  ;;  %v3781_v17 = vrot.slane %v3776_v9, %v6647_v52  ;;  %v3388_v43 = vrot.slane %v8479_v53, %v7058_v8  ;;  %v3989_v8 = vld [vmem:[%s8602_s10] sm:$0x3]  ;;  %s6383_s10 = smov [#allocation9]  }
0x1be7   :  { %v3994_v53 = vrot.slane %v3989_v8, %v6647_v52  ;;  %s4111_s26 = sshll.u32 %s6383_s10, 4  ;;  %s4112_s26 = int_to_ptr.vmem [resolvable:$true] %s4111_s26 }
0x1be8   :  { %v3727_v46 = vmax.f32 %v3726_v14, 0.0  ;;  %v3785_v14 = vrot.slane %v3776_v9, %v7055_v4  ;;  %v3535_v28 = vadd.f32 %v8483_v16, %v3388_v43  ;;  %s6297_s16 = scalar_lea.vmem %s4112_s26, 128  ;;  %p6302_p11 = scmp.lt.s32.totalorder %s4112_s26, %s4112_s26 }
0x1be9   :  { %p6298_p10 = scmp.ne.s32.totalorder %s4112_s26, %s6297_s16  ;;  %p6303_p12 = scmp.lt.s32.totalorder %s6297_s16, %s6297_s16 }
0x1bea   :  { %3858 = vmatmul.mubr.f32.vlgmr.msra.gmra.mrb[34].mxu0 %v3727_v46  ;;  %5084 = vmatmul.mubr.f32.vlgmr.msra.gmra.mrb[34].mxu1 %v3727_v46 }
0x1beb   :  { %4065 = vmatprep.mubr.f32.mxu0 %v8707_v50  ;;  %6097 = vmatpush1.bf16.msra.mxu0 %v6096_v40  ;;  %v3965_v50 = vld [vmem:[#allocation7 + $0x40] sm:$0xff]  ;;  %p6304_p13 = por %p6303_p12, %p6302_p11 }
0x1bec   :  { %6099 = vmatprep.subr.bf16.mxu0 %v6098_v55  ;;  %v6104_v1 = vpack.c.bf16 %v3967_v23, %v3965_v50  ;;  %v3537_v50 = vadd.f32 %v8490_v10, %v3392_v25  ;;  %v3998_v10 = vrot.slane %v3989_v8, %v7055_v4 }
0x1bed   :  { %p6305_p0 = pnand %p6304_p13, %p6298_p10 }
0x1bef   :  { %6101 = vmatpush1.bf16.msra.mxu0 %v6100_v42 }
0x1bf0   :  { %6103 = vmatprep.subr.bf16.mxu0 %v6102_v7 }
0x1bf3   :  { %6105 = vmatpush1.bf16.msra.mxu0 %v6104_v1 }
0x1bf4   :  { %6107 = vmatprep.subr.bf16.mxu0 %v6106_v31 }
0x1bf7   :  { %6109 = vmatpush1.bf16.msra.mxu0 %v6108_v54 }
0x1bf8   :  { %6111 = vmatprep.subr.bf16.mxu0 %v6110_v60 }
0x1bfb   :  { %6113 = vmatpush1.bf16.msra.mxu0 %v6112_v21 }
0x1bfc   :  { %6115 = vmatprep.subr.bf16.mxu0 %v6114_v57 }
0x1bff   :  { %6117 = vmatpush1.bf16.msra.mxu0 %v6116_v48 }
0x1c00   :  { %6119 = vmatprep.subr.bf16.mxu0 %v6118_v36 }
0x1c03   :  { %6121 = vmatpush1.bf16.msra.mxu0 %v6120_v34 }
0x1c04   :  { %6123 = vmatprep.subr.bf16.mxu0 %v6122_v35 }
0x1c07   :  { %6125 = vmatpush1.bf16.msra.mxu0 %v6124_v45 }
0x1cbd   :  { %v3859_v63 = vpop.f32.mrb[34].mxu0  ;;  %v3930_v46 = vpop.f32.mrb[34].mxu1 }
0x1cbe   :  { %v3860_v39 = vadd.f32 %v3859_v63, %v3781_v17  ;;  %v3861_v59 = vpop.f32.mrb[35].mxu0  ;;  %v5085_v19 = vpop.f32.mrb[35].mxu1  ;;  %v3931_v23 = vadd.f32 %v3930_v46, %v3789_v61 }
0x1cbf   :  { %v3862_v40 = vadd.f32 %v3861_v59, %v3785_v14 }
0x1cc0   :  { %v3934_v51 = vadd.f32 %v3860_v39, %v3466_v47 }
0x1cc1   :  { %v3941_v26 = vadd.f32 %v3862_v40, %v3535_v28 }
0x1cc2   :  { %v4148_v55 = vmul.f32 -1.442695, %v3934_v51 }
0x1cc3   :  { %v4149_v37 = vmul.f32 -1.442695, %v3941_v26 }
0x1cc4   :  { %6215 = vpow2.f32 %v4148_v55 }
0x1cc5   :  { %6217 = vpow2.f32 %v4149_v37 }
0x1cce   :  { %v6216_v2 = vpop.eup %6215 }
0x1ccf   :  { %v3938_v42 = vadd.f32 1.0, %v6216_v2  ;;  %v6218_v22 = vpop.eup %6217 }
0x1cd0   :  { %v3945_v7 = vadd.f32 1.0, %v6218_v22 }
0x1cd1   :  { %6219 = vrcp.f32 %v3938_v42 }
0x1cd2   :  { %6221 = vrcp.f32 %v3945_v7 }
0x1cdb   :  { %v6220_v16 = vpop.eup %6219 }
0x1cdc   :  { %v3948_v1 = vmul.f32 %v6220_v16, %v3537_v50  ;;  %v6222_v38 = vpop.eup %6221 }
0x1cdd   :  { %v3951_v31 = vsub.f32 1.0, %v6222_v38  ;;  %v3953_v54 = vmul.f32 %v6222_v38, %v8435_v20 }
0x1cde   :  { %v3949_v32 = vadd.f32 %v3948_v1, %v3931_v23 }
0x1ce0   :  { %6223 = vtanh.f32 %v3949_v32 }
0x1cea   :  { %v6224_v27 = vpop.eup %6223 }
0x1ceb   :  { %v3952_v18 = vmul.f32 %v6224_v27, %v3951_v31 }
0x1ced   :  { %v3954_v15 = vadd.f32 %v3953_v54, %v3952_v18 }
0x1cef   :  { %3955 = vst [vmem:[#allocation9 + $0x5] sm:$0x1] %v3954_v15 }
0x1cf6   :  { %v3956_v12 = vld [vmem:[#allocation9] sm:$0x3f] }
0x1cf7   :  { %4066 = vmatmul.mubr.f32.vlgmr.msra.gmra.mrb[36].mxu0 %v3956_v12 }
0x1dca   :  { %v4067_v6 = vpop.f32.mrb[36].mxu0 }
0x1dcb   :  { %v4068_v60 = vadd.f32 %v4067_v6, %v3994_v53  ;;  %v4069_v3 = vpop.f32.mrb[37].mxu0 }
0x1dcc   :  { %v4070_v29 = vadd.f32 %v4069_v3, %v3998_v10 }
0x1dcd   :  { %v4073_v21 = vsel %vm4072_vm2, %v4068_v60, -inf }
0x1dce   :  { %v4074_v20 = vsel %vm4072_vm2, %v4070_v29, -inf }
0x1dcf   :  { %v4075_v56 = vmax.f32 %v4073_v21, %v4074_v20 }
0x1dd1   :  { %4076 = vmax.xlane.f32.xlu0 %v4075_v56 }
0x1e5e   :  { %v4077_v58 = vpop.xlane.xlu0 %4076 }
0x1e5f   :  { %v4078_v57 = vsub.f32 %v4068_v60, %v4077_v58  ;;  %v4079_v30 = vsub.f32 %v4070_v29, %v4077_v58 }
0x1e61   :  { %v4080_v44 = vmul.f32 1.442695, %v4078_v57  ;;  %v4082_v48 = vmul.f32 1.442695, %v4079_v30 }
0x1e63   :  { %6225 = vpow2.f32 %v4080_v44 }
0x1e64   :  { %6227 = vpow2.f32 %v4082_v48 }
0x1e6d   :  { %v6226_v52 = vpop.eup %6225 }
0x1e6e   :  { %v6228_v4 = vpop.eup %6227  ;;  %v4084_v62 = vsel %vm4072_vm2, %v6226_v52, 0.0 }
0x1e6f   :  { %v4085_v41 = vsel %vm4072_vm2, %v6228_v4, 0.0 }
0x1e70   :  { %v4086_v36 = vadd.f32 %v4085_v41, %v4084_v62 }
0x1e72   :  { %4087 = vadd.xlane.f32.xlu1 %v4086_v36 }
0x1e73   :  { %6308 = shalt.err (!%p6305_p0)
}
0x1e74   :  { %s6309_s9 = scalar_lea.hbm %s8604_s12, 128 }
0x1e75   :  { %p6310_p1 = scmp.ne.s32.totalorder %s8604_s12, %s6309_s9  ;;  %p6313_p2 = scmp.lt.u32.totalorder %s6309_s9, %s8604_s12 }
0x1e77   :  { %p6315_p3 = pnand %p6313_p2, %p6310_p1 }
0x1e79   :  { %6318 = shalt.err (!%p6315_p3)
}
0x1e7a   :  { %4114 = dma.vmem_to_hbm [thread:$0]  %s4112_s26, 128, %s8604_s12, [#allocation10]  }
0x1e7b   :  { %s6384_s25 = smov [#allocation11]  }
0x1e7c   :  { %s4121_s27 = sshll.u32 %s6384_s25, 4  ;;  %s4122_s27 = int_to_ptr.vmem [resolvable:$true] %s4121_s27 }
0x1e7d   :  { %s6319_s3 = scalar_lea.vmem %s4122_s27, 128  ;;  %p6324_p5 = scmp.lt.s32.totalorder %s4122_s27, %s4122_s27 }
0x1e7e   :  { %p6320_p4 = scmp.ne.s32.totalorder %s4122_s27, %s6319_s3  ;;  %p6325_p6 = scmp.lt.s32.totalorder %s6319_s3, %s6319_s3 }
0x1e80   :  { %p6326_p7 = por %p6325_p6, %p6324_p5 }
0x1e82   :  { %p6327_p8 = pnand %p6326_p7, %p6320_p4 }
0x1e84   :  { %6330 = shalt.err (!%p6327_p8)
}
0x1e85   :  { %s6331_s6 = scalar_lea.hbm %s8605_s13, 128 }
0x1e86   :  { %p6332_p9 = scmp.ne.s32.totalorder %s8605_s13, %s6331_s6  ;;  %p6335_p10 = scmp.lt.u32.totalorder %s6331_s6, %s8605_s13 }
0x1e88   :  { %p6337_p11 = pnand %p6335_p10, %p6332_p9 }
0x1e8a   :  { %6340 = shalt.err (!%p6337_p11)
}
0x1e8b   :  { %4124 = dma.vmem_to_hbm [thread:$0]  %s4122_s27, 128, %s8605_s13, [#allocation10]  }
0x1e8c   :  { %s6385_s5 = smov [#allocation8]  }
0x1e8d   :  { %s4101_s1 = sshll.u32 %s6385_s5, 4  ;;  %s4102_s1 = int_to_ptr.vmem [resolvable:$true] %s4101_s1 }
0x1e8e   :  { %s6341_s15 = scalar_lea.vmem %s4102_s1, 256  ;;  %p6346_p13 = scmp.lt.s32.totalorder %s4102_s1, %s4102_s1 }
0x1e8f   :  { %p6342_p12 = scmp.ne.s32.totalorder %s4102_s1, %s6341_s15  ;;  %p6347_p0 = scmp.lt.s32.totalorder %s6341_s15, %s6341_s15 }
0x1e91   :  { %p6348_p1 = por %p6347_p0, %p6346_p13 }
0x1e93   :  { %p6349_p2 = pnand %p6348_p1, %p6342_p12 }
0x1eff   :  { %v4088_v13 = vpop.xlane.xlu1 %4087 }
0x1f00   :  { %6229 = vlog2.f32 %v4088_v13 }
0x1f0a   :  { %v6230_v11 = vpop.eup %6229 }
0x1f0b   :  { %v4090_v34 = vmul.f32 0.6931472, %v6230_v11 }
0x1f0d   :  { %v4091_v49 = vsub.f32 %v4078_v57, %v4090_v34  ;;  %v4092_v5 = vsub.f32 %v4079_v30, %v4090_v34 }
0x1f0f   :  { %4093 = vst [vmem:[#allocation8] sm:$0x3f] %v4091_v49  ;;  %4094 = vst [vmem:[#allocation8 + $0x8] sm:$0x3f] %v4092_v5 }
0x1f10   :  { %6352 = shalt.err (!%p6349_p2)
}
0x1f11   :  { %s6353_s7 = scalar_lea.hbm %s8603_s11, 256 }
0x1f12   :  { %p6354_p3 = scmp.ne.s32.totalorder %s8603_s11, %s6353_s7  ;;  %p6357_p4 = scmp.lt.u32.totalorder %s6353_s7, %s8603_s11 }
0x1f14   :  { %p6359_p5 = pnand %p6357_p4, %p6354_p3 }
0x1f16   :  { %6362 = shalt.err (!%p6359_p5)
}
0x1f17   :  { %4104 = dma.vmem_to_hbm [thread:$0]  %s4102_s1, 256, %s8603_s11, [#allocation4]  }
0x1f18   :  { %6367 = dma.done.wait [#allocation4], 256  }
0x1f19   :  { %6368 = vsyncadd [#allocation4], 4294967040 }
0x1f1a   :  { %6369 = dma.done.wait [#allocation10], 256  }
0x1f1b   :  { %6370 = vsyncadd [#allocation10], 4294967040 }
0x1f1c   :  { %4134 = vsyncpa [#allocation3], 1 }
0x1f1d   :  { %4135 = vsyncpa [#allocation6], 1 }
0x1f1e   :  { %4136 = vsyncpa [#allocation4], 1 }
0x1f1f   :  { %4137 = vsyncpa [#allocation10], 1 }

</bundles_post_ra>
